<compile_context>
chip_gen: v5e
topology: v5e:2x2
jax: 0.10.0
libtpu: 0.0.40
codegen_flags: <defaults>
</compile_context>

<pallas_src>
import functools
import math

import jax
import jax.numpy as jnp
from jax.experimental import pallas as pl
from jax.experimental.pallas import tpu as pltpu


# ----------------------------------------------------------------------------
# In-kernel helpers
# ----------------------------------------------------------------------------
def _layernorm(x, g, b, eps=1e-5):
    mu = jnp.mean(x, axis=-1, keepdims=True)
    xc = x - mu
    var = jnp.mean(xc * xc, axis=-1, keepdims=True)
    return xc * jax.lax.rsqrt(var + eps) * g + b


# ----------------------------------------------------------------------------
# Single fused kernel: TCN blocks + transformer encoder + readout + fc
# ----------------------------------------------------------------------------
def _fused_kernel(*refs, B, L, tcn_cfg, num_layers, nhead, scale):
    # ----- unpack refs (order fixed by the wrapper) -----
    i = 0
    x_ref = refs[i]; i += 1
    tcn_refs = []
    for (_k, _d, has_down) in tcn_cfg:
        n = 4 if has_down else 3
        tcn_refs.append(refs[i:i + n]); i += n
    emb_w, emb_b, pe = refs[i:i + 3]; i += 3
    in_w, in_b, out_w, ff1_w, ff1_b, ff2_w, vecd = refs[i:i + 7]; i += 7
    fc_w, fc_b = refs[i:i + 2]; i += 2
    o_ref = refs[i]

    N = B * L                                       # batch folded into matmul rows
    h = x_ref[...].reshape(N, x_ref.shape[-1])      # (B*L, C_in), time-major, f32

    # local time index inside each batch element: causal zero-fill mask for the
    # rolls (also prevents roll leakage across the folded batch boundary).
    local_t = jax.lax.broadcasted_iota(jnp.int32, (B, L, 1), 1).reshape(N, 1)

    # ---------------- TCN residual blocks ----------------
    for blk, (K, dil, has_down) in zip(tcn_refs, tcn_cfg):
        w1_ref, w2_ref, b_ref = blk[0], blk[1], blk[2]
        bvec = b_ref[...]                           # (nb, C_out) f32 rows [b1,b2,(bd)]

        def conv(v, w_ref, brow):
            # dilated causal conv: out[t] = b + sum_k W_k @ v[t - (K-1-k)*dil]
            acc = None
            for k in range(K):
                s = (K - 1 - k) * dil
                if s == 0:
                    vk = v
                else:
                    # causal time shift on the XLU + zero-fill of the first s rows
                    vk = jnp.where(local_t >= s, pltpu.roll(v, s, 0), 0.0)
                term = jnp.dot(vk.astype(jnp.bfloat16), w_ref[k],
                               preferred_element_type=jnp.float32)
                acc = term if acc is None else acc + term
            return acc + brow

        h1 = jnp.maximum(conv(h, w1_ref, bvec[0:1]), 0.0)        # conv1 + relu
        h2 = jnp.maximum(conv(h1, w2_ref, bvec[1:2]), 0.0)       # conv2 + relu
        if has_down:
            res = jnp.dot(h.astype(jnp.bfloat16), blk[3][...],
                          preferred_element_type=jnp.float32) + bvec[2:3]
        else:
            res = h
        h = jnp.maximum(h2 + res, 0.0)                           # residual + relu

    # ---------------- transformer encoder ----------------
    S = L
    D = emb_w.shape[-1]
    dh = D // nhead

    h = jnp.dot(h.astype(jnp.bfloat16), emb_w[...],
                preferred_element_type=jnp.float32) + emb_b[...]
    h = (h.reshape(B, S, D) + pe[...]).reshape(N, D)             # + positional enc

    for li in range(num_layers):
        vd = vecd[li]                                            # (6, D) f32 consts
        # --- self-attention ---
        qkv = jnp.dot(h.astype(jnp.bfloat16), in_w[li],
                      preferred_element_type=jnp.float32) + in_b[li]
        qkvb = qkv.astype(jnp.bfloat16).reshape(B, S, 3 * D)     # cast once, not per head
        heads = []
        for hd in range(nhead):
            lo = hd * dh
            q = qkvb[:, :, lo:lo + dh]
            k = qkvb[:, :, D + lo:D + lo + dh]
            v = qkvb[:, :, 2 * D + lo:2 * D + lo + dh]
            sc = jnp.einsum('bqd,bkd->bqk', q, k,                # no k transpose
                            preferred_element_type=jnp.float32) * scale
            sc = sc - jnp.max(sc, axis=-1, keepdims=True)
            p = jnp.exp(sc)
            p = p * pl.reciprocal(jnp.sum(p, axis=-1, keepdims=True), approx=True)
            heads.append(jnp.einsum('bqk,bkd->bqd', p.astype(jnp.bfloat16), v,
                                    preferred_element_type=jnp.float32))
        ctx = jnp.concatenate(heads, axis=-1).reshape(N, D)      # heads along lanes
        attn = jnp.dot(ctx.astype(jnp.bfloat16), out_w[li],      # ONE out-projection
                       preferred_element_type=jnp.float32) + vd[0:1]
        h = _layernorm(h + attn, vd[2:3], vd[3:4])               # residual + LN1
        # --- feed-forward ---
        ff = jnp.maximum(jnp.dot(h.astype(jnp.bfloat16), ff1_w[li],
                                 preferred_element_type=jnp.float32) + ff1_b[li], 0.0)
        y = jnp.dot(ff.astype(jnp.bfloat16), ff2_w[li],
                    preferred_element_type=jnp.float32) + vd[1:2]
        h = _layernorm(h + y, vd[4:5], vd[5:6])                  # residual + LN2

    # ---------------- last-token readout + fc ----------------
    # one-hot selection of rows b*S + (S-1) (avoids unaligned sublane slicing)
    sel = (jax.lax.broadcasted_iota(jnp.int32, (B, N), 1) ==
           jax.lax.broadcasted_iota(jnp.int32, (B, N), 0) * S + (S - 1)
           ).astype(jnp.bfloat16)
    last = jnp.dot(sel, h.astype(jnp.bfloat16),
                   preferred_element_type=jnp.float32)           # (B, D)
    o_ref[...] = jnp.dot(last.astype(jnp.bfloat16), fc_w[...],
                         preferred_element_type=jnp.float32) + fc_b[...]   # (B, OL)


# ----------------------------------------------------------------------------
# Wrapper: one pallas_call for the whole forward pass
# ----------------------------------------------------------------------------
def tcn_transformer_forward(packed, x, nhead):
    """x: (B, C_in, L) NCL like PyTorch conv1d -> (B, output_len)."""
    B, _, L = x.shape
    # go time-major once; this also covers PyTorch's tcn_features.transpose(1, 2)
    xt = jnp.transpose(x, (0, 2, 1))                             # (B, L, C_in)

    D = packed["emb_w"].shape[1]
    OL = packed["fc_w"].shape[1]
    num_layers = int(packed["in_w"].shape[0])
    scale = 1.0 / math.sqrt(D // nhead)

    inputs = [xt]
    tcn_cfg = []
    for i, blk in enumerate(packed["tcn"]):
        has_down = "wd" in blk
        tcn_cfg.append((blk["w1"].shape[0], 2 ** i, has_down))   # (K, dilation, down)
        inputs += [blk["w1"], blk["w2"], blk["b"]]
        if has_down:
            inputs.append(blk["wd"])
    inputs += [packed["emb_w"], packed["emb_b"], packed["pe"][:L]]
    inputs += [packed["in_w"], packed["in_b"], packed["out_w"],
               packed["ff1_w"], packed["ff1_b"], packed["ff2_w"], packed["vecd"]]
    inputs += [packed["fc_w"], packed["fc_b"]]

    kernel = functools.partial(_fused_kernel, B=B, L=L, tcn_cfg=tuple(tcn_cfg),
                               num_layers=num_layers, nhead=nhead, scale=scale)

    # Single launch, grid=(): whole arrays live in VMEM for the one invocation
    # (a few hundred KB at these shapes).
    # TODO(synk): at production sizes (d_model>=512, many layers) the
    # all-weights-resident design exceeds VMEM: add a grid axis over layers
    # with per-layer weight BlockSpecs (+ vmem_limit_bytes), and on v7x a
    # CORE_PARALLEL batch axis so both TensorCores get work.
    return pl.pallas_call(
        kernel,
        out_shape=jax.ShapeDtypeStruct((B, OL), jnp.float32),
    )(*inputs)


# ----------------------------------------------------------------------------
# Host-side parameter construction and one-time packing
# ----------------------------------------------------------------------------
def dense_init(key, fan_in, fan_out):
    scale = 1.0 / math.sqrt(fan_in)
    kw, kb = jax.random.split(key)
    w = jax.random.uniform(kw, (fan_in, fan_out), jnp.float32, -scale, scale)
    b = jax.random.uniform(kb, (fan_out,), jnp.float32, -scale, scale)
    return w, b


def conv_init(key, c_in, c_out, ksize):
    # weight stored as (K, C_in, C_out) -- axis permutation of PyTorch (C_out, C_in, K)
    scale = 1.0 / math.sqrt(c_in * ksize)
    kw, kb = jax.random.split(key)
    w = jax.random.uniform(kw, (ksize, c_in, c_out), jnp.float32, -scale, scale)
    b = jax.random.uniform(kb, (c_out,), jnp.float32, -scale, scale)
    return w, b


def make_pe(max_len, d_model):
    position = jnp.arange(max_len, dtype=jnp.float32)[:, None]
    div_term = jnp.exp(jnp.arange(0, d_model, 2, dtype=jnp.float32)
                       * (-math.log(10000.0) / d_model))
    pe = jnp.zeros((max_len, d_model), jnp.float32)
    pe = pe.at[:, 0::2].set(jnp.sin(position * div_term))
    pe = pe.at[:, 1::2].set(jnp.cos(position * div_term))
    return pe


def build_params(key, num_inputs, num_channels, kernel_size,
                 input_size, output_len, d_model, nhead, num_layers, dff, max_len):
    blocks = []
    c_prev = num_inputs
    for c_out in num_channels:
        key, k1, k2, k3 = jax.random.split(key, 4)
        w1, b1 = conv_init(k1, c_prev, c_out, kernel_size)
        w2, b2 = conv_init(k2, c_out, c_out, kernel_size)
        bp = dict(w1=w1, b1=b1, w2=w2, b2=b2)
        if c_prev != c_out:
            wd, bd = conv_init(k3, c_prev, c_out, 1)
            bp.update(wd=wd[0], bd=bd)                 # (C_in, C_out) 1x1 conv
        blocks.append(bp)
        c_prev = c_out
    # TODO(synk): weight_norm (use_norm) and use_skip_connections of the TCN lib
    # are disabled in this synthetic config; only the plain residual TCN path is built.

    key, ke, kf = jax.random.split(key, 3)
    emb_w, emb_b = dense_init(ke, input_size, d_model)
    fc_w, fc_b = dense_init(kf, d_model, output_len)
    layers = []
    for _ in range(num_layers):
        key, k1, k2, k3, k4 = jax.random.split(key, 5)
        in_w, in_b = dense_init(k1, d_model, 3 * d_model)
        out_w, out_b = dense_init(k2, d_model, d_model)
        ff1_w, ff1_b = dense_init(k3, d_model, dff)
        ff2_w, ff2_b = dense_init(k4, dff, d_model)
        layers.append(dict(
            in_w=in_w, in_b=in_b, out_w=out_w, out_b=out_b,
            ff1_w=ff1_w, ff1_b=ff1_b, ff2_w=ff2_w, ff2_b=ff2_b,
            ln1_g=jnp.ones((d_model,), jnp.float32), ln1_b=jnp.zeros((d_model,), jnp.float32),
            ln2_g=jnp.ones((d_model,), jnp.float32), ln2_b=jnp.zeros((d_model,), jnp.float32),
        ))
    transformer = dict(emb_w=emb_w, emb_b=emb_b, fc_w=fc_w, fc_b=fc_b,
                       pe=make_pe(max_len, d_model), layers=layers)
    return dict(tcn=blocks, transformer=transformer)


def pack_params(params):
    """One-time host-side repack: pre-cast matmul weights to bf16, stack
    per-layer tensors along a leading axis, and pack the small per-layer
    D-wide vectors into one (num_layers, 6, D) slab (kept in f32: they are
    pure f32 adds / LN affine inside the kernel)."""
    bf16 = jnp.bfloat16
    tcn = []
    for bp in params["tcn"]:
        blk = {"w1": bp["w1"].astype(bf16), "w2": bp["w2"].astype(bf16)}
        if "wd" in bp:
            blk["b"] = jnp.stack([bp["b1"], bp["b2"], bp["bd"]])
            blk["wd"] = bp["wd"].astype(bf16)
        else:
            blk["b"] = jnp.stack([bp["b1"], bp["b2"]])
        tcn.append(blk)

    tp = params["transformer"]
    lyr = tp["layers"]
    return dict(
        tcn=tcn,
        emb_w=tp["emb_w"].astype(bf16),
        emb_b=tp["emb_b"].reshape(1, -1),
        pe=tp["pe"],
        fc_w=tp["fc_w"].astype(bf16),
        fc_b=tp["fc_b"].reshape(1, -1),
        in_w=jnp.stack([l["in_w"] for l in lyr]).astype(bf16),
        in_b=jnp.stack([l["in_b"].reshape(1, -1) for l in lyr]),
        out_w=jnp.stack([l["out_w"] for l in lyr]).astype(bf16),
        ff1_w=jnp.stack([l["ff1_w"] for l in lyr]).astype(bf16),
        ff1_b=jnp.stack([l["ff1_b"].reshape(1, -1) for l in lyr]),
        ff2_w=jnp.stack([l["ff2_w"] for l in lyr]).astype(bf16),
        vecd=jnp.stack([jnp.stack([l["out_b"], l["ff2_b"],
                                   l["ln1_g"], l["ln1_b"],
                                   l["ln2_g"], l["ln2_b"]]) for l in lyr]),
    )


if __name__ == "__main__":
    # Small, module-consistent shapes.
    B, C_in, L = 2, 4, 16                 # batch, TCN input channels, sequence length
    num_channels = [8, 8]                 # TCN block output channels
    kernel_size = 3
    d_model, nhead, num_layers = 32, 4, 2
    dim_feedforward, output_len = 64, 5
    input_size = num_channels[-1]         # transformer input dim = last TCN channel

    key = jax.random.PRNGKey(0)
    key, kp, kx = jax.random.split(key, 3)
    params = build_params(kp, C_in, num_channels, kernel_size,
                          input_size, output_len, d_model, nhead,
                          num_layers, dim_feedforward, max_len=64)
    packed = pack_params(params)          # bf16 weights + stacked layer constants, once

    x = jax.random.normal(kx, (B, C_in, L), dtype=jnp.float32)   # NCL, like PyTorch conv1d

    fwd = jax.jit(functools.partial(tcn_transformer_forward, nhead=nhead))
    out = jax.block_until_ready(fwd(packed, x))
    assert out.shape == (B, output_len), out.shape
    assert bool(jnp.all(jnp.isfinite(out)))
    print("KERNEL_OK")
</pallas_src>

<mosaic_0001>
module attributes {stable_mosaic.version = 11 : i64} {
  func.func @_fused_kernel(%arg0: memref<2x16x4xf32, #tpu.memory_space<vmem>>, %arg1: memref<3x4x8xbf16, #tpu.memory_space<vmem>>, %arg2: memref<3x8x8xbf16, #tpu.memory_space<vmem>>, %arg3: memref<3x8xf32, #tpu.memory_space<vmem>>, %arg4: memref<4x8xbf16, #tpu.memory_space<vmem>>, %arg5: memref<3x8x8xbf16, #tpu.memory_space<vmem>>, %arg6: memref<3x8x8xbf16, #tpu.memory_space<vmem>>, %arg7: memref<2x8xf32, #tpu.memory_space<vmem>>, %arg8: memref<8x32xbf16, #tpu.memory_space<vmem>>, %arg9: memref<1x32xf32, #tpu.memory_space<vmem>>, %arg10: memref<16x32xf32, #tpu.memory_space<vmem>>, %arg11: memref<2x32x96xbf16, #tpu.memory_space<vmem>>, %arg12: memref<2x1x96xf32, #tpu.memory_space<vmem>>, %arg13: memref<2x32x32xbf16, #tpu.memory_space<vmem>>, %arg14: memref<2x32x64xbf16, #tpu.memory_space<vmem>>, %arg15: memref<2x1x64xf32, #tpu.memory_space<vmem>>, %arg16: memref<2x64x32xbf16, #tpu.memory_space<vmem>>, %arg17: memref<2x6x32xf32, #tpu.memory_space<vmem>>, %arg18: memref<32x5xbf16, #tpu.memory_space<vmem>>, %arg19: memref<1x5xf32, #tpu.memory_space<vmem>>, %arg20: memref<2x5xf32, #tpu.memory_space<vmem>>) attributes {dimension_semantics = [], scalar_prefetch = 0 : i64, scratch_operands = 0 : i64, tpu.core_type = #tpu.core_type<tc>} {
    %c0 = arith.constant 0 : index
    %c0_0 = arith.constant 0 : index
    %c0_1 = arith.constant 0 : index
    %0 = vector.load %arg0[%c0, %c0_0, %c0_1] : memref<2x16x4xf32, #tpu.memory_space<vmem>>, vector<2x16x4xf32>
    %1 = vector.shape_cast %0 : vector<2x16x4xf32> to vector<32x4xf32>
    %2 = tpu.iota {dimensions = array<i32: 1>} : vector<2x16x1xi32>
    %3 = vector.shape_cast %2 : vector<2x16x1xi32> to vector<32x1xi32>
    %c0_2 = arith.constant 0 : index
    %c0_3 = arith.constant 0 : index
    %4 = vector.load %arg3[%c0_2, %c0_3] : memref<3x8xf32, #tpu.memory_space<vmem>>, vector<3x8xf32>
    %5 = vector.extract_strided_slice %4 {offsets = [0, 0], sizes = [1, 8], strides = [1, 1]} : vector<3x8xf32> to vector<1x8xf32>
    %c2_i32 = arith.constant 2 : i32
    %6 = vector.broadcast %c2_i32 : i32 to vector<32x1xi32>
    %7 = arith.cmpi sge, %3, %6 : vector<32x1xi32>
    %c2_i32_4 = arith.constant 2 : i32
    %8 = tpu.dynamic_rotate %1 by %c2_i32_4 dim 0 : vector<32x4xf32>, i32 -> vector<32x4xf32>
    %cst = arith.constant 0.000000e+00 : f32
    %9 = vector.shape_cast %7 : vector<32x1xi1> to vector<32x1xi1>
    %10 = vector.broadcast %9 : vector<32x1xi1> to vector<32x4xi1>
    %11 = vector.broadcast %cst : f32 to vector<32x4xf32>
    %12 = arith.select %10, %8, %11 : vector<32x4xi1>, vector<32x4xf32>
    %13 = arith.truncf %12 : vector<32x4xf32> to vector<32x4xbf16>
    %c0_5 = arith.constant 0 : index
    %c0_6 = arith.constant 0 : index
    %c0_7 = arith.constant 0 : index
    %14 = vector.load %arg1[%c0_5, %c0_6, %c0_7] : memref<3x4x8xbf16, #tpu.memory_space<vmem>>, vector<1x4x8xbf16>
    %15 = vector.shape_cast %14 : vector<1x4x8xbf16> to vector<4x8xbf16>
    %cst_8 = arith.constant dense<0.000000e+00> : vector<32x8xf32>
    %16 = tpu.matmul %13, %15, %cst_8 {dimension_numbers = #tpu.dot_dimension_numbers<[1], [0], [0], [1], [0, 0, 1, 1], [], []>} : vector<32x4xbf16>, vector<4x8xbf16>, vector<32x8xf32> -> vector<32x8xf32>
    %c1_i32 = arith.constant 1 : i32
    %17 = vector.broadcast %c1_i32 : i32 to vector<32x1xi32>
    %18 = arith.cmpi sge, %3, %17 : vector<32x1xi32>
    %c1_i32_9 = arith.constant 1 : i32
    %19 = tpu.dynamic_rotate %1 by %c1_i32_9 dim 0 : vector<32x4xf32>, i32 -> vector<32x4xf32>
    %cst_10 = arith.constant 0.000000e+00 : f32
    %20 = vector.shape_cast %18 : vector<32x1xi1> to vector<32x1xi1>
    %21 = vector.broadcast %20 : vector<32x1xi1> to vector<32x4xi1>
    %22 = vector.broadcast %cst_10 : f32 to vector<32x4xf32>
    %23 = arith.select %21, %19, %22 : vector<32x4xi1>, vector<32x4xf32>
    %24 = arith.truncf %23 : vector<32x4xf32> to vector<32x4xbf16>
    %c1 = arith.constant 1 : index
    %c0_11 = arith.constant 0 : index
    %c0_12 = arith.constant 0 : index
    %25 = vector.load %arg1[%c1, %c0_11, %c0_12] : memref<3x4x8xbf16, #tpu.memory_space<vmem>>, vector<1x4x8xbf16>
    %26 = vector.shape_cast %25 : vector<1x4x8xbf16> to vector<4x8xbf16>
    %cst_13 = arith.constant dense<0.000000e+00> : vector<32x8xf32>
    %27 = tpu.matmul %24, %26, %cst_13 {dimension_numbers = #tpu.dot_dimension_numbers<[1], [0], [0], [1], [0, 0, 1, 1], [], []>} : vector<32x4xbf16>, vector<4x8xbf16>, vector<32x8xf32> -> vector<32x8xf32>
    %28 = arith.addf %16, %27 : vector<32x8xf32>
    %29 = arith.truncf %1 : vector<32x4xf32> to vector<32x4xbf16>
    %c2 = arith.constant 2 : index
    %c0_14 = arith.constant 0 : index
    %c0_15 = arith.constant 0 : index
    %30 = vector.load %arg1[%c2, %c0_14, %c0_15] : memref<3x4x8xbf16, #tpu.memory_space<vmem>>, vector<1x4x8xbf16>
    %31 = vector.shape_cast %30 : vector<1x4x8xbf16> to vector<4x8xbf16>
    %cst_16 = arith.constant dense<0.000000e+00> : vector<32x8xf32>
    %32 = tpu.matmul %29, %31, %cst_16 {dimension_numbers = #tpu.dot_dimension_numbers<[1], [0], [0], [1], [0, 0, 1, 1], [], []>} : vector<32x4xbf16>, vector<4x8xbf16>, vector<32x8xf32> -> vector<32x8xf32>
    %33 = arith.addf %28, %32 : vector<32x8xf32>
    %34 = vector.broadcast %5 : vector<1x8xf32> to vector<32x8xf32>
    %35 = arith.addf %33, %34 : vector<32x8xf32>
    %cst_17 = arith.constant 0.000000e+00 : f32
    %36 = vector.broadcast %cst_17 : f32 to vector<32x8xf32>
    %37 = arith.maximumf %35, %36 : vector<32x8xf32>
    %38 = vector.extract_strided_slice %4 {offsets = [1, 0], sizes = [1, 8], strides = [1, 1]} : vector<3x8xf32> to vector<1x8xf32>
    %c2_i32_18 = arith.constant 2 : i32
    %39 = vector.broadcast %c2_i32_18 : i32 to vector<32x1xi32>
    %40 = arith.cmpi sge, %3, %39 : vector<32x1xi32>
    %c2_i32_19 = arith.constant 2 : i32
    %41 = tpu.dynamic_rotate %37 by %c2_i32_19 dim 0 : vector<32x8xf32>, i32 -> vector<32x8xf32>
    %cst_20 = arith.constant 0.000000e+00 : f32
    %42 = vector.shape_cast %40 : vector<32x1xi1> to vector<32x1xi1>
    %43 = vector.broadcast %42 : vector<32x1xi1> to vector<32x8xi1>
    %44 = vector.broadcast %cst_20 : f32 to vector<32x8xf32>
    %45 = arith.select %43, %41, %44 : vector<32x8xi1>, vector<32x8xf32>
    %46 = arith.truncf %45 : vector<32x8xf32> to vector<32x8xbf16>
    %c0_21 = arith.constant 0 : index
    %c0_22 = arith.constant 0 : index
    %c0_23 = arith.constant 0 : index
    %47 = vector.load %arg2[%c0_21, %c0_22, %c0_23] : memref<3x8x8xbf16, #tpu.memory_space<vmem>>, vector<1x8x8xbf16>
    %48 = vector.shape_cast %47 : vector<1x8x8xbf16> to vector<8x8xbf16>
    %cst_24 = arith.constant dense<0.000000e+00> : vector<32x8xf32>
    %49 = tpu.matmul %46, %48, %cst_24 {dimension_numbers = #tpu.dot_dimension_numbers<[1], [0], [0], [1], [0, 0, 1, 1], [], []>} : vector<32x8xbf16>, vector<8x8xbf16>, vector<32x8xf32> -> vector<32x8xf32>
    %c1_i32_25 = arith.constant 1 : i32
    %50 = vector.broadcast %c1_i32_25 : i32 to vector<32x1xi32>
    %51 = arith.cmpi sge, %3, %50 : vector<32x1xi32>
    %c1_i32_26 = arith.constant 1 : i32
    %52 = tpu.dynamic_rotate %37 by %c1_i32_26 dim 0 : vector<32x8xf32>, i32 -> vector<32x8xf32>
    %cst_27 = arith.constant 0.000000e+00 : f32
    %53 = vector.shape_cast %51 : vector<32x1xi1> to vector<32x1xi1>
    %54 = vector.broadcast %53 : vector<32x1xi1> to vector<32x8xi1>
    %55 = vector.broadcast %cst_27 : f32 to vector<32x8xf32>
    %56 = arith.select %54, %52, %55 : vector<32x8xi1>, vector<32x8xf32>
    %57 = arith.truncf %56 : vector<32x8xf32> to vector<32x8xbf16>
    %c1_28 = arith.constant 1 : index
    %c0_29 = arith.constant 0 : index
    %c0_30 = arith.constant 0 : index
    %58 = vector.load %arg2[%c1_28, %c0_29, %c0_30] : memref<3x8x8xbf16, #tpu.memory_space<vmem>>, vector<1x8x8xbf16>
    %59 = vector.shape_cast %58 : vector<1x8x8xbf16> to vector<8x8xbf16>
    %cst_31 = arith.constant dense<0.000000e+00> : vector<32x8xf32>
    %60 = tpu.matmul %57, %59, %cst_31 {dimension_numbers = #tpu.dot_dimension_numbers<[1], [0], [0], [1], [0, 0, 1, 1], [], []>} : vector<32x8xbf16>, vector<8x8xbf16>, vector<32x8xf32> -> vector<32x8xf32>
    %61 = arith.addf %49, %60 : vector<32x8xf32>
    %62 = arith.truncf %37 : vector<32x8xf32> to vector<32x8xbf16>
    %c2_32 = arith.constant 2 : index
    %c0_33 = arith.constant 0 : index
    %c0_34 = arith.constant 0 : index
    %63 = vector.load %arg2[%c2_32, %c0_33, %c0_34] : memref<3x8x8xbf16, #tpu.memory_space<vmem>>, vector<1x8x8xbf16>
    %64 = vector.shape_cast %63 : vector<1x8x8xbf16> to vector<8x8xbf16>
    %cst_35 = arith.constant dense<0.000000e+00> : vector<32x8xf32>
    %65 = tpu.matmul %62, %64, %cst_35 {dimension_numbers = #tpu.dot_dimension_numbers<[1], [0], [0], [1], [0, 0, 1, 1], [], []>} : vector<32x8xbf16>, vector<8x8xbf16>, vector<32x8xf32> -> vector<32x8xf32>
    %66 = arith.addf %61, %65 : vector<32x8xf32>
    %67 = vector.broadcast %38 : vector<1x8xf32> to vector<32x8xf32>
    %68 = arith.addf %66, %67 : vector<32x8xf32>
    %cst_36 = arith.constant 0.000000e+00 : f32
    %69 = vector.broadcast %cst_36 : f32 to vector<32x8xf32>
    %70 = arith.maximumf %68, %69 : vector<32x8xf32>
    %71 = arith.truncf %1 : vector<32x4xf32> to vector<32x4xbf16>
    %c0_37 = arith.constant 0 : index
    %c0_38 = arith.constant 0 : index
    %72 = vector.load %arg4[%c0_37, %c0_38] : memref<4x8xbf16, #tpu.memory_space<vmem>>, vector<4x8xbf16>
    %cst_39 = arith.constant dense<0.000000e+00> : vector<32x8xf32>
    %73 = tpu.matmul %71, %72, %cst_39 {dimension_numbers = #tpu.dot_dimension_numbers<[1], [0], [0], [1], [0, 0, 1, 1], [], []>} : vector<32x4xbf16>, vector<4x8xbf16>, vector<32x8xf32> -> vector<32x8xf32>
    %74 = vector.extract_strided_slice %4 {offsets = [2, 0], sizes = [1, 8], strides = [1, 1]} : vector<3x8xf32> to vector<1x8xf32>
    %75 = vector.broadcast %74 : vector<1x8xf32> to vector<32x8xf32>
    %76 = arith.addf %73, %75 : vector<32x8xf32>
    %77 = arith.addf %70, %76 : vector<32x8xf32>
    %cst_40 = arith.constant 0.000000e+00 : f32
    %78 = vector.broadcast %cst_40 : f32 to vector<32x8xf32>
    %79 = arith.maximumf %77, %78 : vector<32x8xf32>
    %c0_41 = arith.constant 0 : index
    %c0_42 = arith.constant 0 : index
    %80 = vector.load %arg7[%c0_41, %c0_42] : memref<2x8xf32, #tpu.memory_space<vmem>>, vector<2x8xf32>
    %81 = vector.extract_strided_slice %80 {offsets = [0, 0], sizes = [1, 8], strides = [1, 1]} : vector<2x8xf32> to vector<1x8xf32>
    %c4_i32 = arith.constant 4 : i32
    %82 = vector.broadcast %c4_i32 : i32 to vector<32x1xi32>
    %83 = arith.cmpi sge, %3, %82 : vector<32x1xi32>
    %c4_i32_43 = arith.constant 4 : i32
    %84 = tpu.dynamic_rotate %79 by %c4_i32_43 dim 0 : vector<32x8xf32>, i32 -> vector<32x8xf32>
    %cst_44 = arith.constant 0.000000e+00 : f32
    %85 = vector.shape_cast %83 : vector<32x1xi1> to vector<32x1xi1>
    %86 = vector.broadcast %85 : vector<32x1xi1> to vector<32x8xi1>
    %87 = vector.broadcast %cst_44 : f32 to vector<32x8xf32>
    %88 = arith.select %86, %84, %87 : vector<32x8xi1>, vector<32x8xf32>
    %89 = arith.truncf %88 : vector<32x8xf32> to vector<32x8xbf16>
    %c0_45 = arith.constant 0 : index
    %c0_46 = arith.constant 0 : index
    %c0_47 = arith.constant 0 : index
    %90 = vector.load %arg5[%c0_45, %c0_46, %c0_47] : memref<3x8x8xbf16, #tpu.memory_space<vmem>>, vector<1x8x8xbf16>
    %91 = vector.shape_cast %90 : vector<1x8x8xbf16> to vector<8x8xbf16>
    %cst_48 = arith.constant dense<0.000000e+00> : vector<32x8xf32>
    %92 = tpu.matmul %89, %91, %cst_48 {dimension_numbers = #tpu.dot_dimension_numbers<[1], [0], [0], [1], [0, 0, 1, 1], [], []>} : vector<32x8xbf16>, vector<8x8xbf16>, vector<32x8xf32> -> vector<32x8xf32>
    %c2_i32_49 = arith.constant 2 : i32
    %93 = vector.broadcast %c2_i32_49 : i32 to vector<32x1xi32>
    %94 = arith.cmpi sge, %3, %93 : vector<32x1xi32>
    %c2_i32_50 = arith.constant 2 : i32
    %95 = tpu.dynamic_rotate %79 by %c2_i32_50 dim 0 : vector<32x8xf32>, i32 -> vector<32x8xf32>
    %cst_51 = arith.constant 0.000000e+00 : f32
    %96 = vector.shape_cast %94 : vector<32x1xi1> to vector<32x1xi1>
    %97 = vector.broadcast %96 : vector<32x1xi1> to vector<32x8xi1>
    %98 = vector.broadcast %cst_51 : f32 to vector<32x8xf32>
    %99 = arith.select %97, %95, %98 : vector<32x8xi1>, vector<32x8xf32>
    %100 = arith.truncf %99 : vector<32x8xf32> to vector<32x8xbf16>
    %c1_52 = arith.constant 1 : index
    %c0_53 = arith.constant 0 : index
    %c0_54 = arith.constant 0 : index
    %101 = vector.load %arg5[%c1_52, %c0_53, %c0_54] : memref<3x8x8xbf16, #tpu.memory_space<vmem>>, vector<1x8x8xbf16>
    %102 = vector.shape_cast %101 : vector<1x8x8xbf16> to vector<8x8xbf16>
    %cst_55 = arith.constant dense<0.000000e+00> : vector<32x8xf32>
    %103 = tpu.matmul %100, %102, %cst_55 {dimension_numbers = #tpu.dot_dimension_numbers<[1], [0], [0], [1], [0, 0, 1, 1], [], []>} : vector<32x8xbf16>, vector<8x8xbf16>, vector<32x8xf32> -> vector<32x8xf32>
    %104 = arith.addf %92, %103 : vector<32x8xf32>
    %105 = arith.truncf %79 : vector<32x8xf32> to vector<32x8xbf16>
    %c2_56 = arith.constant 2 : index
    %c0_57 = arith.constant 0 : index
    %c0_58 = arith.constant 0 : index
    %106 = vector.load %arg5[%c2_56, %c0_57, %c0_58] : memref<3x8x8xbf16, #tpu.memory_space<vmem>>, vector<1x8x8xbf16>
    %107 = vector.shape_cast %106 : vector<1x8x8xbf16> to vector<8x8xbf16>
    %cst_59 = arith.constant dense<0.000000e+00> : vector<32x8xf32>
    %108 = tpu.matmul %105, %107, %cst_59 {dimension_numbers = #tpu.dot_dimension_numbers<[1], [0], [0], [1], [0, 0, 1, 1], [], []>} : vector<32x8xbf16>, vector<8x8xbf16>, vector<32x8xf32> -> vector<32x8xf32>
    %109 = arith.addf %104, %108 : vector<32x8xf32>
    %110 = vector.broadcast %81 : vector<1x8xf32> to vector<32x8xf32>
    %111 = arith.addf %109, %110 : vector<32x8xf32>
    %cst_60 = arith.constant 0.000000e+00 : f32
    %112 = vector.broadcast %cst_60 : f32 to vector<32x8xf32>
    %113 = arith.maximumf %111, %112 : vector<32x8xf32>
    %114 = vector.extract_strided_slice %80 {offsets = [1, 0], sizes = [1, 8], strides = [1, 1]} : vector<2x8xf32> to vector<1x8xf32>
    %c4_i32_61 = arith.constant 4 : i32
    %115 = vector.broadcast %c4_i32_61 : i32 to vector<32x1xi32>
    %116 = arith.cmpi sge, %3, %115 : vector<32x1xi32>
    %c4_i32_62 = arith.constant 4 : i32
    %117 = tpu.dynamic_rotate %113 by %c4_i32_62 dim 0 : vector<32x8xf32>, i32 -> vector<32x8xf32>
    %cst_63 = arith.constant 0.000000e+00 : f32
    %118 = vector.shape_cast %116 : vector<32x1xi1> to vector<32x1xi1>
    %119 = vector.broadcast %118 : vector<32x1xi1> to vector<32x8xi1>
    %120 = vector.broadcast %cst_63 : f32 to vector<32x8xf32>
    %121 = arith.select %119, %117, %120 : vector<32x8xi1>, vector<32x8xf32>
    %122 = arith.truncf %121 : vector<32x8xf32> to vector<32x8xbf16>
    %c0_64 = arith.constant 0 : index
    %c0_65 = arith.constant 0 : index
    %c0_66 = arith.constant 0 : index
    %123 = vector.load %arg6[%c0_64, %c0_65, %c0_66] : memref<3x8x8xbf16, #tpu.memory_space<vmem>>, vector<1x8x8xbf16>
    %124 = vector.shape_cast %123 : vector<1x8x8xbf16> to vector<8x8xbf16>
    %cst_67 = arith.constant dense<0.000000e+00> : vector<32x8xf32>
    %125 = tpu.matmul %122, %124, %cst_67 {dimension_numbers = #tpu.dot_dimension_numbers<[1], [0], [0], [1], [0, 0, 1, 1], [], []>} : vector<32x8xbf16>, vector<8x8xbf16>, vector<32x8xf32> -> vector<32x8xf32>
    %c2_i32_68 = arith.constant 2 : i32
    %126 = vector.broadcast %c2_i32_68 : i32 to vector<32x1xi32>
    %127 = arith.cmpi sge, %3, %126 : vector<32x1xi32>
    %c2_i32_69 = arith.constant 2 : i32
    %128 = tpu.dynamic_rotate %113 by %c2_i32_69 dim 0 : vector<32x8xf32>, i32 -> vector<32x8xf32>
    %cst_70 = arith.constant 0.000000e+00 : f32
    %129 = vector.shape_cast %127 : vector<32x1xi1> to vector<32x1xi1>
    %130 = vector.broadcast %129 : vector<32x1xi1> to vector<32x8xi1>
    %131 = vector.broadcast %cst_70 : f32 to vector<32x8xf32>
    %132 = arith.select %130, %128, %131 : vector<32x8xi1>, vector<32x8xf32>
    %133 = arith.truncf %132 : vector<32x8xf32> to vector<32x8xbf16>
    %c1_71 = arith.constant 1 : index
    %c0_72 = arith.constant 0 : index
    %c0_73 = arith.constant 0 : index
    %134 = vector.load %arg6[%c1_71, %c0_72, %c0_73] : memref<3x8x8xbf16, #tpu.memory_space<vmem>>, vector<1x8x8xbf16>
    %135 = vector.shape_cast %134 : vector<1x8x8xbf16> to vector<8x8xbf16>
    %cst_74 = arith.constant dense<0.000000e+00> : vector<32x8xf32>
    %136 = tpu.matmul %133, %135, %cst_74 {dimension_numbers = #tpu.dot_dimension_numbers<[1], [0], [0], [1], [0, 0, 1, 1], [], []>} : vector<32x8xbf16>, vector<8x8xbf16>, vector<32x8xf32> -> vector<32x8xf32>
    %137 = arith.addf %125, %136 : vector<32x8xf32>
    %138 = arith.truncf %113 : vector<32x8xf32> to vector<32x8xbf16>
    %c2_75 = arith.constant 2 : index
    %c0_76 = arith.constant 0 : index
    %c0_77 = arith.constant 0 : index
    %139 = vector.load %arg6[%c2_75, %c0_76, %c0_77] : memref<3x8x8xbf16, #tpu.memory_space<vmem>>, vector<1x8x8xbf16>
    %140 = vector.shape_cast %139 : vector<1x8x8xbf16> to vector<8x8xbf16>
    %cst_78 = arith.constant dense<0.000000e+00> : vector<32x8xf32>
    %141 = tpu.matmul %138, %140, %cst_78 {dimension_numbers = #tpu.dot_dimension_numbers<[1], [0], [0], [1], [0, 0, 1, 1], [], []>} : vector<32x8xbf16>, vector<8x8xbf16>, vector<32x8xf32> -> vector<32x8xf32>
    %142 = arith.addf %137, %141 : vector<32x8xf32>
    %143 = vector.broadcast %114 : vector<1x8xf32> to vector<32x8xf32>
    %144 = arith.addf %142, %143 : vector<32x8xf32>
    %cst_79 = arith.constant 0.000000e+00 : f32
    %145 = vector.broadcast %cst_79 : f32 to vector<32x8xf32>
    %146 = arith.maximumf %144, %145 : vector<32x8xf32>
    %147 = arith.addf %146, %79 : vector<32x8xf32>
    %cst_80 = arith.constant 0.000000e+00 : f32
    %148 = vector.broadcast %cst_80 : f32 to vector<32x8xf32>
    %149 = arith.maximumf %147, %148 : vector<32x8xf32>
    %150 = arith.truncf %149 : vector<32x8xf32> to vector<32x8xbf16>
    %c0_81 = arith.constant 0 : index
    %c0_82 = arith.constant 0 : index
    %151 = vector.load %arg8[%c0_81, %c0_82] : memref<8x32xbf16, #tpu.memory_space<vmem>>, vector<8x32xbf16>
    %cst_83 = arith.constant dense<0.000000e+00> : vector<32x32xf32>
    %152 = tpu.matmul %150, %151, %cst_83 {dimension_numbers = #tpu.dot_dimension_numbers<[1], [0], [0], [1], [0, 0, 1, 1], [], []>} : vector<32x8xbf16>, vector<8x32xbf16>, vector<32x32xf32> -> vector<32x32xf32>
    %c0_84 = arith.constant 0 : index
    %c0_85 = arith.constant 0 : index
    %153 = vector.load %arg9[%c0_84, %c0_85] : memref<1x32xf32, #tpu.memory_space<vmem>>, vector<1x32xf32>
    %154 = vector.broadcast %153 : vector<1x32xf32> to vector<32x32xf32>
    %155 = arith.addf %152, %154 : vector<32x32xf32>
    %156 = vector.shape_cast %155 : vector<32x32xf32> to vector<2x16x32xf32>
    %c0_86 = arith.constant 0 : index
    %c0_87 = arith.constant 0 : index
    %157 = vector.load %arg10[%c0_86, %c0_87] : memref<16x32xf32, #tpu.memory_space<vmem>>, vector<16x32xf32>
    %158 = vector.shape_cast %157 : vector<16x32xf32> to vector<1x16x32xf32>
    %159 = vector.broadcast %158 : vector<1x16x32xf32> to vector<2x16x32xf32>
    %160 = arith.addf %156, %159 : vector<2x16x32xf32>
    %161 = vector.shape_cast %160 : vector<2x16x32xf32> to vector<32x32xf32>
    %c0_88 = arith.constant 0 : index
    %c0_89 = arith.constant 0 : index
    %c0_90 = arith.constant 0 : index
    %162 = vector.load %arg17[%c0_88, %c0_89, %c0_90] : memref<2x6x32xf32, #tpu.memory_space<vmem>>, vector<1x6x32xf32>
    %163 = vector.shape_cast %162 : vector<1x6x32xf32> to vector<6x32xf32>
    %164 = arith.truncf %161 : vector<32x32xf32> to vector<32x32xbf16>
    %c0_91 = arith.constant 0 : index
    %c0_92 = arith.constant 0 : index
    %c0_93 = arith.constant 0 : index
    %165 = vector.load %arg11[%c0_91, %c0_92, %c0_93] : memref<2x32x96xbf16, #tpu.memory_space<vmem>>, vector<1x32x96xbf16>
    %166 = vector.shape_cast %165 : vector<1x32x96xbf16> to vector<32x96xbf16>
    %cst_94 = arith.constant dense<0.000000e+00> : vector<32x96xf32>
    %167 = tpu.matmul %164, %166, %cst_94 {dimension_numbers = #tpu.dot_dimension_numbers<[1], [0], [0], [1], [0, 0, 1, 1], [], []>} : vector<32x32xbf16>, vector<32x96xbf16>, vector<32x96xf32> -> vector<32x96xf32>
    %c0_95 = arith.constant 0 : index
    %c0_96 = arith.constant 0 : index
    %c0_97 = arith.constant 0 : index
    %168 = vector.load %arg12[%c0_95, %c0_96, %c0_97] : memref<2x1x96xf32, #tpu.memory_space<vmem>>, vector<1x1x96xf32>
    %169 = vector.shape_cast %168 : vector<1x1x96xf32> to vector<1x96xf32>
    %170 = vector.broadcast %169 : vector<1x96xf32> to vector<32x96xf32>
    %171 = arith.addf %167, %170 : vector<32x96xf32>
    %172 = arith.truncf %171 : vector<32x96xf32> to vector<32x96xbf16>
    %173 = vector.shape_cast %172 : vector<32x96xbf16> to vector<2x16x96xbf16>
    %174 = vector.extract_strided_slice %173 {offsets = [0, 0, 0], sizes = [2, 16, 8], strides = [1, 1, 1]} : vector<2x16x96xbf16> to vector<2x16x8xbf16>
    %175 = vector.extract_strided_slice %173 {offsets = [0, 0, 32], sizes = [2, 16, 8], strides = [1, 1, 1]} : vector<2x16x96xbf16> to vector<2x16x8xbf16>
    %176 = vector.extract_strided_slice %173 {offsets = [0, 0, 64], sizes = [2, 16, 8], strides = [1, 1, 1]} : vector<2x16x96xbf16> to vector<2x16x8xbf16>
    "tpu.trace_start"() <{level = 10 : i32, message = "bqd,bkd->bqk"}> : () -> ()
    %cst_98 = arith.constant dense<0.000000e+00> : vector<2x16x16xf32>
    %177 = tpu.matmul %174, %175, %cst_98 {dimension_numbers = #tpu.dot_dimension_numbers<[2], [2], [1], [1], [0, 0, 0, 1, 1, 1], [0], [0]>} : vector<2x16x8xbf16>, vector<2x16x8xbf16>, vector<2x16x16xf32> -> vector<2x16x16xf32>
    "tpu.trace_stop"() : () -> ()
    %cst_99 = arith.constant 0.353553385 : f32
    %178 = vector.broadcast %cst_99 : f32 to vector<2x16x16xf32>
    %179 = arith.mulf %177, %178 : vector<2x16x16xf32>
    %cst_100 = arith.constant dense<0xFF800000> : vector<2x16xf32>
    %180 = vector.multi_reduction <maximumf>, %179, %cst_100 [2] : vector<2x16x16xf32> to vector<2x16xf32>
    %181 = vector.shape_cast %180 : vector<2x16xf32> to vector<2x16x1xf32>
    %182 = vector.broadcast %181 : vector<2x16x1xf32> to vector<2x16x16xf32>
    %183 = arith.subf %179, %182 : vector<2x16x16xf32>
    %184 = math.exp %183 : vector<2x16x16xf32>
    %cst_101 = arith.constant dense<0.000000e+00> : vector<2x16xf32>
    %185 = vector.multi_reduction <add>, %184, %cst_101 [2] : vector<2x16x16xf32> to vector<2x16xf32>
    %186 = vector.shape_cast %185 : vector<2x16xf32> to vector<2x16x1xf32>
    %187 = tpu.reciprocal %186 {approx = true} : vector<2x16x1xf32> -> vector<2x16x1xf32>
    %188 = vector.broadcast %187 : vector<2x16x1xf32> to vector<2x16x16xf32>
    %189 = arith.mulf %184, %188 : vector<2x16x16xf32>
    %190 = arith.truncf %189 : vector<2x16x16xf32> to vector<2x16x16xbf16>
    "tpu.trace_start"() <{level = 10 : i32, message = "bqk,bkd->bqd"}> : () -> ()
    %cst_102 = arith.constant dense<0.000000e+00> : vector<2x16x8xf32>
    %191 = tpu.matmul %190, %176, %cst_102 {dimension_numbers = #tpu.dot_dimension_numbers<[2], [1], [1], [2], [0, 0, 0, 1, 1, 2], [0], [0]>} : vector<2x16x16xbf16>, vector<2x16x8xbf16>, vector<2x16x8xf32> -> vector<2x16x8xf32>
    "tpu.trace_stop"() : () -> ()
    %192 = vector.extract_strided_slice %173 {offsets = [0, 0, 8], sizes = [2, 16, 8], strides = [1, 1, 1]} : vector<2x16x96xbf16> to vector<2x16x8xbf16>
    %193 = vector.extract_strided_slice %173 {offsets = [0, 0, 40], sizes = [2, 16, 8], strides = [1, 1, 1]} : vector<2x16x96xbf16> to vector<2x16x8xbf16>
    %194 = vector.extract_strided_slice %173 {offsets = [0, 0, 72], sizes = [2, 16, 8], strides = [1, 1, 1]} : vector<2x16x96xbf16> to vector<2x16x8xbf16>
    "tpu.trace_start"() <{level = 10 : i32, message = "bqd,bkd->bqk"}> : () -> ()
    %cst_103 = arith.constant dense<0.000000e+00> : vector<2x16x16xf32>
    %195 = tpu.matmul %192, %193, %cst_103 {dimension_numbers = #tpu.dot_dimension_numbers<[2], [2], [1], [1], [0, 0, 0, 1, 1, 1], [0], [0]>} : vector<2x16x8xbf16>, vector<2x16x8xbf16>, vector<2x16x16xf32> -> vector<2x16x16xf32>
    "tpu.trace_stop"() : () -> ()
    %cst_104 = arith.constant 0.353553385 : f32
    %196 = vector.broadcast %cst_104 : f32 to vector<2x16x16xf32>
    %197 = arith.mulf %195, %196 : vector<2x16x16xf32>
    %cst_105 = arith.constant dense<0xFF800000> : vector<2x16xf32>
    %198 = vector.multi_reduction <maximumf>, %197, %cst_105 [2] : vector<2x16x16xf32> to vector<2x16xf32>
    %199 = vector.shape_cast %198 : vector<2x16xf32> to vector<2x16x1xf32>
    %200 = vector.broadcast %199 : vector<2x16x1xf32> to vector<2x16x16xf32>
    %201 = arith.subf %197, %200 : vector<2x16x16xf32>
    %202 = math.exp %201 : vector<2x16x16xf32>
    %cst_106 = arith.constant dense<0.000000e+00> : vector<2x16xf32>
    %203 = vector.multi_reduction <add>, %202, %cst_106 [2] : vector<2x16x16xf32> to vector<2x16xf32>
    %204 = vector.shape_cast %203 : vector<2x16xf32> to vector<2x16x1xf32>
    %205 = tpu.reciprocal %204 {approx = true} : vector<2x16x1xf32> -> vector<2x16x1xf32>
    %206 = vector.broadcast %205 : vector<2x16x1xf32> to vector<2x16x16xf32>
    %207 = arith.mulf %202, %206 : vector<2x16x16xf32>
    %208 = arith.truncf %207 : vector<2x16x16xf32> to vector<2x16x16xbf16>
    "tpu.trace_start"() <{level = 10 : i32, message = "bqk,bkd->bqd"}> : () -> ()
    %cst_107 = arith.constant dense<0.000000e+00> : vector<2x16x8xf32>
    %209 = tpu.matmul %208, %194, %cst_107 {dimension_numbers = #tpu.dot_dimension_numbers<[2], [1], [1], [2], [0, 0, 0, 1, 1, 2], [0], [0]>} : vector<2x16x16xbf16>, vector<2x16x8xbf16>, vector<2x16x8xf32> -> vector<2x16x8xf32>
    "tpu.trace_stop"() : () -> ()
    %210 = vector.extract_strided_slice %173 {offsets = [0, 0, 16], sizes = [2, 16, 8], strides = [1, 1, 1]} : vector<2x16x96xbf16> to vector<2x16x8xbf16>
    %211 = vector.extract_strided_slice %173 {offsets = [0, 0, 48], sizes = [2, 16, 8], strides = [1, 1, 1]} : vector<2x16x96xbf16> to vector<2x16x8xbf16>
    %212 = vector.extract_strided_slice %173 {offsets = [0, 0, 80], sizes = [2, 16, 8], strides = [1, 1, 1]} : vector<2x16x96xbf16> to vector<2x16x8xbf16>
    "tpu.trace_start"() <{level = 10 : i32, message = "bqd,bkd->bqk"}> : () -> ()
    %cst_108 = arith.constant dense<0.000000e+00> : vector<2x16x16xf32>
    %213 = tpu.matmul %210, %211, %cst_108 {dimension_numbers = #tpu.dot_dimension_numbers<[2], [2], [1], [1], [0, 0, 0, 1, 1, 1], [0], [0]>} : vector<2x16x8xbf16>, vector<2x16x8xbf16>, vector<2x16x16xf32> -> vector<2x16x16xf32>
    "tpu.trace_stop"() : () -> ()
    %cst_109 = arith.constant 0.353553385 : f32
    %214 = vector.broadcast %cst_109 : f32 to vector<2x16x16xf32>
    %215 = arith.mulf %213, %214 : vector<2x16x16xf32>
    %cst_110 = arith.constant dense<0xFF800000> : vector<2x16xf32>
    %216 = vector.multi_reduction <maximumf>, %215, %cst_110 [2] : vector<2x16x16xf32> to vector<2x16xf32>
    %217 = vector.shape_cast %216 : vector<2x16xf32> to vector<2x16x1xf32>
    %218 = vector.broadcast %217 : vector<2x16x1xf32> to vector<2x16x16xf32>
    %219 = arith.subf %215, %218 : vector<2x16x16xf32>
    %220 = math.exp %219 : vector<2x16x16xf32>
    %cst_111 = arith.constant dense<0.000000e+00> : vector<2x16xf32>
    %221 = vector.multi_reduction <add>, %220, %cst_111 [2] : vector<2x16x16xf32> to vector<2x16xf32>
    %222 = vector.shape_cast %221 : vector<2x16xf32> to vector<2x16x1xf32>
    %223 = tpu.reciprocal %222 {approx = true} : vector<2x16x1xf32> -> vector<2x16x1xf32>
    %224 = vector.broadcast %223 : vector<2x16x1xf32> to vector<2x16x16xf32>
    %225 = arith.mulf %220, %224 : vector<2x16x16xf32>
    %226 = arith.truncf %225 : vector<2x16x16xf32> to vector<2x16x16xbf16>
    "tpu.trace_start"() <{level = 10 : i32, message = "bqk,bkd->bqd"}> : () -> ()
    %cst_112 = arith.constant dense<0.000000e+00> : vector<2x16x8xf32>
    %227 = tpu.matmul %226, %212, %cst_112 {dimension_numbers = #tpu.dot_dimension_numbers<[2], [1], [1], [2], [0, 0, 0, 1, 1, 2], [0], [0]>} : vector<2x16x16xbf16>, vector<2x16x8xbf16>, vector<2x16x8xf32> -> vector<2x16x8xf32>
    "tpu.trace_stop"() : () -> ()
    %228 = vector.extract_strided_slice %173 {offsets = [0, 0, 24], sizes = [2, 16, 8], strides = [1, 1, 1]} : vector<2x16x96xbf16> to vector<2x16x8xbf16>
    %229 = vector.extract_strided_slice %173 {offsets = [0, 0, 56], sizes = [2, 16, 8], strides = [1, 1, 1]} : vector<2x16x96xbf16> to vector<2x16x8xbf16>
    %230 = vector.extract_strided_slice %173 {offsets = [0, 0, 88], sizes = [2, 16, 8], strides = [1, 1, 1]} : vector<2x16x96xbf16> to vector<2x16x8xbf16>
    "tpu.trace_start"() <{level = 10 : i32, message = "bqd,bkd->bqk"}> : () -> ()
    %cst_113 = arith.constant dense<0.000000e+00> : vector<2x16x16xf32>
    %231 = tpu.matmul %228, %229, %cst_113 {dimension_numbers = #tpu.dot_dimension_numbers<[2], [2], [1], [1], [0, 0, 0, 1, 1, 1], [0], [0]>} : vector<2x16x8xbf16>, vector<2x16x8xbf16>, vector<2x16x16xf32> -> vector<2x16x16xf32>
    "tpu.trace_stop"() : () -> ()
    %cst_114 = arith.constant 0.353553385 : f32
    %232 = vector.broadcast %cst_114 : f32 to vector<2x16x16xf32>
    %233 = arith.mulf %231, %232 : vector<2x16x16xf32>
    %cst_115 = arith.constant dense<0xFF800000> : vector<2x16xf32>
    %234 = vector.multi_reduction <maximumf>, %233, %cst_115 [2] : vector<2x16x16xf32> to vector<2x16xf32>
    %235 = vector.shape_cast %234 : vector<2x16xf32> to vector<2x16x1xf32>
    %236 = vector.broadcast %235 : vector<2x16x1xf32> to vector<2x16x16xf32>
    %237 = arith.subf %233, %236 : vector<2x16x16xf32>
    %238 = math.exp %237 : vector<2x16x16xf32>
    %cst_116 = arith.constant dense<0.000000e+00> : vector<2x16xf32>
    %239 = vector.multi_reduction <add>, %238, %cst_116 [2] : vector<2x16x16xf32> to vector<2x16xf32>
    %240 = vector.shape_cast %239 : vector<2x16xf32> to vector<2x16x1xf32>
    %241 = tpu.reciprocal %240 {approx = true} : vector<2x16x1xf32> -> vector<2x16x1xf32>
    %242 = vector.broadcast %241 : vector<2x16x1xf32> to vector<2x16x16xf32>
    %243 = arith.mulf %238, %242 : vector<2x16x16xf32>
    %244 = arith.truncf %243 : vector<2x16x16xf32> to vector<2x16x16xbf16>
    "tpu.trace_start"() <{level = 10 : i32, message = "bqk,bkd->bqd"}> : () -> ()
    %cst_117 = arith.constant dense<0.000000e+00> : vector<2x16x8xf32>
    %245 = tpu.matmul %244, %230, %cst_117 {dimension_numbers = #tpu.dot_dimension_numbers<[2], [1], [1], [2], [0, 0, 0, 1, 1, 2], [0], [0]>} : vector<2x16x16xbf16>, vector<2x16x8xbf16>, vector<2x16x8xf32> -> vector<2x16x8xf32>
    "tpu.trace_stop"() : () -> ()
    %246 = tpu.concatenate %191, %209, %227, %245 in 2 : vector<2x16x8xf32>, vector<2x16x8xf32>, vector<2x16x8xf32>, vector<2x16x8xf32> -> vector<2x16x32xf32>
    %247 = vector.shape_cast %246 : vector<2x16x32xf32> to vector<32x32xf32>
    %248 = arith.truncf %247 : vector<32x32xf32> to vector<32x32xbf16>
    %c0_118 = arith.constant 0 : index
    %c0_119 = arith.constant 0 : index
    %c0_120 = arith.constant 0 : index
    %249 = vector.load %arg13[%c0_118, %c0_119, %c0_120] : memref<2x32x32xbf16, #tpu.memory_space<vmem>>, vector<1x32x32xbf16>
    %250 = vector.shape_cast %249 : vector<1x32x32xbf16> to vector<32x32xbf16>
    %cst_121 = arith.constant dense<0.000000e+00> : vector<32x32xf32>
    %251 = tpu.matmul %248, %250, %cst_121 {dimension_numbers = #tpu.dot_dimension_numbers<[1], [0], [0], [1], [0, 0, 1, 1], [], []>} : vector<32x32xbf16>, vector<32x32xbf16>, vector<32x32xf32> -> vector<32x32xf32>
    %252 = vector.extract_strided_slice %163 {offsets = [0, 0], sizes = [1, 32], strides = [1, 1]} : vector<6x32xf32> to vector<1x32xf32>
    %253 = vector.broadcast %252 : vector<1x32xf32> to vector<32x32xf32>
    %254 = arith.addf %251, %253 : vector<32x32xf32>
    %255 = arith.addf %161, %254 : vector<32x32xf32>
    %256 = vector.extract_strided_slice %163 {offsets = [2, 0], sizes = [1, 32], strides = [1, 1]} : vector<6x32xf32> to vector<1x32xf32>
    %257 = vector.extract_strided_slice %163 {offsets = [3, 0], sizes = [1, 32], strides = [1, 1]} : vector<6x32xf32> to vector<1x32xf32>
    %cst_122 = arith.constant dense<0.000000e+00> : vector<32xf32>
    %258 = vector.multi_reduction <add>, %255, %cst_122 [1] : vector<32x32xf32> to vector<32xf32>
    %259 = vector.shape_cast %258 : vector<32xf32> to vector<32x1xf32>
    %cst_123 = arith.constant 3.200000e+01 : f32
    %260 = vector.broadcast %cst_123 : f32 to vector<32x1xf32>
    %261 = arith.divf %259, %260 : vector<32x1xf32>
    %262 = vector.broadcast %261 : vector<32x1xf32> to vector<32x32xf32>
    %263 = arith.subf %255, %262 : vector<32x32xf32>
    %264 = arith.mulf %263, %263 : vector<32x32xf32>
    %cst_124 = arith.constant dense<0.000000e+00> : vector<32xf32>
    %265 = vector.multi_reduction <add>, %264, %cst_124 [1] : vector<32x32xf32> to vector<32xf32>
    %266 = vector.shape_cast %265 : vector<32xf32> to vector<32x1xf32>
    %cst_125 = arith.constant 3.200000e+01 : f32
    %267 = vector.broadcast %cst_125 : f32 to vector<32x1xf32>
    %268 = arith.divf %266, %267 : vector<32x1xf32>
    %cst_126 = arith.constant 9.99999974E-6 : f32
    %269 = vector.broadcast %cst_126 : f32 to vector<32x1xf32>
    %270 = arith.addf %268, %269 : vector<32x1xf32>
    %271 = math.rsqrt %270 : vector<32x1xf32>
    %272 = vector.broadcast %271 : vector<32x1xf32> to vector<32x32xf32>
    %273 = arith.mulf %263, %272 : vector<32x32xf32>
    %274 = vector.broadcast %256 : vector<1x32xf32> to vector<32x32xf32>
    %275 = arith.mulf %273, %274 : vector<32x32xf32>
    %276 = vector.broadcast %257 : vector<1x32xf32> to vector<32x32xf32>
    %277 = arith.addf %275, %276 : vector<32x32xf32>
    %278 = arith.truncf %277 : vector<32x32xf32> to vector<32x32xbf16>
    %c0_127 = arith.constant 0 : index
    %c0_128 = arith.constant 0 : index
    %c0_129 = arith.constant 0 : index
    %279 = vector.load %arg14[%c0_127, %c0_128, %c0_129] : memref<2x32x64xbf16, #tpu.memory_space<vmem>>, vector<1x32x64xbf16>
    %280 = vector.shape_cast %279 : vector<1x32x64xbf16> to vector<32x64xbf16>
    %cst_130 = arith.constant dense<0.000000e+00> : vector<32x64xf32>
    %281 = tpu.matmul %278, %280, %cst_130 {dimension_numbers = #tpu.dot_dimension_numbers<[1], [0], [0], [1], [0, 0, 1, 1], [], []>} : vector<32x32xbf16>, vector<32x64xbf16>, vector<32x64xf32> -> vector<32x64xf32>
    %c0_131 = arith.constant 0 : index
    %c0_132 = arith.constant 0 : index
    %c0_133 = arith.constant 0 : index
    %282 = vector.load %arg15[%c0_131, %c0_132, %c0_133] : memref<2x1x64xf32, #tpu.memory_space<vmem>>, vector<1x1x64xf32>
    %283 = vector.shape_cast %282 : vector<1x1x64xf32> to vector<1x64xf32>
    %284 = vector.broadcast %283 : vector<1x64xf32> to vector<32x64xf32>
    %285 = arith.addf %281, %284 : vector<32x64xf32>
    %cst_134 = arith.constant 0.000000e+00 : f32
    %286 = vector.broadcast %cst_134 : f32 to vector<32x64xf32>
    %287 = arith.maximumf %285, %286 : vector<32x64xf32>
    %288 = arith.truncf %287 : vector<32x64xf32> to vector<32x64xbf16>
    %c0_135 = arith.constant 0 : index
    %c0_136 = arith.constant 0 : index
    %c0_137 = arith.constant 0 : index
    %289 = vector.load %arg16[%c0_135, %c0_136, %c0_137] : memref<2x64x32xbf16, #tpu.memory_space<vmem>>, vector<1x64x32xbf16>
    %290 = vector.shape_cast %289 : vector<1x64x32xbf16> to vector<64x32xbf16>
    %cst_138 = arith.constant dense<0.000000e+00> : vector<32x32xf32>
    %291 = tpu.matmul %288, %290, %cst_138 {dimension_numbers = #tpu.dot_dimension_numbers<[1], [0], [0], [1], [0, 0, 1, 1], [], []>} : vector<32x64xbf16>, vector<64x32xbf16>, vector<32x32xf32> -> vector<32x32xf32>
    %292 = vector.extract_strided_slice %163 {offsets = [1, 0], sizes = [1, 32], strides = [1, 1]} : vector<6x32xf32> to vector<1x32xf32>
    %293 = vector.broadcast %292 : vector<1x32xf32> to vector<32x32xf32>
    %294 = arith.addf %291, %293 : vector<32x32xf32>
    %295 = arith.addf %277, %294 : vector<32x32xf32>
    %296 = vector.extract_strided_slice %163 {offsets = [4, 0], sizes = [1, 32], strides = [1, 1]} : vector<6x32xf32> to vector<1x32xf32>
    %297 = vector.extract_strided_slice %163 {offsets = [5, 0], sizes = [1, 32], strides = [1, 1]} : vector<6x32xf32> to vector<1x32xf32>
    %cst_139 = arith.constant dense<0.000000e+00> : vector<32xf32>
    %298 = vector.multi_reduction <add>, %295, %cst_139 [1] : vector<32x32xf32> to vector<32xf32>
    %299 = vector.shape_cast %298 : vector<32xf32> to vector<32x1xf32>
    %cst_140 = arith.constant 3.200000e+01 : f32
    %300 = vector.broadcast %cst_140 : f32 to vector<32x1xf32>
    %301 = arith.divf %299, %300 : vector<32x1xf32>
    %302 = vector.broadcast %301 : vector<32x1xf32> to vector<32x32xf32>
    %303 = arith.subf %295, %302 : vector<32x32xf32>
    %304 = arith.mulf %303, %303 : vector<32x32xf32>
    %cst_141 = arith.constant dense<0.000000e+00> : vector<32xf32>
    %305 = vector.multi_reduction <add>, %304, %cst_141 [1] : vector<32x32xf32> to vector<32xf32>
    %306 = vector.shape_cast %305 : vector<32xf32> to vector<32x1xf32>
    %cst_142 = arith.constant 3.200000e+01 : f32
    %307 = vector.broadcast %cst_142 : f32 to vector<32x1xf32>
    %308 = arith.divf %306, %307 : vector<32x1xf32>
    %cst_143 = arith.constant 9.99999974E-6 : f32
    %309 = vector.broadcast %cst_143 : f32 to vector<32x1xf32>
    %310 = arith.addf %308, %309 : vector<32x1xf32>
    %311 = math.rsqrt %310 : vector<32x1xf32>
    %312 = vector.broadcast %311 : vector<32x1xf32> to vector<32x32xf32>
    %313 = arith.mulf %303, %312 : vector<32x32xf32>
    %314 = vector.broadcast %296 : vector<1x32xf32> to vector<32x32xf32>
    %315 = arith.mulf %313, %314 : vector<32x32xf32>
    %316 = vector.broadcast %297 : vector<1x32xf32> to vector<32x32xf32>
    %317 = arith.addf %315, %316 : vector<32x32xf32>
    %c1_144 = arith.constant 1 : index
    %c0_145 = arith.constant 0 : index
    %c0_146 = arith.constant 0 : index
    %318 = vector.load %arg17[%c1_144, %c0_145, %c0_146] : memref<2x6x32xf32, #tpu.memory_space<vmem>>, vector<1x6x32xf32>
    %319 = vector.shape_cast %318 : vector<1x6x32xf32> to vector<6x32xf32>
    %320 = arith.truncf %317 : vector<32x32xf32> to vector<32x32xbf16>
    %c1_147 = arith.constant 1 : index
    %c0_148 = arith.constant 0 : index
    %c0_149 = arith.constant 0 : index
    %321 = vector.load %arg11[%c1_147, %c0_148, %c0_149] : memref<2x32x96xbf16, #tpu.memory_space<vmem>>, vector<1x32x96xbf16>
    %322 = vector.shape_cast %321 : vector<1x32x96xbf16> to vector<32x96xbf16>
    %cst_150 = arith.constant dense<0.000000e+00> : vector<32x96xf32>
    %323 = tpu.matmul %320, %322, %cst_150 {dimension_numbers = #tpu.dot_dimension_numbers<[1], [0], [0], [1], [0, 0, 1, 1], [], []>} : vector<32x32xbf16>, vector<32x96xbf16>, vector<32x96xf32> -> vector<32x96xf32>
    %c1_151 = arith.constant 1 : index
    %c0_152 = arith.constant 0 : index
    %c0_153 = arith.constant 0 : index
    %324 = vector.load %arg12[%c1_151, %c0_152, %c0_153] : memref<2x1x96xf32, #tpu.memory_space<vmem>>, vector<1x1x96xf32>
    %325 = vector.shape_cast %324 : vector<1x1x96xf32> to vector<1x96xf32>
    %326 = vector.broadcast %325 : vector<1x96xf32> to vector<32x96xf32>
    %327 = arith.addf %323, %326 : vector<32x96xf32>
    %328 = arith.truncf %327 : vector<32x96xf32> to vector<32x96xbf16>
    %329 = vector.shape_cast %328 : vector<32x96xbf16> to vector<2x16x96xbf16>
    %330 = vector.extract_strided_slice %329 {offsets = [0, 0, 0], sizes = [2, 16, 8], strides = [1, 1, 1]} : vector<2x16x96xbf16> to vector<2x16x8xbf16>
    %331 = vector.extract_strided_slice %329 {offsets = [0, 0, 32], sizes = [2, 16, 8], strides = [1, 1, 1]} : vector<2x16x96xbf16> to vector<2x16x8xbf16>
    %332 = vector.extract_strided_slice %329 {offsets = [0, 0, 64], sizes = [2, 16, 8], strides = [1, 1, 1]} : vector<2x16x96xbf16> to vector<2x16x8xbf16>
    "tpu.trace_start"() <{level = 10 : i32, message = "bqd,bkd->bqk"}> : () -> ()
    %cst_154 = arith.constant dense<0.000000e+00> : vector<2x16x16xf32>
    %333 = tpu.matmul %330, %331, %cst_154 {dimension_numbers = #tpu.dot_dimension_numbers<[2], [2], [1], [1], [0, 0, 0, 1, 1, 1], [0], [0]>} : vector<2x16x8xbf16>, vector<2x16x8xbf16>, vector<2x16x16xf32> -> vector<2x16x16xf32>
    "tpu.trace_stop"() : () -> ()
    %cst_155 = arith.constant 0.353553385 : f32
    %334 = vector.broadcast %cst_155 : f32 to vector<2x16x16xf32>
    %335 = arith.mulf %333, %334 : vector<2x16x16xf32>
    %cst_156 = arith.constant dense<0xFF800000> : vector<2x16xf32>
    %336 = vector.multi_reduction <maximumf>, %335, %cst_156 [2] : vector<2x16x16xf32> to vector<2x16xf32>
    %337 = vector.shape_cast %336 : vector<2x16xf32> to vector<2x16x1xf32>
    %338 = vector.broadcast %337 : vector<2x16x1xf32> to vector<2x16x16xf32>
    %339 = arith.subf %335, %338 : vector<2x16x16xf32>
    %340 = math.exp %339 : vector<2x16x16xf32>
    %cst_157 = arith.constant dense<0.000000e+00> : vector<2x16xf32>
    %341 = vector.multi_reduction <add>, %340, %cst_157 [2] : vector<2x16x16xf32> to vector<2x16xf32>
    %342 = vector.shape_cast %341 : vector<2x16xf32> to vector<2x16x1xf32>
    %343 = tpu.reciprocal %342 {approx = true} : vector<2x16x1xf32> -> vector<2x16x1xf32>
    %344 = vector.broadcast %343 : vector<2x16x1xf32> to vector<2x16x16xf32>
    %345 = arith.mulf %340, %344 : vector<2x16x16xf32>
    %346 = arith.truncf %345 : vector<2x16x16xf32> to vector<2x16x16xbf16>
    "tpu.trace_start"() <{level = 10 : i32, message = "bqk,bkd->bqd"}> : () -> ()
    %cst_158 = arith.constant dense<0.000000e+00> : vector<2x16x8xf32>
    %347 = tpu.matmul %346, %332, %cst_158 {dimension_numbers = #tpu.dot_dimension_numbers<[2], [1], [1], [2], [0, 0, 0, 1, 1, 2], [0], [0]>} : vector<2x16x16xbf16>, vector<2x16x8xbf16>, vector<2x16x8xf32> -> vector<2x16x8xf32>
    "tpu.trace_stop"() : () -> ()
    %348 = vector.extract_strided_slice %329 {offsets = [0, 0, 8], sizes = [2, 16, 8], strides = [1, 1, 1]} : vector<2x16x96xbf16> to vector<2x16x8xbf16>
    %349 = vector.extract_strided_slice %329 {offsets = [0, 0, 40], sizes = [2, 16, 8], strides = [1, 1, 1]} : vector<2x16x96xbf16> to vector<2x16x8xbf16>
    %350 = vector.extract_strided_slice %329 {offsets = [0, 0, 72], sizes = [2, 16, 8], strides = [1, 1, 1]} : vector<2x16x96xbf16> to vector<2x16x8xbf16>
    "tpu.trace_start"() <{level = 10 : i32, message = "bqd,bkd->bqk"}> : () -> ()
    %cst_159 = arith.constant dense<0.000000e+00> : vector<2x16x16xf32>
    %351 = tpu.matmul %348, %349, %cst_159 {dimension_numbers = #tpu.dot_dimension_numbers<[2], [2], [1], [1], [0, 0, 0, 1, 1, 1], [0], [0]>} : vector<2x16x8xbf16>, vector<2x16x8xbf16>, vector<2x16x16xf32> -> vector<2x16x16xf32>
    "tpu.trace_stop"() : () -> ()
    %cst_160 = arith.constant 0.353553385 : f32
    %352 = vector.broadcast %cst_160 : f32 to vector<2x16x16xf32>
    %353 = arith.mulf %351, %352 : vector<2x16x16xf32>
    %cst_161 = arith.constant dense<0xFF800000> : vector<2x16xf32>
    %354 = vector.multi_reduction <maximumf>, %353, %cst_161 [2] : vector<2x16x16xf32> to vector<2x16xf32>
    %355 = vector.shape_cast %354 : vector<2x16xf32> to vector<2x16x1xf32>
    %356 = vector.broadcast %355 : vector<2x16x1xf32> to vector<2x16x16xf32>
    %357 = arith.subf %353, %356 : vector<2x16x16xf32>
    %358 = math.exp %357 : vector<2x16x16xf32>
    %cst_162 = arith.constant dense<0.000000e+00> : vector<2x16xf32>
    %359 = vector.multi_reduction <add>, %358, %cst_162 [2] : vector<2x16x16xf32> to vector<2x16xf32>
    %360 = vector.shape_cast %359 : vector<2x16xf32> to vector<2x16x1xf32>
    %361 = tpu.reciprocal %360 {approx = true} : vector<2x16x1xf32> -> vector<2x16x1xf32>
    %362 = vector.broadcast %361 : vector<2x16x1xf32> to vector<2x16x16xf32>
    %363 = arith.mulf %358, %362 : vector<2x16x16xf32>
    %364 = arith.truncf %363 : vector<2x16x16xf32> to vector<2x16x16xbf16>
    "tpu.trace_start"() <{level = 10 : i32, message = "bqk,bkd->bqd"}> : () -> ()
    %cst_163 = arith.constant dense<0.000000e+00> : vector<2x16x8xf32>
    %365 = tpu.matmul %364, %350, %cst_163 {dimension_numbers = #tpu.dot_dimension_numbers<[2], [1], [1], [2], [0, 0, 0, 1, 1, 2], [0], [0]>} : vector<2x16x16xbf16>, vector<2x16x8xbf16>, vector<2x16x8xf32> -> vector<2x16x8xf32>
    "tpu.trace_stop"() : () -> ()
    %366 = vector.extract_strided_slice %329 {offsets = [0, 0, 16], sizes = [2, 16, 8], strides = [1, 1, 1]} : vector<2x16x96xbf16> to vector<2x16x8xbf16>
    %367 = vector.extract_strided_slice %329 {offsets = [0, 0, 48], sizes = [2, 16, 8], strides = [1, 1, 1]} : vector<2x16x96xbf16> to vector<2x16x8xbf16>
    %368 = vector.extract_strided_slice %329 {offsets = [0, 0, 80], sizes = [2, 16, 8], strides = [1, 1, 1]} : vector<2x16x96xbf16> to vector<2x16x8xbf16>
    "tpu.trace_start"() <{level = 10 : i32, message = "bqd,bkd->bqk"}> : () -> ()
    %cst_164 = arith.constant dense<0.000000e+00> : vector<2x16x16xf32>
    %369 = tpu.matmul %366, %367, %cst_164 {dimension_numbers = #tpu.dot_dimension_numbers<[2], [2], [1], [1], [0, 0, 0, 1, 1, 1], [0], [0]>} : vector<2x16x8xbf16>, vector<2x16x8xbf16>, vector<2x16x16xf32> -> vector<2x16x16xf32>
    "tpu.trace_stop"() : () -> ()
    %cst_165 = arith.constant 0.353553385 : f32
    %370 = vector.broadcast %cst_165 : f32 to vector<2x16x16xf32>
    %371 = arith.mulf %369, %370 : vector<2x16x16xf32>
    %cst_166 = arith.constant dense<0xFF800000> : vector<2x16xf32>
    %372 = vector.multi_reduction <maximumf>, %371, %cst_166 [2] : vector<2x16x16xf32> to vector<2x16xf32>
    %373 = vector.shape_cast %372 : vector<2x16xf32> to vector<2x16x1xf32>
    %374 = vector.broadcast %373 : vector<2x16x1xf32> to vector<2x16x16xf32>
    %375 = arith.subf %371, %374 : vector<2x16x16xf32>
    %376 = math.exp %375 : vector<2x16x16xf32>
    %cst_167 = arith.constant dense<0.000000e+00> : vector<2x16xf32>
    %377 = vector.multi_reduction <add>, %376, %cst_167 [2] : vector<2x16x16xf32> to vector<2x16xf32>
    %378 = vector.shape_cast %377 : vector<2x16xf32> to vector<2x16x1xf32>
    %379 = tpu.reciprocal %378 {approx = true} : vector<2x16x1xf32> -> vector<2x16x1xf32>
    %380 = vector.broadcast %379 : vector<2x16x1xf32> to vector<2x16x16xf32>
    %381 = arith.mulf %376, %380 : vector<2x16x16xf32>
    %382 = arith.truncf %381 : vector<2x16x16xf32> to vector<2x16x16xbf16>
    "tpu.trace_start"() <{level = 10 : i32, message = "bqk,bkd->bqd"}> : () -> ()
    %cst_168 = arith.constant dense<0.000000e+00> : vector<2x16x8xf32>
    %383 = tpu.matmul %382, %368, %cst_168 {dimension_numbers = #tpu.dot_dimension_numbers<[2], [1], [1], [2], [0, 0, 0, 1, 1, 2], [0], [0]>} : vector<2x16x16xbf16>, vector<2x16x8xbf16>, vector<2x16x8xf32> -> vector<2x16x8xf32>
    "tpu.trace_stop"() : () -> ()
    %384 = vector.extract_strided_slice %329 {offsets = [0, 0, 24], sizes = [2, 16, 8], strides = [1, 1, 1]} : vector<2x16x96xbf16> to vector<2x16x8xbf16>
    %385 = vector.extract_strided_slice %329 {offsets = [0, 0, 56], sizes = [2, 16, 8], strides = [1, 1, 1]} : vector<2x16x96xbf16> to vector<2x16x8xbf16>
    %386 = vector.extract_strided_slice %329 {offsets = [0, 0, 88], sizes = [2, 16, 8], strides = [1, 1, 1]} : vector<2x16x96xbf16> to vector<2x16x8xbf16>
    "tpu.trace_start"() <{level = 10 : i32, message = "bqd,bkd->bqk"}> : () -> ()
    %cst_169 = arith.constant dense<0.000000e+00> : vector<2x16x16xf32>
    %387 = tpu.matmul %384, %385, %cst_169 {dimension_numbers = #tpu.dot_dimension_numbers<[2], [2], [1], [1], [0, 0, 0, 1, 1, 1], [0], [0]>} : vector<2x16x8xbf16>, vector<2x16x8xbf16>, vector<2x16x16xf32> -> vector<2x16x16xf32>
    "tpu.trace_stop"() : () -> ()
    %cst_170 = arith.constant 0.353553385 : f32
    %388 = vector.broadcast %cst_170 : f32 to vector<2x16x16xf32>
    %389 = arith.mulf %387, %388 : vector<2x16x16xf32>
    %cst_171 = arith.constant dense<0xFF800000> : vector<2x16xf32>
    %390 = vector.multi_reduction <maximumf>, %389, %cst_171 [2] : vector<2x16x16xf32> to vector<2x16xf32>
    %391 = vector.shape_cast %390 : vector<2x16xf32> to vector<2x16x1xf32>
    %392 = vector.broadcast %391 : vector<2x16x1xf32> to vector<2x16x16xf32>
    %393 = arith.subf %389, %392 : vector<2x16x16xf32>
    %394 = math.exp %393 : vector<2x16x16xf32>
    %cst_172 = arith.constant dense<0.000000e+00> : vector<2x16xf32>
    %395 = vector.multi_reduction <add>, %394, %cst_172 [2] : vector<2x16x16xf32> to vector<2x16xf32>
    %396 = vector.shape_cast %395 : vector<2x16xf32> to vector<2x16x1xf32>
    %397 = tpu.reciprocal %396 {approx = true} : vector<2x16x1xf32> -> vector<2x16x1xf32>
    %398 = vector.broadcast %397 : vector<2x16x1xf32> to vector<2x16x16xf32>
    %399 = arith.mulf %394, %398 : vector<2x16x16xf32>
    %400 = arith.truncf %399 : vector<2x16x16xf32> to vector<2x16x16xbf16>
    "tpu.trace_start"() <{level = 10 : i32, message = "bqk,bkd->bqd"}> : () -> ()
    %cst_173 = arith.constant dense<0.000000e+00> : vector<2x16x8xf32>
    %401 = tpu.matmul %400, %386, %cst_173 {dimension_numbers = #tpu.dot_dimension_numbers<[2], [1], [1], [2], [0, 0, 0, 1, 1, 2], [0], [0]>} : vector<2x16x16xbf16>, vector<2x16x8xbf16>, vector<2x16x8xf32> -> vector<2x16x8xf32>
    "tpu.trace_stop"() : () -> ()
    %402 = tpu.concatenate %347, %365, %383, %401 in 2 : vector<2x16x8xf32>, vector<2x16x8xf32>, vector<2x16x8xf32>, vector<2x16x8xf32> -> vector<2x16x32xf32>
    %403 = vector.shape_cast %402 : vector<2x16x32xf32> to vector<32x32xf32>
    %404 = arith.truncf %403 : vector<32x32xf32> to vector<32x32xbf16>
    %c1_174 = arith.constant 1 : index
    %c0_175 = arith.constant 0 : index
    %c0_176 = arith.constant 0 : index
    %405 = vector.load %arg13[%c1_174, %c0_175, %c0_176] : memref<2x32x32xbf16, #tpu.memory_space<vmem>>, vector<1x32x32xbf16>
    %406 = vector.shape_cast %405 : vector<1x32x32xbf16> to vector<32x32xbf16>
    %cst_177 = arith.constant dense<0.000000e+00> : vector<32x32xf32>
    %407 = tpu.matmul %404, %406, %cst_177 {dimension_numbers = #tpu.dot_dimension_numbers<[1], [0], [0], [1], [0, 0, 1, 1], [], []>} : vector<32x32xbf16>, vector<32x32xbf16>, vector<32x32xf32> -> vector<32x32xf32>
    %408 = vector.extract_strided_slice %319 {offsets = [0, 0], sizes = [1, 32], strides = [1, 1]} : vector<6x32xf32> to vector<1x32xf32>
    %409 = vector.broadcast %408 : vector<1x32xf32> to vector<32x32xf32>
    %410 = arith.addf %407, %409 : vector<32x32xf32>
    %411 = arith.addf %317, %410 : vector<32x32xf32>
    %412 = vector.extract_strided_slice %319 {offsets = [2, 0], sizes = [1, 32], strides = [1, 1]} : vector<6x32xf32> to vector<1x32xf32>
    %413 = vector.extract_strided_slice %319 {offsets = [3, 0], sizes = [1, 32], strides = [1, 1]} : vector<6x32xf32> to vector<1x32xf32>
    %cst_178 = arith.constant dense<0.000000e+00> : vector<32xf32>
    %414 = vector.multi_reduction <add>, %411, %cst_178 [1] : vector<32x32xf32> to vector<32xf32>
    %415 = vector.shape_cast %414 : vector<32xf32> to vector<32x1xf32>
    %cst_179 = arith.constant 3.200000e+01 : f32
    %416 = vector.broadcast %cst_179 : f32 to vector<32x1xf32>
    %417 = arith.divf %415, %416 : vector<32x1xf32>
    %418 = vector.broadcast %417 : vector<32x1xf32> to vector<32x32xf32>
    %419 = arith.subf %411, %418 : vector<32x32xf32>
    %420 = arith.mulf %419, %419 : vector<32x32xf32>
    %cst_180 = arith.constant dense<0.000000e+00> : vector<32xf32>
    %421 = vector.multi_reduction <add>, %420, %cst_180 [1] : vector<32x32xf32> to vector<32xf32>
    %422 = vector.shape_cast %421 : vector<32xf32> to vector<32x1xf32>
    %cst_181 = arith.constant 3.200000e+01 : f32
    %423 = vector.broadcast %cst_181 : f32 to vector<32x1xf32>
    %424 = arith.divf %422, %423 : vector<32x1xf32>
    %cst_182 = arith.constant 9.99999974E-6 : f32
    %425 = vector.broadcast %cst_182 : f32 to vector<32x1xf32>
    %426 = arith.addf %424, %425 : vector<32x1xf32>
    %427 = math.rsqrt %426 : vector<32x1xf32>
    %428 = vector.broadcast %427 : vector<32x1xf32> to vector<32x32xf32>
    %429 = arith.mulf %419, %428 : vector<32x32xf32>
    %430 = vector.broadcast %412 : vector<1x32xf32> to vector<32x32xf32>
    %431 = arith.mulf %429, %430 : vector<32x32xf32>
    %432 = vector.broadcast %413 : vector<1x32xf32> to vector<32x32xf32>
    %433 = arith.addf %431, %432 : vector<32x32xf32>
    %434 = arith.truncf %433 : vector<32x32xf32> to vector<32x32xbf16>
    %c1_183 = arith.constant 1 : index
    %c0_184 = arith.constant 0 : index
    %c0_185 = arith.constant 0 : index
    %435 = vector.load %arg14[%c1_183, %c0_184, %c0_185] : memref<2x32x64xbf16, #tpu.memory_space<vmem>>, vector<1x32x64xbf16>
    %436 = vector.shape_cast %435 : vector<1x32x64xbf16> to vector<32x64xbf16>
    %cst_186 = arith.constant dense<0.000000e+00> : vector<32x64xf32>
    %437 = tpu.matmul %434, %436, %cst_186 {dimension_numbers = #tpu.dot_dimension_numbers<[1], [0], [0], [1], [0, 0, 1, 1], [], []>} : vector<32x32xbf16>, vector<32x64xbf16>, vector<32x64xf32> -> vector<32x64xf32>
    %c1_187 = arith.constant 1 : index
    %c0_188 = arith.constant 0 : index
    %c0_189 = arith.constant 0 : index
    %438 = vector.load %arg15[%c1_187, %c0_188, %c0_189] : memref<2x1x64xf32, #tpu.memory_space<vmem>>, vector<1x1x64xf32>
    %439 = vector.shape_cast %438 : vector<1x1x64xf32> to vector<1x64xf32>
    %440 = vector.broadcast %439 : vector<1x64xf32> to vector<32x64xf32>
    %441 = arith.addf %437, %440 : vector<32x64xf32>
    %cst_190 = arith.constant 0.000000e+00 : f32
    %442 = vector.broadcast %cst_190 : f32 to vector<32x64xf32>
    %443 = arith.maximumf %441, %442 : vector<32x64xf32>
    %444 = arith.truncf %443 : vector<32x64xf32> to vector<32x64xbf16>
    %c1_191 = arith.constant 1 : index
    %c0_192 = arith.constant 0 : index
    %c0_193 = arith.constant 0 : index
    %445 = vector.load %arg16[%c1_191, %c0_192, %c0_193] : memref<2x64x32xbf16, #tpu.memory_space<vmem>>, vector<1x64x32xbf16>
    %446 = vector.shape_cast %445 : vector<1x64x32xbf16> to vector<64x32xbf16>
    %cst_194 = arith.constant dense<0.000000e+00> : vector<32x32xf32>
    %447 = tpu.matmul %444, %446, %cst_194 {dimension_numbers = #tpu.dot_dimension_numbers<[1], [0], [0], [1], [0, 0, 1, 1], [], []>} : vector<32x64xbf16>, vector<64x32xbf16>, vector<32x32xf32> -> vector<32x32xf32>
    %448 = vector.extract_strided_slice %319 {offsets = [1, 0], sizes = [1, 32], strides = [1, 1]} : vector<6x32xf32> to vector<1x32xf32>
    %449 = vector.broadcast %448 : vector<1x32xf32> to vector<32x32xf32>
    %450 = arith.addf %447, %449 : vector<32x32xf32>
    %451 = arith.addf %433, %450 : vector<32x32xf32>
    %452 = vector.extract_strided_slice %319 {offsets = [4, 0], sizes = [1, 32], strides = [1, 1]} : vector<6x32xf32> to vector<1x32xf32>
    %453 = vector.extract_strided_slice %319 {offsets = [5, 0], sizes = [1, 32], strides = [1, 1]} : vector<6x32xf32> to vector<1x32xf32>
    %cst_195 = arith.constant dense<0.000000e+00> : vector<32xf32>
    %454 = vector.multi_reduction <add>, %451, %cst_195 [1] : vector<32x32xf32> to vector<32xf32>
    %455 = vector.shape_cast %454 : vector<32xf32> to vector<32x1xf32>
    %cst_196 = arith.constant 3.200000e+01 : f32
    %456 = vector.broadcast %cst_196 : f32 to vector<32x1xf32>
    %457 = arith.divf %455, %456 : vector<32x1xf32>
    %458 = vector.broadcast %457 : vector<32x1xf32> to vector<32x32xf32>
    %459 = arith.subf %451, %458 : vector<32x32xf32>
    %460 = arith.mulf %459, %459 : vector<32x32xf32>
    %cst_197 = arith.constant dense<0.000000e+00> : vector<32xf32>
    %461 = vector.multi_reduction <add>, %460, %cst_197 [1] : vector<32x32xf32> to vector<32xf32>
    %462 = vector.shape_cast %461 : vector<32xf32> to vector<32x1xf32>
    %cst_198 = arith.constant 3.200000e+01 : f32
    %463 = vector.broadcast %cst_198 : f32 to vector<32x1xf32>
    %464 = arith.divf %462, %463 : vector<32x1xf32>
    %cst_199 = arith.constant 9.99999974E-6 : f32
    %465 = vector.broadcast %cst_199 : f32 to vector<32x1xf32>
    %466 = arith.addf %464, %465 : vector<32x1xf32>
    %467 = math.rsqrt %466 : vector<32x1xf32>
    %468 = vector.broadcast %467 : vector<32x1xf32> to vector<32x32xf32>
    %469 = arith.mulf %459, %468 : vector<32x32xf32>
    %470 = vector.broadcast %452 : vector<1x32xf32> to vector<32x32xf32>
    %471 = arith.mulf %469, %470 : vector<32x32xf32>
    %472 = vector.broadcast %453 : vector<1x32xf32> to vector<32x32xf32>
    %473 = arith.addf %471, %472 : vector<32x32xf32>
    %474 = tpu.iota {dimensions = array<i32: 1>} : vector<2x32xi32>
    %475 = tpu.iota {dimensions = array<i32: 0>} : vector<2x32xi32>
    %c16_i32 = arith.constant 16 : i32
    %476 = vector.broadcast %c16_i32 : i32 to vector<2x32xi32>
    %477 = arith.muli %475, %476 : vector<2x32xi32>
    %c15_i32 = arith.constant 15 : i32
    %478 = vector.broadcast %c15_i32 : i32 to vector<2x32xi32>
    %479 = arith.addi %477, %478 : vector<2x32xi32>
    %480 = arith.cmpi eq, %474, %479 : vector<2x32xi32>
    %481 = arith.extui %480 : vector<2x32xi1> to vector<2x32xi32>
    %482 = arith.sitofp %481 : vector<2x32xi32> to vector<2x32xf32>
    %483 = arith.truncf %482 : vector<2x32xf32> to vector<2x32xbf16>
    %484 = arith.truncf %473 : vector<32x32xf32> to vector<32x32xbf16>
    %cst_200 = arith.constant dense<0.000000e+00> : vector<2x32xf32>
    %485 = tpu.matmul %483, %484, %cst_200 {dimension_numbers = #tpu.dot_dimension_numbers<[1], [0], [0], [1], [0, 0, 1, 1], [], []>} : vector<2x32xbf16>, vector<32x32xbf16>, vector<2x32xf32> -> vector<2x32xf32>
    %486 = arith.truncf %485 : vector<2x32xf32> to vector<2x32xbf16>
    %c0_201 = arith.constant 0 : index
    %c0_202 = arith.constant 0 : index
    %487 = vector.load %arg18[%c0_201, %c0_202] : memref<32x5xbf16, #tpu.memory_space<vmem>>, vector<32x5xbf16>
    %cst_203 = arith.constant dense<0.000000e+00> : vector<2x5xf32>
    %488 = tpu.matmul %486, %487, %cst_203 {dimension_numbers = #tpu.dot_dimension_numbers<[1], [0], [0], [1], [0, 0, 1, 1], [], []>} : vector<2x32xbf16>, vector<32x5xbf16>, vector<2x5xf32> -> vector<2x5xf32>
    %c0_204 = arith.constant 0 : index
    %c0_205 = arith.constant 0 : index
    %489 = vector.load %arg19[%c0_204, %c0_205] : memref<1x5xf32, #tpu.memory_space<vmem>>, vector<1x5xf32>
    %490 = vector.broadcast %489 : vector<1x5xf32> to vector<2x5xf32>
    %491 = arith.addf %488, %490 : vector<2x5xf32>
    %c0_206 = arith.constant 0 : index
    %c0_207 = arith.constant 0 : index
    %492 = vector.load %arg20[%c0_206, %c0_207] : memref<2x5xf32, #tpu.memory_space<vmem>>, vector<2x5xf32>
    tpu.vector_store %arg20[%c0_206, %c0_207], %491 {strides = array<i32>} : memref<2x5xf32, #tpu.memory_space<vmem>>, vector<2x5xf32>,
    return
  }
}

</mosaic_0001>

<bundles_post_ra>
// kernel: tcn_transformer_forward.1
= control target key start
LH: loop header
LB: loop body
LE: loop exit
PB: predicated region body
PF: predicated region fallthrough
CT: control target
= control target key end

     0   :  { %s4610_s0 = inlined_call_operand.vmem [shape: f32[2,16,4], index: 0, kind: input, shape index: {}]   ;;  %s4611_s1 = inlined_call_operand.vmem [shape: bf16[3,4,8], index: 1, kind: input, shape index: {}]   ;;  %s4612_s2 = inlined_call_operand.vmem [shape: bf16[3,8,8], index: 2, kind: input, shape index: {}]   ;;  %s4613_s3 = inlined_call_operand.vmem [shape: f32[3,8], index: 3, kind: input, shape index: {}]   ;;  %s4614_s4 = inlined_call_operand.vmem [shape: bf16[4,8], index: 4, kind: input, shape index: {}]   ;;  %s4615_s5 = inlined_call_operand.vmem [shape: bf16[3,8,8], index: 5, kind: input, shape index: {}]   ;;  %s4616_s6 = inlined_call_operand.vmem [shape: bf16[3,8,8], index: 6, kind: input, shape index: {}]   ;;  %s4617_s7 = inlined_call_operand.vmem [shape: f32[2,8], index: 7, kind: input, shape index: {}]   ;;  %s4618_s8 = inlined_call_operand.vmem [shape: bf16[8,32], index: 8, kind: input, shape index: {}]   ;;  %s4619_s9 = inlined_call_operand.vmem [shape: f32[1,32], index: 9, kind: input, shape index: {}]   ;;  %s4620_s10 = inlined_call_operand.vmem [shape: f32[16,32], index: 10, kind: input, shape index: {}]   ;;  %s4621_s11 = inlined_call_operand.vmem [shape: bf16[2,32,96], index: 11, kind: input, shape index: {}]   ;;  %s4622_s12 = inlined_call_operand.vmem [shape: f32[2,1,96], index: 12, kind: input, shape index: {}]   ;;  %s4623_s13 = inlined_call_operand.vmem [shape: bf16[2,32,32], index: 13, kind: input, shape index: {}]   ;;  %s4624_s14 = inlined_call_operand.vmem [shape: bf16[2,32,64], index: 14, kind: input, shape index: {}]   ;;  %s4625_s15 = inlined_call_operand.vmem [shape: f32[2,1,64], index: 15, kind: input, shape index: {}]   ;;  %s4626_s16 = inlined_call_operand.vmem [shape: bf16[2,64,32], index: 16, kind: input, shape index: {}]   ;;  %s4627_s17 = inlined_call_operand.vmem [shape: f32[2,6,32], index: 17, kind: input, shape index: {}]   ;;  %s4628_s18 = inlined_call_operand.vmem [shape: bf16[32,5], index: 18, kind: input, shape index: {}]   ;;  %s4629_s19 = inlined_call_operand.vmem [shape: f32[1,5], index: 19, kind: input, shape index: {}]   ;;  %s4630_s20 = inlined_call_operand.hbm [shape: f32[2,5], index: 20, kind: output, shape index: {}]  }
   0x1   :  { %4638 = sst [smem:[#allocation5_spill]] %s4610_s0 }
   0x2   :  { %4639 = sst [smem:[#allocation6_spill]] %s4611_s1 }
   0x3   :  { %4640 = sst [smem:[#allocation7_spill]] %s4612_s2 }
   0x4   :  { %4641 = sst [smem:[#allocation8_spill]] %s4613_s3 }
   0x5   :  { %4642 = sst [smem:[#allocation9_spill]] %s4614_s4 }
   0x6   :  { %vm127_vm0 = vcmask 1041408   ;;  %s4643_s23 = sld [smem:[#allocation6_spill]]  ;;  %vm120_vm1 = vcmask 31744   ;;  %v71_v3 = vlaneseq }
   0x7   :  { %s4644_s25 = sld [smem:[#allocation5_spill]] }
   0x8   :  { %v3597_v14 = vshrl.u32 %v71_v3, 7 }
   0xa   :  { %vm81_vm2 = vcmp.lt.s32.totalorder %v3597_v14, 2  ;;  %vm97_vm3 = vcmp.ge.s32.totalorder %v3597_v14, 1  ;;  %vm103_vm4 = vcmp.lt.s32.totalorder %v3597_v14, 1  ;;  %vm75_vm5 = vcmp.ge.s32.totalorder %v3597_v14, 2 }
   0xc   :  { %v2968_v0 = vld [vmem:[%s4643_s23 + $0x4] sm:$0x3]  ;;  %v2963_v8 = vld [vmem:[%s4643_s23 + $0x2] sm:$0x3]  ;;  %v96_v12 = vld [vmem:[%s4643_s23] sm:$0x3] }
   0xd   :  { %v67_v1 = vld [vmem:[%s4644_s25] sm:$0xff]  ;;  %v68_v2 = vld [vmem:[%s4644_s25 + $0x8] sm:$0xff]  ;;  %v189_v4 = vsel %vm127_vm0, %v2968_v0, 0  ;;  %v129_v11 = vsel %vm127_vm0, %v2963_v8, 0  ;;  %v70_v13 = vld [vmem:[%s4644_s25 + $0x18] sm:$0xff]  ;;  %v157_v15 = vsel %vm127_vm0, %v96_v12, 0 }
   0xe   :  { %v77_v5 = vrot.slane %v67_v1, 6  ;;  %v78_v6 = vrot.slane %v68_v2, 6  ;;  %v99_v7 = vrot.slane %v67_v1, 7  ;;  %198 = vmatpush.bf16.msra.mxu2 %v189_v4  ;;  %v100_v9 = vrot.slane %v68_v2, 7  ;;  %138 = vmatpush.bf16.msra.mxu0 %v129_v11 }
   0xf   :  { %v178_v10 = vpack.c.bf16 %v68_v2, %v67_v1  ;;  %v102_v16 = vrot.slane %v70_v13, 7  ;;  %v80_v17 = vrot.slane %v70_v13, 6  ;;  %166 = vmatpush.bf16.msra.mxu1 %v157_v15 }
  0x10   :  { %v106_v18 = vsel %vm103_vm4, %v99_v7, %v100_v9  ;;  %v84_v20 = vsel %vm81_vm2, %v77_v5, %v78_v6 }
  0x11   :  { %2969 = vmatmul.msk.bf16.vlgmr.msra.gmra.mxu2 %vm120_vm1, %v178_v10  ;;  %v107_v19 = vsel %vm103_vm4, %v102_v16, %v99_v7  ;;  %v85_v21 = vsel %vm81_vm2, %v80_v17, %v77_v5 }
  0x12   :  { %v112_v22 = vsel %vm97_vm3, %v107_v19, 0.0  ;;  %v90_v23 = vsel %vm75_vm5, %v85_v21, 0.0 }
  0x13   :  { %v116_v24 = vpack.c.bf16 %v106_v18, %v112_v22  ;;  %v94_v25 = vpack.c.bf16 %v84_v20, %v90_v23 }
  0x14   :  { %25 = vsyncpa [#allocation3], 0  ;;  %v69_v26 = vld [vmem:[%s4644_s25 + $0x10] sm:$0xff]  ;;  %vm261_vm6 = vcmask 1043456   ;;  %s4645_s24 = sld [smem:[#allocation7_spill]]  ;;  %vm254_vm7 = vcmask 64512  }
  0x15   :  { %2964 = vmatmul.msk.bf16.vlgmr.msra.gmra.mxu0 %vm120_vm1, %v116_v24  ;;  %2966 = vmatmul.msk.bf16.vlgmr.msra.gmra.mxu1 %vm120_vm1, %v94_v25  ;;  %v79_v27 = vrot.slane %v69_v26, 6  ;;  %v101_v28 = vrot.slane %v69_v26, 7  ;;  %v179_v31 = vpack.c.bf16 %v70_v13, %v69_v26  ;;  %s4646_s3 = sld [smem:[#allocation9_spill]]  ;;  %vm396_vm8 = vcmp.lt.s32.totalorder %v3597_v14, 4  ;;  %s3454_s25 = smov 88  }
  0x16   :  { %s4647_s0 = sld [smem:[#allocation8_spill]]  ;;  %vm390_vm9 = vcmp.ge.s32.totalorder %v3597_v14, 4  ;;  %vm733_vm10 = vcmask 261120   ;;  %s3456_s26 = smov 120   ;;  %vm821_vm11 = vcmask 130048   ;;  %vm1426_vm12 = vcmask 195584  }
  0x17   :  { %v105_v29 = vsel %vm103_vm4, %v100_v9, %v101_v28  ;;  %v83_v30 = vsel %vm81_vm2, %v78_v6, %v79_v27  ;;  %v104_v32 = vsel %vm103_vm4, %v101_v28, %v102_v16  ;;  %v82_v34 = vsel %vm81_vm2, %v79_v27, %v80_v17  ;;  %s3457_s27 = smov 112   ;;  %s3458_s28 = smov 80  }
  0x18   :  { %v114_v33 = vsel %vm97_vm3, %v105_v29, 0.0  ;;  %v92_v35 = vsel %vm75_vm5, %v83_v30, 0.0  ;;  %s3459_s4 = smov 104   ;;  %s3460_s29 = smov 72  }
  0x19   :  { %v117_v36 = vpack.c.bf16 %v104_v32, %v114_v33  ;;  %v95_v37 = vpack.c.bf16 %v82_v34, %v92_v35  ;;  %s3464_s30 = smov 40   ;;  %s4636_s21 = smov 16  }
  0x1a   :  { %v2976_v38 = vld [vmem:[%s4645_s24 + $0x8] sm:$0xf]  ;;  %v2971_v45 = vld [vmem:[%s4645_s24 + $0x4] sm:$0xf]  ;;  %v237_v46 = vld [vmem:[%s4645_s24] sm:$0xf] }
  0x1b   :  { %v323_v39 = vsel %vm261_vm6, %v2976_v38, 0  ;;  %v357_v42 = vld [vmem:[%s4646_s3] sm:$0x3]  ;;  %v263_v48 = vsel %vm261_vm6, %v2971_v45, 0  ;;  %v291_v49 = vsel %vm261_vm6, %v237_v46, 0  ;;  %s3455_s3 = smov 96  }
  0x1c   :  { %332 = vmatpush.bf16.msrb.mxu1 %v323_v39  ;;  %v360_v43 = vsel %vm127_vm0, %v357_v42, 0  ;;  %v3656_v50 = vld [vmem:[%s4647_s0] sm:$0x7]  ;;  %272 = vmatpush.bf16.msra.mxu3 %v263_v48  ;;  %s3465_s0 = smov 8   ;;  %s4634_s1 = smov 24  }
  0x1d   :  { %369 = vmatpush.bf16.msrb.mxu2 %v360_v43  ;;  %300 = vmatpush.bf16.msrb.mxu0 %v291_v49  ;;  %v214_v52 = vperm.slane %v3656_v50, 0  ;;  %v348_v48 = vperm.slane %v3656_v50, 1 }
  0x21   :  { %2970 = vmatmul.msk.bf16.gmra.mxu2 %vm120_vm1, %v179_v31 }
  0x25   :  { %2965 = vmatmul.msk.bf16.gmra.mxu0 %vm120_vm1, %v117_v36  ;;  %2967 = vmatmul.msk.bf16.gmra.mxu1 %vm120_vm1, %v95_v37 }
  0x31   :  { %2979 = vmatmul.msk.bf16.vlgmr.msrb.gmra.mxu2 %vm120_vm1, %v178_v10 }
  0x41   :  { %2980 = vmatmul.msk.bf16.gmra.mxu2 %vm120_vm1, %v179_v31 }
  0x92   :  { %v140_v40 = vpop.f32.mrf.mxu0  ;;  %v168_v41 = vpop.f32.mrf.mxu1 }
  0x93   :  { %v169_v47 = vadd.f32 %v168_v41, %v140_v40  ;;  %v2986_v40 = vld [vmem:[%s4615_s5 + $0x8] sm:$0xf] }
  0x94   :  { %v200_v44 = vpop.f32.mrf.mxu2  ;;  %v495_v41 = vsel %vm261_vm6, %v2986_v40, 0 }
  0x95   :  { %v210_v51 = vadd.f32 %v200_v44, %v169_v47  ;;  %504 = vmatpush.bf16.msra.mxu1 %v495_v41 }
  0x97   :  { %v215_v57 = vadd.f32 %v214_v52, %v210_v51  ;;  %v2981_v51 = vld [vmem:[%s4615_s5 + $0x4] sm:$0xf] }
  0x99   :  { %v219_v60 = vmax.f32 %v215_v57, 0.0 }
  0x9a   :  { %v142_v53 = vpop.f32.mrf.mxu0  ;;  %v170_v54 = vpop.f32.mrf.mxu1 }
  0x9b   :  { %v171_v55 = vadd.f32 %v170_v54, %v142_v53  ;;  %v223_v15 = vrot.slane %v219_v60, 6  ;;  %v238_v18 = vrot.slane %v219_v60, 7  ;;  %v435_v53 = vsel %vm261_vm6, %v2981_v51, 0  ;;  %v411_v54 = vld [vmem:[%s4615_s5] sm:$0xf] }
  0x9c   :  { %v202_v56 = vpop.f32.mrf.mxu2  ;;  %444 = vmatpush.bf16.msrb.mxu3 %v435_v53  ;;  %v463_v57 = vsel %vm261_vm6, %v411_v54, 0 }
  0x9d   :  { %v211_v58 = vadd.f32 %v202_v56, %v171_v55  ;;  %v358_v55 = vperm.slane %v3656_v50, 2  ;;  %472 = vmatpush.bf16.msra.mxu0 %v463_v57  ;;  %v2994_v57 = vld [vmem:[%s4616_s6 + $0x8] sm:$0xf] }
  0x9f   :  { %v216_v59 = vadd.f32 %v214_v52, %v211_v58 }
  0xa1   :  { %v220_v61 = vmax.f32 %v216_v59, 0.0 }
  0xa2   :  { %v145_v62 = vpop.f32.mrf.mxu0  ;;  %v173_v63 = vpop.f32.mrf.mxu1 }
  0xa3   :  { %v312_v0 = vpack.c.bf16 %v220_v61, %v219_v60  ;;  %v174_v2 = vadd.f32 %v173_v63, %v145_v62  ;;  %v224_v16 = vrot.slane %v220_v61, 6  ;;  %v239_v17 = vrot.slane %v220_v61, 7 }
  0xa4   :  { %v205_v1 = vpop.f32.mrf.mxu2 }
  0xa5   :  { %2977 = vmatmul.msk.bf16.vlgmr.msrb.gmra.mxu1 %vm254_vm7, %v312_v0  ;;  %v212_v4 = vadd.f32 %v205_v1, %v174_v2  ;;  %v244_v24 = vsel %vm103_vm4, %v238_v18, %v239_v17  ;;  %v229_v26 = vsel %vm81_vm2, %v223_v15, %v224_v16 }
  0xa7   :  { %v217_v9 = vadd.f32 %v214_v52, %v212_v4 }
  0xa9   :  { %v221_v12 = vmax.f32 %v217_v9, 0.0 }
  0xaa   :  { %v147_v5 = vpop.f32.mrf.mxu0  ;;  %v175_v6 = vpop.f32.mrf.mxu1 }
  0xab   :  { %v176_v7 = vadd.f32 %v175_v6, %v147_v5  ;;  %v225_v30 = vrot.slane %v221_v12, 6  ;;  %v240_v31 = vrot.slane %v221_v12, 7 }
  0xac   :  { %v207_v8 = vpop.f32.mrf.mxu2 }
  0xad   :  { %v213_v10 = vadd.f32 %v207_v8, %v176_v7  ;;  %v243_v32 = vsel %vm103_vm4, %v239_v17, %v240_v31  ;;  %v228_v33 = vsel %vm81_vm2, %v224_v16, %v225_v30 }
  0xae   :  { %v248_v36 = vsel %vm97_vm3, %v243_v32, 0.0  ;;  %v233_v37 = vsel %vm75_vm5, %v228_v33, 0.0 }
  0xaf   :  { %v218_v11 = vadd.f32 %v214_v52, %v213_v10 }
  0xb1   :  { %v222_v13 = vmax.f32 %v218_v11, 0.0 }
  0xb3   :  { %v226_v19 = vrot.slane %v222_v13, 6  ;;  %v241_v20 = vrot.slane %v222_v13, 7  ;;  %v313_v21 = vpack.c.bf16 %v222_v13, %v221_v12 }
  0xb4   :  { %v371_v44 = vpop.f32.mrf.mxu2 }
  0xb5   :  { %2978 = vmatmul.msk.bf16.gmra.mxu1 %vm254_vm7, %v313_v21  ;;  %v245_v22 = vsel %vm103_vm4, %v241_v20, %v238_v18  ;;  %v230_v23 = vsel %vm81_vm2, %v226_v19, %v223_v15  ;;  %v242_v34 = vsel %vm103_vm4, %v240_v31, %v241_v20  ;;  %v227_v35 = vsel %vm81_vm2, %v225_v30, %v226_v19 }
  0xb6   :  { %v246_v25 = vsel %vm97_vm3, %v245_v22, 0.0  ;;  %v231_v27 = vsel %vm75_vm5, %v230_v23, 0.0  ;;  %v251_v38 = vpack.c.bf16 %v242_v34, %v248_v36  ;;  %v236_v39 = vpack.c.bf16 %v227_v35, %v233_v37 }
  0xb7   :  { %v250_v28 = vpack.c.bf16 %v244_v24, %v246_v25  ;;  %v235_v29 = vpack.c.bf16 %v229_v26, %v231_v27  ;;  %v372_v61 = vadd.f32 %v371_v44, %v358_v55 }
  0xb9   :  { %2972 = vmatmul.msk.bf16.vlgmr.msra.gmra.mxu3 %vm254_vm7, %v250_v28  ;;  %2974 = vmatmul.msk.bf16.vlgmr.msrb.gmra.mxu0 %vm254_vm7, %v235_v29 }
  0xbc   :  { %v373_v58 = vpop.f32.mrf.mxu2 }
  0xbd   :  { %v374_v4 = vadd.f32 %v373_v58, %v358_v55  ;;  %v627_v58 = vsel %vm261_vm6, %v2994_v57, 0 }
  0xbe   :  { %636 = vmatpush.bf16.msrb.mxu0 %v627_v58 }
  0xc4   :  { %v376_v9 = vpop.f32.mrf.mxu2 }
  0xc5   :  { %v377_v20 = vadd.f32 %v376_v9, %v358_v55 }
  0xc9   :  { %2973 = vmatmul.msk.bf16.gmra.mxu3 %vm254_vm7, %v251_v38  ;;  %2975 = vmatmul.msk.bf16.gmra.mxu0 %vm254_vm7, %v236_v39 }
  0xcc   :  { %v378_v23 = vpop.f32.mrf.mxu2 }
  0xcd   :  { %v379_v26 = vadd.f32 %v378_v23, %v358_v55 }
 0x122   :  { %v334_v43 = vpop.f32.mrf.mxu1 }
 0x12a   :  { %v336_v52 = vpop.f32.mrf.mxu1 }
 0x132   :  { %v339_v6 = vpop.f32.mrf.mxu1 }
 0x136   :  { %v302_v42 = vpop.f32.mrf.mxu0 }
 0x13a   :  { %v341_v19 = vpop.f32.mrf.mxu1 }
 0x13c   :  { %v274_v45 = vpop.f32.mrf.mxu3 }
 0x13d   :  { %v303_v46 = vadd.f32 %v302_v42, %v274_v45 }
 0x13e   :  { %v304_v49 = vpop.f32.mrf.mxu0 }
 0x13f   :  { %v344_v47 = vadd.f32 %v334_v43, %v303_v46 }
 0x141   :  { %v349_v56 = vadd.f32 %v348_v48, %v344_v47 }
 0x143   :  { %v353_v62 = vmax.f32 %v349_v56, 0.0 }
 0x144   :  { %v276_v59 = vpop.f32.mrf.mxu3 }
 0x145   :  { %v305_v60 = vadd.f32 %v304_v49, %v276_v59  ;;  %v381_v2 = vadd.f32 %v372_v61, %v353_v62  ;;  %v2989_v62 = vld [vmem:[%s4616_s6 + $0x4] sm:$0xf] }
 0x146   :  { %v307_v1 = vpop.f32.mrf.mxu0 }
 0x147   :  { %v345_v63 = vadd.f32 %v336_v52, %v305_v60  ;;  %v3705_v10 = vmax.f32 %v381_v2, 0.0 }
 0x149   :  { %v350_v0 = vadd.f32 %v348_v48, %v345_v63  ;;  %v392_v31 = vrot.slane %v3705_v10, 4  ;;  %v412_v36 = vrot.slane %v3705_v10, 6  ;;  %v543_v63 = vld [vmem:[%s4616_s6] sm:$0xf]  ;;  %s3461_s6 = smov 64  }
 0x14b   :  { %v354_v5 = vmax.f32 %v350_v0, 0.0  ;;  %v567_v0 = vsel %vm261_vm6, %v2989_v62, 0 }
 0x14c   :  { %v279_v7 = vpop.f32.mrf.mxu3  ;;  %576 = vmatpush.bf16.msra.mxu2 %v567_v0 }
 0x14d   :  { %v382_v8 = vadd.f32 %v374_v4, %v354_v5  ;;  %v308_v50 = vadd.f32 %v307_v1, %v279_v7  ;;  %v595_v1 = vsel %vm261_vm6, %v543_v63, 0  ;;  %v3772_v4 = vld [vmem:[%s4617_s7] sm:$0x3]  ;;  %s3462_s7 = smov 56  }
 0x14e   :  { %v309_v16 = vpop.f32.mrf.mxu0  ;;  %604 = vmatpush.bf16.msra.mxu3 %v595_v1 }
 0x14f   :  { %v3707_v11 = vmax.f32 %v382_v8, 0.0  ;;  %v346_v12 = vadd.f32 %v339_v6, %v308_v50  ;;  %v520_v8 = vperm.slane %v3772_v4, 0 }
 0x151   :  { %v484_v13 = vpack.c.bf16 %v3707_v11, %v3705_v10  ;;  %v351_v15 = vadd.f32 %v348_v48, %v346_v12  ;;  %v393_v32 = vrot.slane %v3707_v11, 4  ;;  %v413_v33 = vrot.slane %v3707_v11, 6 }
 0x153   :  { %2987 = vmatmul.msk.bf16.vlgmr.msra.gmra.mxu1 %vm254_vm7, %v484_v13  ;;  %v355_v21 = vmax.f32 %v351_v15, 0.0  ;;  %v418_v40 = vsel %vm81_vm2, %v412_v36, %v413_v33  ;;  %v399_v42 = vsel %vm396_vm8, %v392_v31, %v393_v32 }
 0x154   :  { %v281_v17 = vpop.f32.mrf.mxu3 }
 0x155   :  { %v310_v18 = vadd.f32 %v309_v16, %v281_v17  ;;  %v383_v25 = vadd.f32 %v377_v20, %v355_v21 }
 0x157   :  { %v347_v22 = vadd.f32 %v341_v19, %v310_v18  ;;  %v3712_v29 = vmax.f32 %v383_v25, 0.0 }
 0x159   :  { %v352_v24 = vadd.f32 %v348_v48, %v347_v22  ;;  %v414_v46 = vrot.slane %v3712_v29, 6  ;;  %v394_v47 = vrot.slane %v3712_v29, 4 }
 0x15b   :  { %v356_v27 = vmax.f32 %v352_v24, 0.0  ;;  %v417_v48 = vsel %vm81_vm2, %v413_v33, %v414_v46  ;;  %v398_v49 = vsel %vm396_vm8, %v393_v32, %v394_v47 }
 0x15c   :  { %v422_v53 = vsel %vm75_vm5, %v417_v48, 0.0  ;;  %v407_v54 = vsel %vm390_vm9, %v398_v49, 0.0 }
 0x15d   :  { %v384_v28 = vadd.f32 %v379_v26, %v356_v27 }
 0x15f   :  { %v3714_v30 = vmax.f32 %v384_v28, 0.0 }
 0x161   :  { %v395_v34 = vrot.slane %v3714_v30, 4  ;;  %v485_v35 = vpack.c.bf16 %v3714_v30, %v3712_v29  ;;  %v415_v37 = vrot.slane %v3714_v30, 6 }
 0x163   :  { %2988 = vmatmul.msk.bf16.gmra.mxu1 %vm254_vm7, %v485_v35  ;;  %v419_v38 = vsel %vm81_vm2, %v415_v37, %v412_v36  ;;  %v400_v39 = vsel %vm396_vm8, %v395_v34, %v392_v31  ;;  %v416_v51 = vsel %vm81_vm2, %v414_v46, %v415_v37  ;;  %v397_v52 = vsel %vm396_vm8, %v394_v47, %v395_v34 }
 0x164   :  { %v420_v41 = vsel %vm75_vm5, %v419_v38, 0.0  ;;  %v405_v43 = vsel %vm390_vm9, %v400_v39, 0.0  ;;  %v425_v55 = vpack.c.bf16 %v416_v51, %v422_v53  ;;  %v410_v56 = vpack.c.bf16 %v397_v52, %v407_v54 }
 0x165   :  { %v424_v44 = vpack.c.bf16 %v418_v40, %v420_v41  ;;  %v409_v45 = vpack.c.bf16 %v399_v42, %v405_v43 }
 0x167   :  { %2982 = vmatmul.msk.bf16.vlgmr.msrb.gmra.mxu3 %vm254_vm7, %v424_v44  ;;  %2984 = vmatmul.msk.bf16.vlgmr.msra.gmra.mxu0 %vm254_vm7, %v409_v45 }
 0x177   :  { %2983 = vmatmul.msk.bf16.gmra.mxu3 %vm254_vm7, %v425_v55  ;;  %2985 = vmatmul.msk.bf16.gmra.mxu0 %vm254_vm7, %v410_v56 }
 0x1d0   :  { %v506_v60 = vpop.f32.mrf.mxu1 }
 0x1d8   :  { %v508_v6 = vpop.f32.mrf.mxu1 }
 0x1e0   :  { %v511_v19 = vpop.f32.mrf.mxu1 }
 0x1e4   :  { %v474_v59 = vpop.f32.mrf.mxu0 }
 0x1e8   :  { %v513_v27 = vpop.f32.mrf.mxu1 }
 0x1ea   :  { %v446_v61 = vpop.f32.mrf.mxu3 }
 0x1eb   :  { %v475_v2 = vadd.f32 %v474_v59, %v446_v61  ;;  %v671_v61 = vld [vmem:[%s4618_s8] sm:$0xf]  ;;  %s3463_s8 = smov 48  }
 0x1ec   :  { %v476_v5 = vpop.f32.mrf.mxu0  ;;  %v683_v62 = vsel %vm261_vm6, %v671_v61, 0 }
 0x1ed   :  { %v516_v7 = vadd.f32 %v506_v60, %v475_v2  ;;  %692 = vmatpush.bf16.msrb.mxu1 %v683_v62 }
 0x1ef   :  { %v521_v12 = vadd.f32 %v520_v8, %v516_v7 }
 0x1f1   :  { %v525_v17 = vmax.f32 %v521_v12, 0.0 }
 0x1f2   :  { %v448_v50 = vpop.f32.mrf.mxu3 }
 0x1f3   :  { %v477_v9 = vadd.f32 %v476_v5, %v448_v50  ;;  %v529_v35 = vrot.slane %v525_v17, 4  ;;  %v544_v38 = vrot.slane %v525_v17, 6 }
 0x1f4   :  { %v479_v16 = vpop.f32.mrf.mxu0 }
 0x1f5   :  { %v517_v13 = vadd.f32 %v508_v6, %v477_v9  ;;  %v652_v6 = vperm.slane %v3772_v4, 1 }
 0x1f7   :  { %v522_v15 = vadd.f32 %v520_v8, %v517_v13 }
 0x1f9   :  { %v526_v18 = vmax.f32 %v522_v15, 0.0 }
 0x1fa   :  { %v451_v20 = vpop.f32.mrf.mxu3 }
 0x1fb   :  { %v616_v21 = vpack.c.bf16 %v526_v18, %v525_v17  ;;  %v480_v22 = vadd.f32 %v479_v16, %v451_v20  ;;  %v530_v36 = vrot.slane %v526_v18, 4  ;;  %v545_v37 = vrot.slane %v526_v18, 6 }
 0x1fc   :  { %v481_v24 = vpop.f32.mrf.mxu0 }
 0x1fd   :  { %2995 = vmatmul.msk.bf16.vlgmr.msrb.gmra.mxu0 %vm254_vm7, %v616_v21  ;;  %v518_v23 = vadd.f32 %v511_v19, %v480_v22  ;;  %v550_v44 = vsel %vm81_vm2, %v544_v38, %v545_v37  ;;  %v535_v46 = vsel %vm396_vm8, %v529_v35, %v530_v36 }
 0x1ff   :  { %v523_v28 = vadd.f32 %v520_v8, %v518_v23 }
 0x201   :  { %v527_v33 = vmax.f32 %v523_v28, 0.0 }
 0x202   :  { %v453_v25 = vpop.f32.mrf.mxu3 }
 0x203   :  { %v482_v26 = vadd.f32 %v481_v24, %v453_v25  ;;  %v546_v51 = vrot.slane %v527_v33, 6  ;;  %v531_v52 = vrot.slane %v527_v33, 4 }
 0x205   :  { %v519_v31 = vadd.f32 %v513_v27, %v482_v26  ;;  %v549_v53 = vsel %vm81_vm2, %v545_v37, %v546_v51  ;;  %v534_v54 = vsel %vm396_vm8, %v530_v36, %v531_v52 }
 0x206   :  { %v554_v57 = vsel %vm75_vm5, %v549_v53, 0.0  ;;  %v539_v58 = vsel %vm390_vm9, %v534_v54, 0.0 }
 0x207   :  { %v524_v32 = vadd.f32 %v520_v8, %v519_v31 }
 0x209   :  { %v528_v34 = vmax.f32 %v524_v32, 0.0 }
 0x20b   :  { %v532_v39 = vrot.slane %v528_v34, 4  ;;  %v547_v40 = vrot.slane %v528_v34, 6  ;;  %v617_v41 = vpack.c.bf16 %v528_v34, %v527_v33 }
 0x20d   :  { %2996 = vmatmul.msk.bf16.gmra.mxu0 %vm254_vm7, %v617_v41  ;;  %v551_v42 = vsel %vm81_vm2, %v547_v40, %v544_v38  ;;  %v536_v43 = vsel %vm396_vm8, %v532_v39, %v529_v35  ;;  %v548_v55 = vsel %vm81_vm2, %v546_v51, %v547_v40  ;;  %v533_v56 = vsel %vm396_vm8, %v531_v52, %v532_v39  ;;  %v3162_v41 = vld [vmem:[%s4621_s11 + $0x8] sm:$0xff] }
 0x20e   :  { %v552_v45 = vsel %vm75_vm5, %v551_v42, 0.0  ;;  %v537_v47 = vsel %vm390_vm9, %v536_v43, 0.0  ;;  %v557_v59 = vpack.c.bf16 %v548_v55, %v554_v57  ;;  %v542_v60 = vpack.c.bf16 %v533_v56, %v539_v58  ;;  %746 = vmatpush.bf16.msrb.mxu2 %v3162_v41  ;;  %v3161_v42 = vld [vmem:[%s4621_s11] sm:$0xff] }
 0x20f   :  { %v556_v48 = vpack.c.bf16 %v550_v44, %v552_v45  ;;  %v541_v49 = vpack.c.bf16 %v535_v46, %v537_v47  ;;  %v704_v44 = vld [vmem:[%s4620_s10] sm:$0xff]  ;;  %v705_v46 = vld [vmem:[%s4620_s10 + $0x8] sm:$0xff] }
 0x211   :  { %2990 = vmatmul.msk.bf16.vlgmr.msra.gmra.mxu2 %vm254_vm7, %v556_v48  ;;  %2992 = vmatmul.msk.bf16.vlgmr.msra.gmra.mxu3 %vm254_vm7, %v541_v49 }
 0x212   :  { %747 = vmatpush.bf16.msrb.mxu2 %v3161_v42 }
 0x221   :  { %2991 = vmatmul.msk.bf16.gmra.mxu2 %vm254_vm7, %v557_v59  ;;  %2993 = vmatmul.msk.bf16.gmra.mxu3 %vm254_vm7, %v542_v60  ;;  %v3261_v60 = vld [vmem:[%s4622_s12] ss:$0 sm:$0xff] }
 0x27a   :  { %v638_v63 = vpop.f32.mrf.mxu0 }
 0x282   :  { %v640_v7 = vpop.f32.mrf.mxu0 }
 0x28a   :  { %v643_v17 = vpop.f32.mrf.mxu0 }
 0x292   :  { %v645_v33 = vpop.f32.mrf.mxu0 }
 0x294   :  { %v578_v0 = vpop.f32.mrf.mxu2  ;;  %v606_v1 = vpop.f32.mrf.mxu3 }
 0x295   :  { %v607_v2 = vadd.f32 %v606_v1, %v578_v0 }
 0x297   :  { %v648_v5 = vadd.f32 %v638_v63, %v607_v2 }
 0x299   :  { %v653_v8 = vadd.f32 %v652_v6, %v648_v5 }
 0x29b   :  { %v657_v13 = vmax.f32 %v653_v8, 0.0 }
 0x29c   :  { %v580_v50 = vpop.f32.mrf.mxu2  ;;  %v608_v9 = vpop.f32.mrf.mxu3 }
 0x29d   :  { %v609_v12 = vadd.f32 %v608_v9, %v580_v50  ;;  %v661_v18 = vadd.f32 %v657_v13, %v3705_v10 }
 0x29f   :  { %v649_v15 = vadd.f32 %v640_v7, %v609_v12  ;;  %v665_v24 = vmax.f32 %v661_v18, 0.0 }
 0x2a1   :  { %v654_v16 = vadd.f32 %v652_v6, %v649_v15 }
 0x2a3   :  { %v658_v19 = vmax.f32 %v654_v16, 0.0 }
 0x2a4   :  { %v583_v20 = vpop.f32.mrf.mxu2  ;;  %v611_v21 = vpop.f32.mrf.mxu3 }
 0x2a5   :  { %v662_v22 = vadd.f32 %v658_v19, %v3707_v11  ;;  %v612_v23 = vadd.f32 %v611_v21, %v583_v20 }
 0x2a7   :  { %v666_v25 = vmax.f32 %v662_v22, 0.0  ;;  %v650_v4 = vadd.f32 %v643_v17, %v612_v23 }
 0x2a9   :  { %v669_v26 = vpack.c.bf16 %v666_v25, %v665_v24  ;;  %v655_v27 = vadd.f32 %v652_v6, %v650_v4 }
 0x2ab   :  { %2997 = vmatmul.msk.bf16.vlgmr.msrb.gmra.mxu1 %vm254_vm7, %v669_v26  ;;  %v659_v34 = vmax.f32 %v655_v27, 0.0 }
 0x2ac   :  { %v585_v28 = vpop.f32.mrf.mxu2  ;;  %v613_v31 = vpop.f32.mrf.mxu3 }
 0x2ad   :  { %v614_v32 = vadd.f32 %v613_v31, %v585_v28  ;;  %v663_v37 = vadd.f32 %v659_v34, %v3712_v29  ;;  %v3260_v29 = vld [vmem:[%s4619_s9] ss:$0 sm:$0xff] }
 0x2af   :  { %v651_v35 = vadd.f32 %v645_v33, %v614_v32  ;;  %v667_v38 = vmax.f32 %v663_v37, 0.0 }
 0x2b1   :  { %v656_v10 = vadd.f32 %v652_v6, %v651_v35 }
 0x2b3   :  { %v660_v36 = vmax.f32 %v656_v10, 0.0 }
 0x2b5   :  { %v664_v11 = vadd.f32 %v660_v36, %v3714_v30 }
 0x2b7   :  { %v668_v39 = vmax.f32 %v664_v11, 0.0 }
 0x2b9   :  { %v670_v40 = vpack.c.bf16 %v668_v39, %v667_v38 }
 0x2bb   :  { %2998 = vmatmul.msk.bf16.gmra.mxu1 %vm254_vm7, %v670_v40 }
 0x328   :  { %v694_v43 = vpop.f32.mrf.mxu1 }
 0x329   :  { %v695_v30 = vadd.f32 %v3260_v29, %v694_v43 }
 0x32b   :  { %v3831_v48 = vadd.f32 %v704_v44, %v695_v30 }
 0x330   :  { %v696_v45 = vpop.f32.mrf.mxu1 }
 0x331   :  { %v697_v47 = vadd.f32 %v3260_v29, %v696_v45 }
 0x333   :  { %v3833_v49 = vadd.f32 %v705_v46, %v697_v47 }
 0x335   :  { %v711_v51 = vpack.c.bf16 %v3833_v49, %v3831_v48 }
 0x337   :  { %3007 = vmatmul.msk.bf16.vlgmr.msrb.gmra.mxu2 %vm733_vm10, %v711_v51 }
 0x338   :  { %v699_v52 = vpop.f32.mrf.mxu1 }
 0x339   :  { %v700_v53 = vadd.f32 %v3260_v29, %v699_v52 }
 0x33b   :  { %v3838_v56 = vadd.f32 %v704_v44, %v700_v53 }
 0x340   :  { %v701_v54 = vpop.f32.mrf.mxu1 }
 0x341   :  { %v702_v55 = vadd.f32 %v3260_v29, %v701_v54 }
 0x343   :  { %v3840_v57 = vadd.f32 %v705_v46, %v702_v55 }
 0x345   :  { %v712_v58 = vpack.c.bf16 %v3840_v57, %v3838_v56 }
 0x347   :  { %3008 = vmatmul.msk.bf16.gmra.mxu2 %vm733_vm10, %v712_v58 }
 0x3ba   :  { %v749_v59 = vpop.f32.mrf.mxu2 }
 0x3bb   :  { %v750_v61 = vadd.f32 %v3261_v60, %v749_v59 }
 0x3bd   :  { %v759_v63 = vpack.c.bf16 %v750_v61, %v750_v61 }
 0x3bf   :  { %v765_v2 = vunpack.c.l.b16 %v759_v63 }
 0x3c2   :  { %v751_v62 = vpop.f32.mrf.mxu2 }
 0x3c3   :  { %v752_v0 = vadd.f32 %v3261_v60, %v751_v62 }
 0x3c5   :  { %v760_v1 = vpack.c.bf16 %v752_v0, %v752_v0 }
 0x3c7   :  { %v766_v5 = vunpack.c.l.b16 %v760_v1 }
 0x3c9   :  { %v3848_v6 = vpack.c.b16 %v766_v5, %v765_v2 }
 0x3ca   :  { %v754_v7 = vpop.f32.mrf.mxu2 }
 0x3cb   :  { %922 = vrot.lane.b32.xlu1 %v3848_v6, %s3454_s25  ;;  %768 = vrot.lane.b32.xlu0 %v3848_v6, %s3455_s3  ;;  %v755_v8 = vadd.f32 %v3261_v60, %v754_v7 }
 0x3cd   :  { %v761_v9 = vpack.c.bf16 %v755_v8, %v755_v8 }
 0x3cf   :  { %v792_v15 = vunpack.c.l.b16 %v761_v9 }
 0x3d2   :  { %v756_v50 = vpop.f32.mrf.mxu2 }
 0x3d3   :  { %v757_v12 = vadd.f32 %v3261_v60, %v756_v50  ;;  %920 = vrot.lane.b32.xlu1 %v3848_v6, %s3456_s26 }
 0x3d5   :  { %v762_v13 = vpack.c.bf16 %v757_v12, %v757_v12 }
 0x3d7   :  { %v793_v16 = vunpack.c.l.b16 %v762_v13 }
 0x3d9   :  { %v3856_v17 = vpack.c.b16 %v793_v16, %v792_v15 }
 0x3db   :  { %946 = vrot.lane.b32.xlu2 %v3856_v17, %s3454_s25  ;;  %1070 = vrot.lane.b32.xlu1 %v3848_v6, %s3457_s27 }
 0x3dc   :  { %795 = vrot.lane.b32.xlu0 %v3856_v17, %s3455_s3 }
 0x3e3   :  { %1072 = vrot.lane.b32.xlu2 %v3848_v6, %s3458_s28  ;;  %1094 = vrot.lane.b32.xlu1 %v3856_v17, %s3457_s27 }
 0x3e4   :  { %944 = vrot.lane.b32.xlu0 %v3856_v17, %s3456_s26 }
 0x3eb   :  { %1096 = vrot.lane.b32.xlu2 %v3856_v17, %s3458_s28  ;;  %1244 = vrot.lane.b32.xlu1 %v3856_v17, %s3459_s4 }
 0x3ec   :  { %1222 = vrot.lane.b32.xlu0 %v3848_v6, %s3460_s29 }
 0x3f3   :  { %1220 = vrot.lane.b32.xlu2 %v3848_v6, %s3459_s4  ;;  %875 = vrot.lane.b32.xlu1 %v3848_v6, %s3461_s6 }
 0x3f4   :  { %1246 = vrot.lane.b32.xlu0 %v3856_v17, %s3460_s29 }
 0x3fb   :  { %900 = vrot.lane.b32.xlu2 %v3856_v17, %s3461_s6 }
 0x3fc   :  { %1025 = vrot.lane.b32.xlu0 %v3848_v6, %s3462_s7 }
 0x435   :  { %v947_v18 = vpop.permute.xlu2 %946 }
 0x436   :  { %v952_v32 = vsel %vm254_vm7, %v947_v18, 0 }
 0x43d   :  { %v1073_v19 = vpop.permute.xlu2 %1072  ;;  %v923_v20 = vpop.permute.xlu1 %922 }
 0x43e   :  { %v1078_v21 = vsel %vm254_vm7, %v1073_v19, 0  ;;  %v928_v22 = vsel %vm254_vm7, %v923_v20, 0  ;;  %v769_v23 = vpop.permute.xlu0 %768 }
 0x43f   :  { %v774_v24 = vsel %vm254_vm7, %v769_v23, 0  ;;  %937 = vmatpush.bf16.xpose.msra.mxu2 %v928_v22 }
 0x440   :  { %783 = vmatpush.bf16.xpose.msrb.mxu3 %v774_v24 }
 0x445   :  { %v1097_v25 = vpop.permute.xlu2 %1096  ;;  %v921_v4 = vpop.permute.xlu1 %920 }
 0x446   :  { %3013 = vmatmul.msk.bf16.vlgmr.msra.gmra.mxu2 %vm254_vm7, %v921_v4  ;;  %v1102_v10 = vsel %vm254_vm7, %v1097_v25, 0 }
 0x447   :  { %1087 = vmatpush.bf16.xpose.msrb.mxu2 %v1078_v21  ;;  %3009 = vmatmul.msk.bf16.vlgmr.msrb.gmra.mxu3 %vm254_vm7, %v3848_v6 }
 0x44d   :  { %v1221_v26 = vpop.permute.xlu2 %1220  ;;  %v1071_v27 = vpop.permute.xlu1 %1070 }
 0x44e   :  { %v796_v28 = vpop.permute.xlu0 %795 }
 0x44f   :  { %v801_v31 = vsel %vm254_vm7, %v796_v28, 0 }
 0x450   :  { %810 = vmatpush.bf16.xpose.msra.mxu3 %v801_v31 }
 0x455   :  { %v901_v33 = vpop.permute.xlu2 %900  ;;  %v1095_v34 = vpop.permute.xlu1 %1094 }
 0x456   :  { %v945_v35 = vpop.permute.xlu0 %944  ;;  %913 = vmatpush.bf16.msra.mxu1 %v901_v33  ;;  %3017 = vmatmul.msk.bf16.vlgmr.msrb.gmra.mxu2 %vm254_vm7, %v1071_v27 }
 0x457   :  { %3010 = vmatmul.msk.bf16.vlgmr.msra.gmra.mxu3 %vm254_vm7, %v3856_v17 }
 0x458   :  { %961 = vmatpush.bf16.xpose.msrb.mxu3 %v952_v32 }
 0x45d   :  { %v1245_v36 = vpop.permute.xlu1 %1244 }
 0x45e   :  { %v1223_v37 = vpop.permute.xlu0 %1222 }
 0x45f   :  { %v1228_v11 = vsel %vm254_vm7, %v1223_v37, 0 }
 0x460   :  { %1111 = vmatpush.bf16.xpose.msra.mxu3 %v1102_v10  ;;  %1237 = vmatpush.bf16.xpose.msra.mxu2 %v1228_v11 }
 0x465   :  { %v876_v38 = vpop.permute.xlu1 %875 }
 0x466   :  { %v1247_v39 = vpop.permute.xlu0 %1246  ;;  %888 = vmatpush.bf16.msra.mxu0 %v876_v38 }
 0x467   :  { %v1252_v40 = vsel %vm254_vm7, %v1247_v39, 0  ;;  %3014 = vmatmul.msk.bf16.vlgmr.msrb.gmra.mxu3 %vm254_vm7, %v945_v35  ;;  %3021 = vmatmul.msk.bf16.vlgmr.msra.gmra.mxu2 %vm254_vm7, %v1221_v26 }
 0x468   :  { %1261 = vmatpush.bf16.xpose.msrb.mxu3 %v1252_v40 }
 0x46e   :  { %v1026_v41 = vpop.permute.xlu0 %1025 }
 0x46f   :  { %1038 = vmatpush.bf16.msrb.mxu0 %v1026_v41 }
 0x477   :  { %3018 = vmatmul.msk.bf16.vlgmr.msra.gmra.mxu3 %vm254_vm7, %v1095_v34 }
 0x487   :  { %3022 = vmatmul.msk.bf16.vlgmr.msrb.gmra.mxu3 %vm254_vm7, %v1245_v36 }
 0x4c9   :  { %v939_v42 = vpop.f32.mrf.mxu2 }
 0x4ca   :  { %v785_v43 = vpop.f32.mrf.mxu3  ;;  %v3908_v44 = vmul.f32 0.35355338, %v939_v42 }
 0x4cb   :  { %v3904_v29 = vmul.f32 0.35355338, %v785_v43 }
 0x4cc   :  { %v972_v51 = vsel %vm821_vm11, %v3908_v44, -inf }
 0x4cd   :  { %v822_v30 = vsel %vm821_vm11, %v3904_v29, -inf }
 0x4ce   :  { %823 = vmax.xlane.f32.xlu2 %v822_v30 }
 0x4d1   :  { %v941_v45 = vpop.f32.mrf.mxu2 }
 0x4d2   :  { %v787_v46 = vpop.f32.mrf.mxu3  ;;  %v3916_v53 = vmul.f32 0.35355338, %v941_v45 }
 0x4d3   :  { %v3910_v47 = vmul.f32 0.35355338, %v787_v46 }
 0x4d4   :  { %v975_v59 = vsel %vm821_vm11, %v3916_v53, -inf }
 0x4d5   :  { %v825_v52 = vsel %vm821_vm11, %v3910_v47, -inf }
 0x4d6   :  { %973 = vmax.xlane.f32.xlu2 %v972_v51  ;;  %826 = vmax.xlane.f32.xlu0 %v825_v52 }
 0x4d9   :  { %v1089_v54 = vpop.f32.mrf.mxu2 }
 0x4da   :  { %v812_v55 = vpop.f32.mrf.mxu3  ;;  %v3924_v61 = vmul.f32 0.35355338, %v1089_v54 }
 0x4db   :  { %v3918_v58 = vmul.f32 0.35355338, %v812_v55 }
 0x4dc   :  { %v1122_v5 = vsel %vm821_vm11, %v3924_v61, -inf }
 0x4dd   :  { %v828_v60 = vsel %vm821_vm11, %v3918_v58, -inf }
 0x4de   :  { %976 = vmax.xlane.f32.xlu0 %v975_v59  ;;  %829 = vmax.xlane.f32.xlu1 %v828_v60 }
 0x4e1   :  { %v1091_v62 = vpop.f32.mrf.mxu2 }
 0x4e2   :  { %v814_v63 = vpop.f32.mrf.mxu3  ;;  %v3926_v0 = vmul.f32 0.35355338, %v1091_v62 }
 0x4e3   :  { %v3928_v1 = vmul.f32 0.35355338, %v814_v63 }
 0x4e4   :  { %v1125_v2 = vsel %vm821_vm11, %v3926_v0, -inf }
 0x4e5   :  { %v831_v7 = vsel %vm821_vm11, %v3928_v1, -inf }
 0x4e6   :  { %1123 = vmax.xlane.f32.xlu0 %v1122_v5  ;;  %1126 = vmax.xlane.f32.xlu1 %v1125_v2 }
 0x4e7   :  { %832 = vmax.xlane.f32.xlu2 %v831_v7 }
 0x4ea   :  { %v963_v8 = vpop.f32.mrf.mxu3  ;;  %v1239_v9 = vpop.f32.mrf.mxu2 }
 0x4eb   :  { %v3936_v50 = vmul.f32 0.35355338, %v963_v8  ;;  %v3940_v13 = vmul.f32 0.35355338, %v1239_v9 }
 0x4ed   :  { %v978_v12 = vsel %vm821_vm11, %v3936_v50, -inf  ;;  %v1272_v19 = vsel %vm821_vm11, %v3940_v13, -inf }
 0x4ee   :  { %979 = vmax.xlane.f32.xlu1 %v978_v12 }
 0x4f2   :  { %v965_v15 = vpop.f32.mrf.mxu3  ;;  %v1241_v20 = vpop.f32.mrf.mxu2 }
 0x4f3   :  { %v3942_v16 = vmul.f32 0.35355338, %v965_v15  ;;  %v1269_v21 = vmul.f32 0.35355338, %v1241_v20 }
 0x4f5   :  { %v981_v18 = vsel %vm821_vm11, %v3942_v16, -inf  ;;  %v1275_v23 = vsel %vm821_vm11, %v1269_v21, -inf }
 0x4f6   :  { %982 = vmax.xlane.f32.xlu2 %v981_v18  ;;  %1273 = vmax.xlane.f32.xlu1 %v1272_v19 }
 0x4fa   :  { %v1113_v22 = vpop.f32.mrf.mxu3 }
 0x4fb   :  { %v3949_v24 = vmul.f32 0.35355338, %v1113_v22 }
 0x4fd   :  { %v1128_v27 = vsel %vm821_vm11, %v3949_v24, -inf }
 0x4fe   :  { %1276 = vmax.xlane.f32.xlu2 %v1275_v23 }
 0x502   :  { %v1115_v25 = vpop.f32.mrf.mxu3 }
 0x503   :  { %v3951_v4 = vmul.f32 0.35355338, %v1115_v25 }
 0x505   :  { %v1131_v26 = vsel %vm821_vm11, %v3951_v4, -inf }
 0x506   :  { %1132 = vmax.xlane.f32.xlu0 %v1131_v26  ;;  %1129 = vmax.xlane.f32.xlu2 %v1128_v27 }
 0x50a   :  { %v1263_v28 = vpop.f32.mrf.mxu3 }
 0x50b   :  { %v3957_v31 = vmul.f32 0.35355338, %v1263_v28 }
 0x50d   :  { %v1278_v32 = vsel %vm821_vm11, %v3957_v31, -inf }
 0x50e   :  { %1279 = vmax.xlane.f32.xlu2 %v1278_v32 }
 0x512   :  { %v1265_v33 = vpop.f32.mrf.mxu3 }
 0x513   :  { %v3961_v34 = vmul.f32 0.35355338, %v1265_v33 }
 0x515   :  { %v1281_v35 = vsel %vm821_vm11, %v3961_v34, -inf }
 0x516   :  { %1282 = vmax.xlane.f32.xlu0 %v1281_v35 }
 0x541   :  { %v824_v10 = vpop.xlane.xlu2 %823 }
 0x542   :  { %v834_v36 = vsub.f32 %v3904_v29, %v824_v10 }
 0x544   :  { %v838_v37 = vmul.f32 1.442695, %v834_v36 }
 0x546   :  { %3266 = vpow2.f32 %v838_v37 }
 0x549   :  { %v974_v11 = vpop.xlane.xlu2 %973  ;;  %v827_v38 = vpop.xlane.xlu0 %826 }
 0x54a   :  { %v984_v39 = vsub.f32 %v3908_v44, %v974_v11  ;;  %v835_v40 = vsub.f32 %v3910_v47, %v827_v38 }
 0x54c   :  { %v3968_v41 = vpop.eup %3266  ;;  %v988_v42 = vmul.f32 1.442695, %v984_v39  ;;  %v840_v43 = vmul.f32 1.442695, %v835_v40 }
 0x54d   :  { %v846_v30 = vsel %vm821_vm11, %v3968_v41, 0.0 }
 0x54e   :  { %3268 = vpow2.f32 %v988_v42  ;;  %847 = vadd.xlane.f32.xlu0 %v846_v30 }
 0x54f   :  { %3270 = vpow2.f32 %v840_v43 }
 0x551   :  { %v830_v45 = vpop.xlane.xlu1 %829  ;;  %v977_v29 = vpop.xlane.xlu0 %976 }
 0x552   :  { %v836_v46 = vsub.f32 %v3918_v58, %v830_v45  ;;  %v985_v18 = vsub.f32 %v3916_v53, %v977_v29 }
 0x554   :  { %v3973_v51 = vpop.eup %3268  ;;  %v842_v52 = vmul.f32 1.442695, %v836_v46  ;;  %v990_v26 = vmul.f32 1.442695, %v985_v18 }
 0x555   :  { %v3975_v44 = vpop.eup %3270  ;;  %v996_v47 = vsel %vm821_vm11, %v3973_v51, 0.0 }
 0x556   :  { %3272 = vpow2.f32 %v842_v52  ;;  %997 = vadd.xlane.f32.xlu2 %v996_v47  ;;  %v849_v54 = vsel %vm821_vm11, %v3975_v44, 0.0 }
 0x557   :  { %850 = vadd.xlane.f32.xlu1 %v849_v54 }
 0x559   :  { %v1124_v55 = vpop.xlane.xlu0 %1123  ;;  %v1127_v27 = vpop.xlane.xlu1 %1126 }
 0x55a   :  { %v1134_v59 = vsub.f32 %v3924_v61, %v1124_v55  ;;  %v833_v63 = vpop.xlane.xlu2 %832  ;;  %v1135_v33 = vsub.f32 %v3926_v0, %v1127_v27 }
 0x55b   :  { %v837_v28 = vsub.f32 %v3928_v1, %v833_v63 }
 0x55c   :  { %v3982_v60 = vpop.eup %3272  ;;  %v1138_v58 = vmul.f32 1.442695, %v1134_v59  ;;  %v1140_v37 = vmul.f32 1.442695, %v1135_v33 }
 0x55d   :  { %v852_v62 = vsel %vm821_vm11, %v3982_v60, 0.0 }
 0x55e   :  { %853 = vadd.xlane.f32.xlu2 %v852_v62  ;;  %3274 = vpow2.f32 %v1138_v58 }
 0x561   :  { %v980_v36 = vpop.xlane.xlu1 %979 }
 0x562   :  { %1175 = vrot.lane.b32.xlu0 %v3848_v6, %s3463_s8  ;;  %v986_v0 = vsub.f32 %v3936_v50, %v980_v36 }
 0x564   :  { %v3988_v2 = vpop.eup %3274  ;;  %v992_v40 = vmul.f32 1.442695, %v986_v0 }
 0x565   :  { %v1146_v5 = vsel %vm821_vm11, %v3988_v2, 0.0 }
 0x566   :  { %1147 = vadd.xlane.f32.xlu2 %v1146_v5 }
 0x569   :  { %v983_v61 = vpop.xlane.xlu2 %982  ;;  %v1274_v42 = vpop.xlane.xlu1 %1273 }
 0x56a   :  { %v987_v10 = vsub.f32 %v3942_v16, %v983_v61  ;;  %v1284_v45 = vsub.f32 %v3940_v13, %v1274_v42 }
 0x56c   :  { %v994_v38 = vmul.f32 1.442695, %v987_v10  ;;  %v1288_v46 = vmul.f32 1.442695, %v1284_v45 }
 0x570   :  { %1050 = vrot.lane.b32.xlu1 %v3856_v17, %s3462_s7 }
 0x571   :  { %v1277_v7 = vpop.xlane.xlu2 %1276 }
 0x572   :  { %v1285_v8 = vsub.f32 %v1269_v21, %v1277_v7 }
 0x574   :  { %v1290_v9 = vmul.f32 1.442695, %v1285_v8 }
 0x576   :  { %3276 = vpow2.f32 %v1290_v9 }
 0x579   :  { %v1130_v12 = vpop.xlane.xlu2 %1129  ;;  %v1133_v15 = vpop.xlane.xlu0 %1132 }
 0x57a   :  { %v1136_v19 = vsub.f32 %v3949_v24, %v1130_v12  ;;  %v1137_v23 = vsub.f32 %v3951_v4, %v1133_v15  ;;  %v844_v24 = vmul.f32 1.442695, %v837_v28 }
 0x57c   :  { %v3996_v20 = vpop.eup %3276  ;;  %v1142_v22 = vmul.f32 1.442695, %v1136_v19  ;;  %v1144_v21 = vmul.f32 1.442695, %v1137_v23 }
 0x57d   :  { %v1299_v25 = vsel %vm821_vm11, %v3996_v20, 0.0 }
 0x57e   :  { %3278 = vpow2.f32 %v1142_v22  ;;  %1300 = vadd.xlane.f32.xlu2 %v1299_v25 }
 0x57f   :  { %3280 = vpow2.f32 %v990_v26 }
 0x580   :  { %3282 = vpow2.f32 %v1144_v21 }
 0x581   :  { %3284 = vpow2.f32 %v844_v24  ;;  %v1280_v63 = vpop.xlane.xlu2 %1279 }
 0x582   :  { %3286 = vpow2.f32 %v1140_v37 }
 0x583   :  { %3288 = vpow2.f32 %v994_v38 }
 0x584   :  { %v4002_v32 = vpop.eup %3278  ;;  %3290 = vpow2.f32 %v992_v40 }
 0x585   :  { %v1152_v53 = vsel %vm821_vm11, %v4002_v32, 0.0  ;;  %v4006_v4 = vpop.eup %3280  ;;  %3292 = vpow2.f32 %v1288_v46 }
 0x586   :  { %1153 = vadd.xlane.f32.xlu2 %v1152_v53  ;;  %v4009_v35 = vpop.eup %3282  ;;  %v999_v1 = vsel %vm821_vm11, %v4006_v4, 0.0 }
 0x587   :  { %v1155_v11 = vsel %vm821_vm11, %v4009_v35, 0.0  ;;  %v4016_v39 = vpop.eup %3284 }
 0x588   :  { %v855_v16 = vsel %vm821_vm11, %v4016_v39, 0.0  ;;  %v4021_v43 = vpop.eup %3286 }
 0x589   :  { %v4023_v30 = vpop.eup %3288  ;;  %v1149_v29 = vsel %vm821_vm11, %v4021_v43, 0.0  ;;  %v1283_v55 = vpop.xlane.xlu0 %1282 }
 0x58a   :  { %v1005_v50 = vsel %vm821_vm11, %v4023_v30, 0.0  ;;  %v4030_v52 = vpop.eup %3290  ;;  %v1287_v59 = vsub.f32 %v3961_v34, %v1283_v55 }
 0x58b   :  { %v1002_v47 = vsel %vm821_vm11, %v4030_v52, 0.0  ;;  %v4034_v54 = vpop.eup %3292 }
 0x58c   :  { %1000 = vadd.xlane.f32.xlu0 %v999_v1  ;;  %v1296_v13 = vsel %vm821_vm11, %v4034_v54, 0.0  ;;  %v1294_v58 = vmul.f32 1.442695, %v1287_v59 }
 0x58e   :  { %1156 = vadd.xlane.f32.xlu2 %v1155_v11  ;;  %3294 = vpow2.f32 %v1294_v58 }
 0x594   :  { %856 = vadd.xlane.f32.xlu0 %v855_v16  ;;  %v4046_v5 = vpop.eup %3294 }
 0x595   :  { %v1305_v34 = vsel %vm821_vm11, %v4046_v5, 0.0 }
 0x59a   :  { %1150 = vadd.xlane.f32.xlu1 %v1149_v29 }
 0x59c   :  { %1006 = vadd.xlane.f32.xlu0 %v1005_v50 }
 0x5a2   :  { %1003 = vadd.xlane.f32.xlu1 %v1002_v47 }
 0x5a6   :  { %1325 = vrot.lane.b32.xlu2 %v3848_v6, %s3464_s30  ;;  %v1286_v6 = vsub.f32 %v3957_v31, %v1280_v63 }
 0x5a8   :  { %v1292_v8 = vmul.f32 1.442695, %v1286_v6 }
 0x5aa   :  { %1297 = vadd.xlane.f32.xlu1 %v1296_v13 }
 0x5b0   :  { %1200 = vrot.lane.b32.xlu0 %v3856_v17, %s3463_s8 }
 0x5c1   :  { %v848_v62 = vpop.xlane.xlu0 %847 }
 0x5c2   :  { %3296 = vrcp.f32 %v848_v62 }
 0x5c3   :  { %1350 = vrot.lane.b32.xlu1 %v3856_v17, %s3464_s30 }
 0x5c8   :  { %v3297_v7 = vpop.eup %3296 }
 0x5c9   :  { %v862_v9 = vmul.f32 %v3297_v7, %v3968_v41  ;;  %v998_v19 = vpop.xlane.xlu2 %997 }
 0x5ca   :  { %v851_v61 = vpop.xlane.xlu1 %850 }
 0x5cb   :  { %3298 = vrcp.f32 %v851_v61  ;;  %v866_v17 = vpack.c.bf16 %v862_v9, %v862_v9 }
 0x5cc   :  { %3300 = vpow2.f32 %v1292_v8 }
 0x5cd   :  { %v872_v22 = vunpack.c.l.b16 %v866_v17  ;;  %3302 = vrcp.f32 %v998_v19 }
 0x5cf   :  { %1306 = vadd.xlane.f32.xlu2 %v1305_v34 }
 0x5d1   :  { %v3299_v12 = vpop.eup %3298  ;;  %v854_v21 = vpop.xlane.xlu2 %853 }
 0x5d2   :  { %v863_v15 = vmul.f32 %v3299_v12, %v3975_v44  ;;  %v4052_v31 = vpop.eup %3300 }
 0x5d3   :  { %v1302_v26 = vsel %vm821_vm11, %v4052_v31, 0.0  ;;  %v3303_v33 = vpop.eup %3302 }
 0x5d4   :  { %v867_v18 = vpack.c.bf16 %v863_v15, %v863_v15  ;;  %v1176_v41 = vpop.permute.xlu0 %1175  ;;  %v1012_v10 = vmul.f32 %v3303_v33, %v3973_v51 }
 0x5d6   :  { %v873_v23 = vunpack.c.l.b16 %v867_v18  ;;  %v1016_v37 = vpack.c.bf16 %v1012_v10, %v1012_v10 }
 0x5d8   :  { %v874_v25 = vpack.c.b16 %v873_v23, %v872_v22  ;;  %v1022_v40 = vunpack.c.l.b16 %v1016_v37 }
 0x5d9   :  { %v1148_v28 = vpop.xlane.xlu2 %1147 }
 0x5da   :  { %3011 = vmatmul.msk.bf16.vlgmr.msra.gmra.mxu0 %vm821_vm11, %v874_v25  ;;  %1303 = vadd.xlane.f32.xlu0 %v1302_v26 }
 0x5db   :  { %1188 = vmatpush.bf16.msra.mxu0 %v1176_v41 }
 0x5e2   :  { %v1051_v27 = vpop.permute.xlu1 %1050 }
 0x5e3   :  { %1063 = vmatpush.bf16.msrb.mxu1 %v1051_v27 }
 0x5f1   :  { %v1301_v44 = vpop.xlane.xlu2 %1300 }
 0x5f9   :  { %v1154_v53 = vpop.xlane.xlu2 %1153 }
 0x5ff   :  { %v1001_v24 = vpop.xlane.xlu0 %1000 }
 0x600   :  { %3304 = vrcp.f32 %v1001_v24 }
 0x601   :  { %3306 = vrcp.f32 %v854_v21  ;;  %v1157_v36 = vpop.xlane.xlu2 %1156 }
 0x606   :  { %v3305_v1 = vpop.eup %3304 }
 0x607   :  { %v1013_v11 = vmul.f32 %v3305_v1, %v4006_v4  ;;  %v857_v38 = vpop.xlane.xlu0 %856  ;;  %v3307_v0 = vpop.eup %3306 }
 0x608   :  { %3308 = vrcp.f32 %v857_v38  ;;  %v864_v42 = vmul.f32 %v3307_v0, %v3982_v60 }
 0x609   :  { %v1017_v16 = vpack.c.bf16 %v1013_v11, %v1013_v11  ;;  %3310 = vrcp.f32 %v1148_v28  ;;  %v1326_v13 = vpop.permute.xlu2 %1325 }
 0x60a   :  { %v868_v47 = vpack.c.bf16 %v864_v42, %v864_v42 }
 0x60b   :  { %v1023_v45 = vunpack.c.l.b16 %v1017_v16 }
 0x60c   :  { %v897_v58 = vunpack.c.l.b16 %v868_v47 }
 0x60d   :  { %v1024_v29 = vpack.c.b16 %v1023_v45, %v1022_v40  ;;  %v1151_v50 = vpop.xlane.xlu1 %1150 }
 0x60e   :  { %v3309_v46 = vpop.eup %3308  ;;  %3312 = vrcp.f32 %v1151_v50 }
 0x60f   :  { %v865_v51 = vmul.f32 %v3309_v46, %v4016_v39  ;;  %3015 = vmatmul.msk.bf16.vlgmr.msrb.gmra.mxu0 %vm821_vm11, %v1024_v29  ;;  %v1007_v4 = vpop.xlane.xlu0 %1006  ;;  %v3311_v55 = vpop.eup %3310 }
 0x610   :  { %1338 = vmatpush.bf16.msrb.mxu0 %v1326_v13  ;;  %3314 = vrcp.f32 %v1007_v4  ;;  %v1162_v62 = vmul.f32 %v3311_v55, %v3988_v2 }
 0x611   :  { %v869_v59 = vpack.c.bf16 %v865_v51, %v865_v51 }
 0x612   :  { %v1166_v8 = vpack.c.bf16 %v1162_v62, %v1162_v62 }
 0x613   :  { %v898_v60 = vunpack.c.l.b16 %v869_v59 }
 0x614   :  { %v3313_v63 = vpop.eup %3312  ;;  %v1172_v12 = vunpack.c.l.b16 %v1166_v8 }
 0x615   :  { %v899_v6 = vpack.c.b16 %v898_v60, %v897_v58  ;;  %v1163_v61 = vmul.f32 %v3313_v63, %v4021_v43  ;;  %v1004_v7 = vpop.xlane.xlu1 %1003 }
 0x616   :  { %3316 = vrcp.f32 %v1004_v7  ;;  %v3315_v9 = vpop.eup %3314 }
 0x617   :  { %v1167_v39 = vpack.c.bf16 %v1163_v61, %v1163_v61  ;;  %3012 = vmatmul.msk.bf16.vlgmr.msra.gmra.mxu1 %vm821_vm11, %v899_v6  ;;  %3318 = vrcp.f32 %v1301_v44  ;;  %v1015_v17 = vmul.f32 %v3315_v9, %v4023_v30 }
 0x619   :  { %v1173_v34 = vunpack.c.l.b16 %v1167_v39  ;;  %v1019_v22 = vpack.c.bf16 %v1015_v17, %v1015_v17 }
 0x61b   :  { %v1174_v18 = vpack.c.b16 %v1173_v34, %v1172_v12  ;;  %v1048_v21 = vunpack.c.l.b16 %v1019_v22  ;;  %v3164_v22 = vld [vmem:[%s4623_s13 + $0x8] sm:$0xff] }
 0x61c   :  { %v3317_v15 = vpop.eup %3316  ;;  %1462 = vmatpush.bf16.msrb.mxu2 %v3164_v22 }
 0x61d   :  { %v1014_v2 = vmul.f32 %v3317_v15, %v4030_v52  ;;  %v1298_v19 = vpop.xlane.xlu1 %1297  ;;  %v3319_v23 = vpop.eup %3318 }
 0x61e   :  { %3320 = vrcp.f32 %v1298_v19  ;;  %v1313_v41 = vmul.f32 %v3319_v23, %v3996_v20 }
 0x61f   :  { %v1018_v43 = vpack.c.bf16 %v1014_v2, %v1014_v2  ;;  %3019 = vmatmul.msk.bf16.vlgmr.msra.gmra.mxu0 %vm821_vm11, %v1174_v18  ;;  %3322 = vrcp.f32 %v1157_v36 }
 0x620   :  { %3324 = vrcp.f32 %v1154_v53  ;;  %v1317_v44 = vpack.c.bf16 %v1313_v41, %v1313_v41 }
 0x621   :  { %v1047_v25 = vunpack.c.l.b16 %v1018_v43  ;;  %v3163_v43 = vld [vmem:[%s4623_s13] sm:$0xff] }
 0x622   :  { %v1201_v26 = vpop.permute.xlu0 %1200  ;;  %v1323_v1 = vunpack.c.l.b16 %v1317_v44  ;;  %1463 = vmatpush.bf16.msrb.mxu2 %v3163_v43 }
 0x623   :  { %1213 = vmatpush.bf16.msra.mxu1 %v1201_v26  ;;  %v1049_v27 = vpack.c.b16 %v1048_v21, %v1047_v25 }
 0x624   :  { %v3321_v30 = vpop.eup %3320 }
 0x625   :  { %v1312_v28 = vmul.f32 %v3321_v30, %v4034_v54  ;;  %v3323_v52 = vpop.eup %3322 }
 0x626   :  { %v3325_v33 = vpop.eup %3324  ;;  %v1165_v10 = vmul.f32 %v3323_v52, %v4009_v35 }
 0x627   :  { %v1316_v24 = vpack.c.bf16 %v1312_v28, %v1312_v28  ;;  %3016 = vmatmul.msk.bf16.vlgmr.msrb.gmra.mxu1 %vm821_vm11, %v1049_v27  ;;  %v1164_v53 = vmul.f32 %v3325_v33, %v4002_v32 }
 0x628   :  { %v1169_v37 = vpack.c.bf16 %v1165_v10, %v1165_v10 }
 0x629   :  { %v1322_v36 = vunpack.c.l.b16 %v1316_v24  ;;  %v1168_v11 = vpack.c.bf16 %v1164_v53, %v1164_v53 }
 0x62a   :  { %v1198_v38 = vunpack.c.l.b16 %v1169_v37 }
 0x62b   :  { %v1324_v20 = vpack.c.b16 %v1323_v1, %v1322_v36  ;;  %v1197_v0 = vunpack.c.l.b16 %v1168_v11 }
 0x62d   :  { %v1199_v54 = vpack.c.b16 %v1198_v38, %v1197_v0 }
 0x62f   :  { %3023 = vmatmul.msk.bf16.vlgmr.msrb.gmra.mxu0 %vm821_vm11, %v1324_v20 }
 0x635   :  { %v1351_v16 = vpop.permute.xlu1 %1350 }
 0x636   :  { %1363 = vmatpush.bf16.msrb.mxu1 %v1351_v16 }
 0x637   :  { %3020 = vmatmul.msk.bf16.vlgmr.msra.gmra.mxu1 %vm821_vm11, %v1199_v54 }
 0x642   :  { %v1307_v40 = vpop.xlane.xlu2 %1306 }
 0x643   :  { %3326 = vrcp.f32 %v1307_v40 }
 0x649   :  { %v3327_v35 = vpop.eup %3326 }
 0x64a   :  { %v1315_v45 = vmul.f32 %v3327_v35, %v4046_v5 }
 0x64c   :  { %v1319_v29 = vpack.c.bf16 %v1315_v45, %v1315_v45 }
 0x64d   :  { %v1304_v42 = vpop.xlane.xlu0 %1303 }
 0x64e   :  { %3328 = vrcp.f32 %v1304_v42  ;;  %v1348_v47 = vunpack.c.l.b16 %v1319_v29 }
 0x654   :  { %v3329_v32 = vpop.eup %3328 }
 0x655   :  { %v1314_v50 = vmul.f32 %v3329_v32, %v4052_v31 }
 0x657   :  { %v1318_v46 = vpack.c.bf16 %v1314_v50, %v1314_v50  ;;  %v890_v4 = vpop.f32.mrf.mxu0 }
 0x659   :  { %v1347_v51 = vunpack.c.l.b16 %v1318_v46 }
 0x65b   :  { %v1349_v13 = vpack.c.b16 %v1348_v47, %v1347_v51  ;;  %v4107_v51 = vld [vmem:[%s4627_s17] sm:$0x3f] }
 0x65d   :  { %3024 = vmatmul.msk.bf16.vlgmr.msrb.gmra.mxu1 %vm821_vm11, %v1349_v13  ;;  %v1437_v13 = vperm.slane %v4107_v51, 0 }
 0x65f   :  { %v892_v55 = vpop.f32.mrf.mxu0 }
 0x68c   :  { %v1040_v59 = vpop.f32.mrf.mxu0 }
 0x694   :  { %v915_v58 = vpop.f32.mrf.mxu1  ;;  %v1042_v62 = vpop.f32.mrf.mxu0 }
 0x695   :  { %v3200_v60 = vpack.i.bf16 %v1042_v62, %v1040_v59 }
 0x697   :  { %3201 = vrot.lane.b32.xlu0 %v3200_v60, %s3465_s0 }
 0x69c   :  { %v917_v5 = vpop.f32.mrf.mxu1  ;;  %v1190_v63 = vpop.f32.mrf.mxu0 }
 0x6a4   :  { %v1065_v6 = vpop.f32.mrf.mxu1  ;;  %v1192_v61 = vpop.f32.mrf.mxu0 }
 0x6a5   :  { %v3205_v31 = vpack.i.bf16 %v1192_v61, %v1190_v63 }
 0x6a7   :  { %3206 = vrot.lane.b32.xlu1 %v3205_v31, %s4636_s21 }
 0x6ac   :  { %v1067_v7 = vpop.f32.mrf.mxu1  ;;  %v1340_v8 = vpop.f32.mrf.mxu0 }
 0x6ad   :  { %v3215_v39 = vpack.i.bf16 %v1067_v7, %v1065_v6 }
 0x6af   :  { %3216 = vrot.lane.b32.xlu0 %v3215_v39, %s3465_s0 }
 0x6b4   :  { %v1215_v9 = vpop.f32.mrf.mxu1  ;;  %v1342_v34 = vpop.f32.mrf.mxu0 }
 0x6b5   :  { %v3210_v12 = vpack.i.bf16 %v1342_v34, %v1340_v8  ;;  %v3468_v34 = vmov 32.0  }
 0x6b6   :  { %3330 = vrcp.f32 %v3468_v34 }
 0x6b7   :  { %3211 = vrot.lane.b32.xlu1 %v3210_v12, %s4634_s1 }
 0x6bc   :  { %v1217_v17 = vpop.f32.mrf.mxu1 }
 0x6bd   :  { %v3220_v15 = vpack.i.bf16 %v1217_v17, %v1215_v9 }
 0x6bf   :  { %3221 = vrot.lane.b32.xlu2 %v3220_v15, %s4636_s21 }
 0x6da   :  { %v1365_v18 = vpop.f32.mrf.mxu1 }
 0x6e2   :  { %v1367_v2 = vpop.f32.mrf.mxu1 }
 0x6e3   :  { %v3225_v19 = vpack.i.bf16 %v1367_v2, %v1365_v18 }
 0x6e5   :  { %3226 = vrot.lane.b32.xlu1 %v3225_v19, %s4634_s1 }
 0x709   :  { %v3202_v25 = vpop.permute.xlu0 %3201 }
 0x70a   :  { %v3204_v26 = vunpack.i.h.bf16 %v3202_v25  ;;  %v3203_v41 = vunpack.i.l.bf16 %v3202_v25 }
 0x70c   :  { %v1419_v28 = vsel %vm254_vm7, %v892_v55, %v3204_v26  ;;  %v1418_v52 = vsel %vm254_vm7, %v890_v4, %v3203_v41 }
 0x719   :  { %v3207_v23 = vpop.permute.xlu1 %3206  ;;  %v3222_v38 = vpop.permute.xlu2 %3221 }
 0x71a   :  { %v3209_v21 = vunpack.i.h.bf16 %v3207_v23  ;;  %v3208_v30 = vunpack.i.l.bf16 %v3207_v23  ;;  %v3224_v16 = vunpack.i.h.bf16 %v3222_v38  ;;  %v3223_v40 = vunpack.i.l.bf16 %v3222_v38  ;;  %v3165_v38 = vld [vmem:[%s4624_s14] sm:$0xff] }
 0x71c   :  { %v1422_v33 = vsel %vm821_vm11, %v1418_v52, %v3208_v30  ;;  %v1423_v10 = vsel %vm821_vm11, %v1419_v28, %v3209_v21 }
 0x721   :  { %v3217_v37 = vpop.permute.xlu0 %3216 }
 0x722   :  { %v3219_v20 = vunpack.i.h.bf16 %v3217_v37  ;;  %v3218_v11 = vunpack.i.l.bf16 %v3217_v37  ;;  %v3166_v37 = vld [vmem:[%s4624_s14 + $0x8] sm:$0xff] }
 0x723   :  { %1618 = vmatpush.bf16.msra.mxu3 %v3166_v37  ;;  %v3167_v37 = vld [vmem:[%s4626_s16] sm:$0xff] }
 0x724   :  { %v1421_v0 = vsel %vm254_vm7, %v917_v5, %v3219_v20  ;;  %v1420_v54 = vsel %vm254_vm7, %v915_v58, %v3218_v11 }
 0x725   :  { %v1424_v32 = vsel %vm821_vm11, %v1420_v54, %v3223_v40  ;;  %v1425_v29 = vsel %vm821_vm11, %v1421_v0, %v3224_v16 }
 0x727   :  { %1619 = vmatpush.bf16.msra.mxu3 %v3165_v38 }
 0x729   :  { %v3212_v27 = vpop.permute.xlu1 %3211 }
 0x72a   :  { %v3214_v44 = vunpack.i.h.bf16 %v3212_v27  ;;  %v3213_v24 = vunpack.i.l.bf16 %v3212_v27 }
 0x72c   :  { %v1427_v36 = vsel %vm1426_vm12, %v1422_v33, %v3213_v24  ;;  %v1428_v1 = vsel %vm1426_vm12, %v1423_v10, %v3214_v44 }
 0x72d   :  { %v1431_v53 = vpack.c.bf16 %v1428_v1, %v1427_v36 }
 0x72f   :  { %3033 = vmatmul.msk.bf16.vlgmr.msrb.gmra.mxu2 %vm733_vm10, %v1431_v53 }
 0x757   :  { %v3227_v42 = vpop.permute.xlu1 %3226 }
 0x758   :  { %v3229_v35 = vunpack.i.h.bf16 %v3227_v42  ;;  %v3228_v45 = vunpack.i.l.bf16 %v3227_v42 }
 0x75a   :  { %v1429_v50 = vsel %vm1426_vm12, %v1424_v32, %v3228_v45  ;;  %v1430_v46 = vsel %vm1426_vm12, %v1425_v29, %v3229_v35 }
 0x75b   :  { %v1432_v47 = vpack.c.bf16 %v1430_v46, %v1429_v50 }
 0x75d   :  { %3034 = vmatmul.msk.bf16.gmra.mxu2 %vm733_vm10, %v1432_v47 }
 0x7b2   :  { %v1465_v4 = vpop.f32.mrf.mxu2 }
 0x7b3   :  { %v1466_v55 = vadd.f32 %v1465_v4, %v1437_v13 }
 0x7b5   :  { %v1475_v59 = vadd.f32 %v1466_v55, %v3831_v48 }
 0x7b7   :  { %v1479_v58 = vsel %vm733_vm10, %v1475_v59, 0.0 }
 0x7b8   :  { %1480 = vadd.xlane.f32.xlu0 %v1479_v58 }
 0x7ba   :  { %v1467_v62 = vpop.f32.mrf.mxu2 }
 0x7bb   :  { %v1468_v60 = vadd.f32 %v1467_v62, %v1437_v13 }
 0x7bd   :  { %v1476_v5 = vadd.f32 %v1468_v60, %v3833_v49  ;;  %v3331_v49 = vpop.eup %3330 }
 0x7be   :  { %v1492_v12 = vmul.f32 32.0, %v3331_v49  ;;  %vm1496_vm13 = vweird.f32 %v3331_v49 }
 0x7bf   :  { %v1482_v63 = vsel %vm733_vm10, %v1476_v5, 0.0 }
 0x7c0   :  { %1483 = vadd.xlane.f32.xlu1 %v1482_v63  ;;  %v1493_v17 = vsub.f32 1.0, %v1492_v12 }
 0x7c2   :  { %v1494_v15 = vmul.f32 %v3331_v49, %v1493_v17 }
 0x7c4   :  { %v1495_v18 = vadd.f32 %v3331_v49, %v1494_v15 }
 0x7c6   :  { %v4118_v2 = vsel %vm1496_vm13, %v3331_v49, %v1495_v18 }
 0x7e0   :  { %v1470_v6 = vpop.f32.mrf.mxu2 }
 0x7e1   :  { %v1471_v61 = vadd.f32 %v1470_v6, %v1437_v13 }
 0x7e3   :  { %v1477_v31 = vadd.f32 %v1471_v61, %v3838_v56 }
 0x7e5   :  { %v1485_v7 = vsel %vm733_vm10, %v1477_v31, 0.0 }
 0x7e6   :  { %1486 = vadd.xlane.f32.xlu2 %v1485_v7 }
 0x7e8   :  { %v1472_v8 = vpop.f32.mrf.mxu2 }
 0x7e9   :  { %v1473_v39 = vadd.f32 %v1472_v8, %v1437_v13 }
 0x7eb   :  { %v1478_v48 = vadd.f32 %v1473_v39, %v3840_v57 }
 0x7ed   :  { %v1488_v9 = vsel %vm733_vm10, %v1478_v48, 0.0 }
 0x7ee   :  { %1489 = vadd.xlane.f32.xlu0 %v1488_v9 }
 0x82b   :  { %v1481_v56 = vpop.xlane.xlu0 %1480 }
 0x82c   :  { %v1498_v19 = vmul.f32 %v4118_v2, %v1481_v56 }
 0x82e   :  { %v1502_v22 = vsub.f32 %v1475_v59, %v1498_v19  ;;  %v1574_v59 = vperm.slane %v4107_v51, 2 }
 0x830   :  { %v1506_v43 = vmul.f32 %v1502_v22, %v1502_v22 }
 0x832   :  { %v1510_v57 = vsel %vm733_vm10, %v1506_v43, 0.0 }
 0x833   :  { %v1484_v23 = vpop.xlane.xlu1 %1483  ;;  %1511 = vadd.xlane.f32.xlu1 %v1510_v57 }
 0x834   :  { %v1499_v25 = vmul.f32 %v4118_v2, %v1484_v23 }
 0x836   :  { %v1503_v26 = vsub.f32 %v1476_v5, %v1499_v25  ;;  %v1579_v5 = vperm.slane %v4107_v51, 3 }
 0x838   :  { %v1507_v41 = vmul.f32 %v1503_v26, %v1503_v26 }
 0x83a   :  { %v1513_v21 = vsel %vm733_vm10, %v1507_v41, 0.0 }
 0x83b   :  { %1514 = vadd.xlane.f32.xlu0 %v1513_v21 }
 0x859   :  { %v1487_v30 = vpop.xlane.xlu2 %1486 }
 0x85a   :  { %v1500_v27 = vmul.f32 %v4118_v2, %v1487_v30 }
 0x85c   :  { %v4125_v28 = vsub.f32 %v1477_v31, %v1500_v27 }
 0x85e   :  { %v1508_v52 = vmul.f32 %v4125_v28, %v4125_v28 }
 0x860   :  { %v1516_v44 = vsel %vm733_vm10, %v1508_v52, 0.0 }
 0x861   :  { %1517 = vadd.xlane.f32.xlu1 %v1516_v44  ;;  %v1490_v24 = vpop.xlane.xlu0 %1489 }
 0x862   :  { %v1501_v33 = vmul.f32 %v4118_v2, %v1490_v24 }
 0x864   :  { %v4131_v10 = vsub.f32 %v1478_v48, %v1501_v33 }
 0x866   :  { %v1509_v36 = vmul.f32 %v4131_v10, %v4131_v10 }
 0x868   :  { %v1519_v1 = vsel %vm733_vm10, %v1509_v36, 0.0 }
 0x869   :  { %1520 = vadd.xlane.f32.xlu0 %v1519_v1 }
 0x8a6   :  { %v1512_v53 = vpop.xlane.xlu1 %1511 }
 0x8a7   :  { %v1522_v20 = vmul.f32 %v1512_v53, %v4118_v2  ;;  %v3170_v53 = vld [vmem:[%s4626_s16 + $0x18] sm:$0xff] }
 0x8a8   :  { %1681 = vmatpush.bf16.msra.mxu0 %v3170_v53  ;;  %v3171_v53 = vld [vmem:[%s4621_s11 + $0x10] sm:$0xff] }
 0x8a9   :  { %v1526_v11 = vadd.f32 1e-05, %v1522_v20 }
 0x8ab   :  { %3332 = vrsqrt.f32 %v1526_v11  ;;  %vm1536_vm15 = vweird.f32 %v1526_v11 }
 0x8ae   :  { %v1515_v0 = vpop.xlane.xlu0 %1514 }
 0x8af   :  { %v1523_v54 = vmul.f32 %v1515_v0, %v4118_v2 }
 0x8b1   :  { %v3333_v16 = vpop.eup %3332  ;;  %v1527_v40 = vadd.f32 1e-05, %v1523_v54 }
 0x8b2   :  { %v1531_v42 = vmul.f32 %v3333_v16, %v1526_v11  ;;  %vm1537_vm14 = vweird.f32 %v3333_v16  ;;  %v3262_v11 = vld [vmem:[%s4625_s15] ss:$0 sm:$0xff] }
 0x8b3   :  { %3334 = vrsqrt.f32 %v1527_v40  ;;  %vm1538_vm0 = vmor %vm1536_vm15, %vm1537_vm14  ;;  %vm1546_vm2 = vweird.f32 %v1527_v40  ;;  %vm1670_vm14 = vcmask 523264  }
 0x8b4   :  { %v1532_v35 = vmul.f32 %v3333_v16, %v1531_v42 }
 0x8b6   :  { %v1533_v45 = vmul.f32 0.5, %v1532_v35 }
 0x8b8   :  { %v1534_v32 = vsub.f32 1.5, %v1533_v45 }
 0x8b9   :  { %v3335_v29 = vpop.eup %3334 }
 0x8ba   :  { %v1535_v50 = vmul.f32 %v3333_v16, %v1534_v32  ;;  %v1541_v46 = vmul.f32 %v3335_v29, %v1527_v40  ;;  %vm1547_vm1 = vweird.f32 %v3335_v29 }
 0x8bb   :  { %vm1548_vm3 = vmor %vm1546_vm2, %vm1547_vm1 }
 0x8bc   :  { %v1542_v47 = vmul.f32 %v3335_v29, %v1541_v46  ;;  %v1539_v13 = vsel %vm1538_vm0, %v3333_v16, %v1535_v50 }
 0x8bd   :  { %v1570_v58 = vmul.f32 %v1539_v13, %v1502_v22  ;;  %v1645_v13 = vperm.slane %v4107_v51, 1 }
 0x8be   :  { %v1543_v4 = vmul.f32 0.5, %v1542_v47 }
 0x8bf   :  { %v1575_v63 = vmul.f32 %v1574_v59, %v1570_v58 }
 0x8c0   :  { %v1544_v55 = vsub.f32 1.5, %v1543_v4 }
 0x8c1   :  { %v4146_v31 = vadd.f32 %v1579_v5, %v1575_v63 }
 0x8c2   :  { %v1545_v62 = vmul.f32 %v3335_v29, %v1544_v55 }
 0x8c4   :  { %v1549_v60 = vsel %vm1548_vm3, %v3335_v29, %v1545_v62 }
 0x8c5   :  { %v1571_v6 = vmul.f32 %v1549_v60, %v1503_v26 }
 0x8c7   :  { %v1576_v61 = vmul.f32 %v1574_v59, %v1571_v6 }
 0x8c9   :  { %v4148_v7 = vadd.f32 %v1579_v5, %v1576_v61 }
 0x8cb   :  { %v1584_v8 = vpack.c.bf16 %v4148_v7, %v4146_v31 }
 0x8cd   :  { %3043 = vmatmul.msk.bf16.vlgmr.msra.gmra.mxu3 %vm733_vm10, %v1584_v8 }
 0x8d4   :  { %v1518_v39 = vpop.xlane.xlu1 %1517 }
 0x8d5   :  { %v1524_v48 = vmul.f32 %v1518_v39, %v4118_v2 }
 0x8d7   :  { %v1528_v9 = vadd.f32 1e-05, %v1524_v48 }
 0x8d9   :  { %3336 = vrsqrt.f32 %v1528_v9  ;;  %vm1556_vm5 = vweird.f32 %v1528_v9 }
 0x8dc   :  { %v1521_v34 = vpop.xlane.xlu0 %1520 }
 0x8dd   :  { %v1525_v49 = vmul.f32 %v1521_v34, %v4118_v2 }
 0x8df   :  { %v3337_v12 = vpop.eup %3336  ;;  %v1529_v17 = vadd.f32 1e-05, %v1525_v49 }
 0x8e0   :  { %v1551_v15 = vmul.f32 %v3337_v12, %v1528_v9  ;;  %vm1557_vm4 = vweird.f32 %v3337_v12 }
 0x8e1   :  { %3338 = vrsqrt.f32 %v1529_v17  ;;  %vm1558_vm6 = vmor %vm1556_vm5, %vm1557_vm4  ;;  %vm1566_vm9 = vweird.f32 %v1529_v17 }
 0x8e2   :  { %v1552_v18 = vmul.f32 %v3337_v12, %v1551_v15 }
 0x8e4   :  { %v1553_v56 = vmul.f32 0.5, %v1552_v18 }
 0x8e6   :  { %v1554_v19 = vsub.f32 1.5, %v1553_v56 }
 0x8e7   :  { %v3339_v22 = vpop.eup %3338 }
 0x8e8   :  { %v1555_v43 = vmul.f32 %v3337_v12, %v1554_v19  ;;  %v1561_v57 = vmul.f32 %v3339_v22, %v1529_v17  ;;  %vm1567_vm8 = vweird.f32 %v3339_v22 }
 0x8e9   :  { %vm1568_vm13 = vmor %vm1566_vm9, %vm1567_vm8 }
 0x8ea   :  { %v1562_v23 = vmul.f32 %v3339_v22, %v1561_v57  ;;  %v1559_v25 = vsel %vm1558_vm6, %v3337_v12, %v1555_v43 }
 0x8eb   :  { %v1572_v21 = vmul.f32 %v1559_v25, %v4125_v28  ;;  %v3169_v28 = vld [vmem:[%s4626_s16 + $0x10] sm:$0xff] }
 0x8ec   :  { %v1563_v26 = vmul.f32 0.5, %v1562_v23  ;;  %1682 = vmatpush.bf16.msra.mxu0 %v3169_v28 }
 0x8ed   :  { %v1577_v44 = vmul.f32 %v1574_v59, %v1572_v21 }
 0x8ee   :  { %v1564_v41 = vsub.f32 1.5, %v1563_v26 }
 0x8ef   :  { %v1582_v33 = vadd.f32 %v1579_v5, %v1577_v44 }
 0x8f0   :  { %v1565_v30 = vmul.f32 %v3339_v22, %v1564_v41 }
 0x8f2   :  { %v1569_v27 = vsel %vm1568_vm13, %v3339_v22, %v1565_v30 }
 0x8f3   :  { %v1573_v52 = vmul.f32 %v1569_v27, %v4131_v10  ;;  %v3168_v10 = vld [vmem:[%s4626_s16 + $0x8] sm:$0xff] }
 0x8f4   :  { %1683 = vmatpush.bf16.msra.mxu0 %v3168_v10 }
 0x8f5   :  { %v1578_v24 = vmul.f32 %v1574_v59, %v1573_v52 }
 0x8f7   :  { %v1583_v36 = vadd.f32 %v1579_v5, %v1578_v24 }
 0x8f8   :  { %1684 = vmatpush.bf16.msra.mxu0 %v3167_v37 }
 0x8f9   :  { %v1585_v1 = vpack.c.bf16 %v1583_v36, %v1582_v33 }
 0x8fb   :  { %3044 = vmatmul.msk.bf16.gmra.mxu3 %vm733_vm10, %v1585_v1 }
 0x950   :  { %v1621_v20 = vpop.f32.mrf.mxu3 }
 0x951   :  { %v1622_v38 = vadd.f32 %v3262_v11, %v1621_v20 }
 0x953   :  { %v1631_v16 = vmax.f32 %v1622_v38, 0.0 }
 0x958   :  { %v1623_v0 = vpop.f32.mrf.mxu3 }
 0x959   :  { %v1624_v54 = vadd.f32 %v3262_v11, %v1623_v0 }
 0x95b   :  { %v1632_v40 = vmax.f32 %v1624_v54, 0.0 }
 0x95d   :  { %v1635_v42 = vpack.c.bf16 %v1632_v40, %v1631_v16 }
 0x95f   :  { %3061 = vmatmul.msk.bf16.vlgmr.msra.gmra.mxu0 %vm1670_vm14, %v1635_v42 }
 0x97e   :  { %v1626_v35 = vpop.f32.mrf.mxu3 }
 0x97f   :  { %v1627_v45 = vadd.f32 %v3262_v11, %v1626_v35 }
 0x981   :  { %v1633_v50 = vmax.f32 %v1627_v45, 0.0 }
 0x986   :  { %v1628_v32 = vpop.f32.mrf.mxu3 }
 0x987   :  { %v1629_v29 = vadd.f32 %v3262_v11, %v1628_v32 }
 0x989   :  { %v1634_v46 = vmax.f32 %v1629_v29, 0.0 }
 0x98b   :  { %v1636_v47 = vpack.c.bf16 %v1634_v46, %v1633_v50  ;;  %v1788_v50 = vperm.slane %v4107_v51, 4 }
 0x98d   :  { %3062 = vmatmul.msk.bf16.gmra.mxu0 %vm1670_vm14, %v1636_v47 }
 0x9dc   :  { %v1686_v4 = vpop.f32.mrf.mxu0 }
 0x9dd   :  { %v1687_v55 = vadd.f32 %v1686_v4, %v1645_v13  ;;  %v1793_v4 = vperm.slane %v4107_v51, 5 }
 0x9df   :  { %v1696_v59 = vadd.f32 %v1687_v55, %v4146_v31 }
 0x9e1   :  { %v1700_v58 = vsel %vm733_vm10, %v1696_v59, 0.0 }
 0x9e2   :  { %1701 = vadd.xlane.f32.xlu2 %v1700_v58 }
 0x9e4   :  { %v1688_v62 = vpop.f32.mrf.mxu0 }
 0x9e5   :  { %v1689_v60 = vadd.f32 %v1688_v62, %v1645_v13 }
 0x9e7   :  { %v1697_v5 = vadd.f32 %v1689_v60, %v4148_v7 }
 0x9e9   :  { %v1703_v63 = vsel %vm733_vm10, %v1697_v5, 0.0 }
 0x9ea   :  { %1704 = vadd.xlane.f32.xlu1 %v1703_v63 }
 0xa0a   :  { %v1691_v6 = vpop.f32.mrf.mxu0 }
 0xa0b   :  { %v1692_v61 = vadd.f32 %v1691_v6, %v1645_v13 }
 0xa0d   :  { %v1698_v8 = vadd.f32 %v1692_v61, %v1582_v33  ;;  %v3172_v33 = vld [vmem:[%s4621_s11 + $0x18] sm:$0xff] }
 0xa0e   :  { %1836 = vmatpush.bf16.msra.mxu1 %v3172_v33 }
 0xa0f   :  { %v1706_v39 = vsel %vm733_vm10, %v1698_v8, 0.0 }
 0xa10   :  { %1707 = vadd.xlane.f32.xlu0 %v1706_v39 }
 0xa12   :  { %v1693_v48 = vpop.f32.mrf.mxu0  ;;  %1837 = vmatpush.bf16.msra.mxu1 %v3171_v53 }
 0xa13   :  { %v1694_v9 = vadd.f32 %v1693_v48, %v1645_v13 }
 0xa15   :  { %v1699_v34 = vadd.f32 %v1694_v9, %v1583_v36 }
 0xa17   :  { %v1709_v31 = vsel %vm733_vm10, %v1699_v34, 0.0 }
 0xa18   :  { %1710 = vadd.xlane.f32.xlu2 %v1709_v31 }
 0xa55   :  { %v1702_v49 = vpop.xlane.xlu2 %1701 }
 0xa56   :  { %v1712_v12 = vmul.f32 %v1702_v49, %v4118_v2 }
 0xa58   :  { %v1716_v17 = vsub.f32 %v1696_v59, %v1712_v12 }
 0xa5a   :  { %v1720_v7 = vmul.f32 %v1716_v17, %v1716_v17 }
 0xa5c   :  { %v1724_v15 = vsel %vm733_vm10, %v1720_v7, 0.0 }
 0xa5d   :  { %v1705_v18 = vpop.xlane.xlu1 %1704  ;;  %1725 = vadd.xlane.f32.xlu1 %v1724_v15 }
 0xa5e   :  { %v1713_v56 = vmul.f32 %v1705_v18, %v4118_v2 }
 0xa60   :  { %v1717_v19 = vsub.f32 %v1697_v5, %v1713_v56 }
 0xa62   :  { %v1721_v22 = vmul.f32 %v1717_v19, %v1717_v19 }
 0xa64   :  { %v1727_v43 = vsel %vm733_vm10, %v1721_v22, 0.0 }
 0xa65   :  { %1728 = vadd.xlane.f32.xlu0 %v1727_v43 }
 0xa83   :  { %v1708_v57 = vpop.xlane.xlu0 %1707 }
 0xa84   :  { %v1714_v23 = vmul.f32 %v1708_v57, %v4118_v2 }
 0xa86   :  { %v4187_v25 = vsub.f32 %v1698_v8, %v1714_v23 }
 0xa88   :  { %v1722_v26 = vmul.f32 %v4187_v25, %v4187_v25 }
 0xa8a   :  { %v1730_v41 = vsel %vm733_vm10, %v1722_v26, 0.0 }
 0xa8b   :  { %v1711_v21 = vpop.xlane.xlu2 %1710  ;;  %1731 = vadd.xlane.f32.xlu2 %v1730_v41 }
 0xa8c   :  { %v1715_v30 = vmul.f32 %v1711_v21, %v4118_v2 }
 0xa8e   :  { %v4193_v27 = vsub.f32 %v1699_v34, %v1715_v30 }
 0xa90   :  { %v1723_v52 = vmul.f32 %v4193_v27, %v4193_v27 }
 0xa92   :  { %v1733_v44 = vsel %vm733_vm10, %v1723_v52, 0.0 }
 0xa93   :  { %1734 = vadd.xlane.f32.xlu1 %v1733_v44 }
 0xad0   :  { %v1726_v24 = vpop.xlane.xlu1 %1725 }
 0xad1   :  { %v1736_v36 = vmul.f32 %v1726_v24, %v4118_v2 }
 0xad3   :  { %v1740_v1 = vadd.f32 1e-05, %v1736_v36 }
 0xad5   :  { %3340 = vrsqrt.f32 %v1740_v1  ;;  %vm1750_vm0 = vweird.f32 %v1740_v1 }
 0xad8   :  { %v1729_v28 = vpop.xlane.xlu0 %1728 }
 0xad9   :  { %v1737_v10 = vmul.f32 %v1729_v28, %v4118_v2 }
 0xadb   :  { %v3341_v37 = vpop.eup %3340  ;;  %v1741_v20 = vadd.f32 1e-05, %v1737_v10 }
 0xadc   :  { %v1745_v11 = vmul.f32 %v3341_v37, %v1740_v1  ;;  %vm1751_vm15 = vweird.f32 %v3341_v37 }
 0xadd   :  { %3342 = vrsqrt.f32 %v1741_v20  ;;  %vm1752_vm1 = vmor %vm1750_vm0, %vm1751_vm15  ;;  %vm1760_vm3 = vweird.f32 %v1741_v20 }
 0xade   :  { %v1746_v38 = vmul.f32 %v3341_v37, %v1745_v11 }
 0xae0   :  { %v1747_v0 = vmul.f32 0.5, %v1746_v38 }
 0xae2   :  { %v1748_v54 = vsub.f32 1.5, %v1747_v0 }
 0xae3   :  { %v3343_v16 = vpop.eup %3342 }
 0xae4   :  { %v1749_v40 = vmul.f32 %v3341_v37, %v1748_v54  ;;  %v1755_v42 = vmul.f32 %v3343_v16, %v1741_v20  ;;  %vm1761_vm2 = vweird.f32 %v3343_v16 }
 0xae5   :  { %vm1762_vm4 = vmor %vm1760_vm3, %vm1761_vm2 }
 0xae6   :  { %v1756_v35 = vmul.f32 %v3343_v16, %v1755_v42  ;;  %v1753_v45 = vsel %vm1752_vm1, %v3341_v37, %v1749_v40 }
 0xae7   :  { %v1784_v46 = vmul.f32 %v1753_v45, %v1716_v17 }
 0xae8   :  { %v1757_v32 = vmul.f32 0.5, %v1756_v35 }
 0xae9   :  { %v1789_v55 = vmul.f32 %v1788_v50, %v1784_v46 }
 0xaea   :  { %v1758_v29 = vsub.f32 1.5, %v1757_v32 }
 0xaeb   :  { %v4208_v62 = vadd.f32 %v1793_v4, %v1789_v55 }
 0xaec   :  { %v1759_v47 = vmul.f32 %v3343_v16, %v1758_v29 }
 0xaee   :  { %v1763_v13 = vsel %vm1762_vm4, %v3343_v16, %v1759_v47 }
 0xaef   :  { %v1785_v59 = vmul.f32 %v1763_v13, %v1717_v19 }
 0xaf1   :  { %v1790_v58 = vmul.f32 %v1788_v50, %v1785_v59 }
 0xaf3   :  { %v4210_v60 = vadd.f32 %v1793_v4, %v1790_v58 }
 0xaf5   :  { %v1800_v5 = vpack.c.bf16 %v4210_v60, %v4208_v62 }
 0xaf7   :  { %3077 = vmatmul.msk.bf16.vlgmr.msra.gmra.mxu1 %vm733_vm10, %v1800_v5 }
 0xafe   :  { %v1732_v63 = vpop.xlane.xlu2 %1731 }
 0xaff   :  { %v1738_v6 = vmul.f32 %v1732_v63, %v4118_v2 }
 0xb01   :  { %v1742_v61 = vadd.f32 1e-05, %v1738_v6 }
 0xb03   :  { %3344 = vrsqrt.f32 %v1742_v61  ;;  %vm1770_vm6 = vweird.f32 %v1742_v61 }
 0xb06   :  { %v1735_v8 = vpop.xlane.xlu1 %1734 }
 0xb07   :  { %v1739_v51 = vmul.f32 %v1735_v8, %v4118_v2 }
 0xb09   :  { %v3345_v39 = vpop.eup %3344  ;;  %v1743_v48 = vadd.f32 1e-05, %v1739_v51 }
 0xb0a   :  { %v1765_v9 = vmul.f32 %v3345_v39, %v1742_v61  ;;  %vm1771_vm5 = vweird.f32 %v3345_v39 }
 0xb0b   :  { %3346 = vrsqrt.f32 %v1743_v48  ;;  %vm1772_vm8 = vmor %vm1770_vm6, %vm1771_vm5  ;;  %vm1780_vm13 = vweird.f32 %v1743_v48 }
 0xb0c   :  { %v1766_v34 = vmul.f32 %v3345_v39, %v1765_v9 }
 0xb0e   :  { %v1767_v31 = vmul.f32 0.5, %v1766_v34 }
 0xb10   :  { %v1768_v49 = vsub.f32 1.5, %v1767_v31 }
 0xb11   :  { %v3347_v12 = vpop.eup %3346 }
 0xb12   :  { %v1769_v17 = vmul.f32 %v3345_v39, %v1768_v49  ;;  %v1775_v7 = vmul.f32 %v3347_v12, %v1743_v48  ;;  %vm1781_vm9 = vweird.f32 %v3347_v12 }
 0xb13   :  { %vm1782_vm15 = vmor %vm1780_vm13, %vm1781_vm9 }
 0xb14   :  { %v1776_v15 = vmul.f32 %v3347_v12, %v1775_v7  ;;  %v1773_v18 = vsel %vm1772_vm8, %v3345_v39, %v1769_v17 }
 0xb15   :  { %v1786_v22 = vmul.f32 %v1773_v18, %v4187_v25  ;;  %v3263_v25 = vld [vmem:[%s4622_s12 + $0x1] ss:$0 sm:$0xff]  ;;  %s4648_s12 = smov 16  }
 0xb16   :  { %v1777_v56 = vmul.f32 0.5, %v1776_v15 }
 0xb17   :  { %v1791_v26 = vmul.f32 %v1788_v50, %v1786_v22 }
 0xb18   :  { %v1778_v19 = vsub.f32 1.5, %v1777_v56 }
 0xb19   :  { %v4219_v21 = vadd.f32 %v1793_v4, %v1791_v26 }
 0xb1a   :  { %v1779_v43 = vmul.f32 %v3347_v12, %v1778_v19 }
 0xb1c   :  { %v1783_v57 = vsel %vm1782_vm15, %v3347_v12, %v1779_v43 }
 0xb1d   :  { %v1787_v23 = vmul.f32 %v1783_v57, %v4193_v27 }
 0xb1f   :  { %v1792_v41 = vmul.f32 %v1788_v50, %v1787_v23 }
 0xb21   :  { %v4221_v30 = vadd.f32 %v1793_v4, %v1792_v41 }
 0xb23   :  { %v1801_v52 = vpack.c.bf16 %v4221_v30, %v4219_v21 }
 0xb25   :  { %3078 = vmatmul.msk.bf16.gmra.mxu1 %vm733_vm10, %v1801_v52 }
 0xb74   :  { %v1839_v44 = vpop.f32.mrf.mxu1 }
 0xb75   :  { %v1840_v24 = vadd.f32 %v3263_v25, %v1839_v44 }
 0xb77   :  { %v1849_v36 = vpack.c.bf16 %v1840_v24, %v1840_v24 }
 0xb79   :  { %v1855_v53 = vunpack.c.l.b16 %v1849_v36 }
 0xb7c   :  { %v1841_v33 = vpop.f32.mrf.mxu1 }
 0xb7d   :  { %v1842_v27 = vadd.f32 %v3263_v25, %v1841_v33 }
 0xb7f   :  { %v1850_v1 = vpack.c.bf16 %v1842_v27, %v1842_v27 }
 0xb81   :  { %v1856_v28 = vunpack.c.l.b16 %v1850_v1 }
 0xb83   :  { %v4229_v10 = vpack.c.b16 %v1856_v28, %v1855_v53 }
 0xb85   :  { %2011 = vrot.lane.b32.xlu1 %v4229_v10, %s3454_s25  ;;  %1858 = vrot.lane.b32.xlu0 %v4229_v10, %s3455_s3 }
 0xb8d   :  { %2009 = vrot.lane.b32.xlu0 %v4229_v10, %s3456_s26 }
 0xb95   :  { %2161 = vrot.lane.b32.xlu0 %v4229_v10, %s3458_s28 }
 0xba2   :  { %v1844_v37 = vpop.f32.mrf.mxu1 }
 0xba3   :  { %v1845_v20 = vadd.f32 %v3263_v25, %v1844_v37 }
 0xba5   :  { %v1851_v38 = vpack.c.bf16 %v1845_v20, %v1845_v20 }
 0xba7   :  { %v1882_v16 = vunpack.c.l.b16 %v1851_v38 }
 0xbaa   :  { %v1846_v11 = vpop.f32.mrf.mxu1 }
 0xbab   :  { %v1847_v0 = vadd.f32 %v3263_v25, %v1846_v11 }
 0xbad   :  { %v1852_v54 = vpack.c.bf16 %v1847_v0, %v1847_v0 }
 0xbaf   :  { %v1883_v40 = vunpack.c.l.b16 %v1852_v54 }
 0xbb1   :  { %v4239_v42 = vpack.c.b16 %v1883_v40, %v1882_v16 }
 0xbb3   :  { %1885 = vrot.lane.b32.xlu2 %v4239_v42, %s3455_s3  ;;  %2033 = vrot.lane.b32.xlu1 %v4239_v42, %s3456_s26 }
 0xbb4   :  { %2185 = vrot.lane.b32.xlu0 %v4239_v42, %s3458_s28 }
 0xbbb   :  { %2035 = vrot.lane.b32.xlu2 %v4239_v42, %s3454_s25  ;;  %2311 = vrot.lane.b32.xlu1 %v4229_v10, %s3460_s29  ;;  %s4649_s25 = smov 24  }
 0xbbc   :  { %2309 = vrot.lane.b32.xlu0 %v4229_v10, %s3459_s4 }
 0xbc3   :  { %2159 = vrot.lane.b32.xlu2 %v4229_v10, %s3457_s27  ;;  %2335 = vrot.lane.b32.xlu1 %v4239_v42, %s3460_s29 }
 0xbc4   :  { %1964 = vrot.lane.b32.xlu0 %v4229_v10, %s3461_s6 }
 0xbcb   :  { %2183 = vrot.lane.b32.xlu2 %v4239_v42, %s3457_s27  ;;  %s2954_s27 = sshll.u32 %s4630_s20, 4  ;;  %s2955_s27 = int_to_ptr.hbm [resolvable:$true] %s2954_s27 }
 0xbcc   :  { %2114 = vrot.lane.b32.xlu0 %v4229_v10, %s3462_s7 }
 0xbd3   :  { %2333 = vrot.lane.b32.xlu2 %v4239_v42, %s3459_s4 }
 0xbdb   :  { %1989 = vrot.lane.b32.xlu2 %v4239_v42, %s3461_s6 }
 0xbe3   :  { %2139 = vrot.lane.b32.xlu2 %v4239_v42, %s3462_s7 }
 0xbf7   :  { %v2012_v35 = vpop.permute.xlu1 %2011  ;;  %v1859_v45 = vpop.permute.xlu0 %1858 }
 0xbf8   :  { %v2017_v32 = vsel %vm254_vm7, %v2012_v35, 0  ;;  %v1864_v29 = vsel %vm254_vm7, %v1859_v45, 0 }
 0xbf9   :  { %1873 = vmatpush.bf16.xpose.msra.mxu2 %v1864_v29 }
 0xbff   :  { %v2010_v50 = vpop.permute.xlu0 %2009 }
 0xc00   :  { %3079 = vmatmul.msk.bf16.vlgmr.msra.gmra.mxu2 %vm254_vm7, %v4229_v10 }
 0xc01   :  { %2026 = vmatpush.bf16.xpose.msrb.mxu2 %v2017_v32 }
 0xc07   :  { %v2162_v46 = vpop.permute.xlu0 %2161 }
 0xc08   :  { %v2167_v47 = vsel %vm254_vm7, %v2162_v46, 0 }
 0xc09   :  { %2176 = vmatpush.bf16.xpose.msra.mxu2 %v2167_v47 }
 0xc0d   :  { %v1886_v13 = vpop.permute.xlu2 %1885 }
 0xc0e   :  { %v1891_v4 = vsel %vm254_vm7, %v1886_v13, 0 }
 0xc0f   :  { %1900 = vmatpush.bf16.xpose.msrb.mxu3 %v1891_v4 }
 0xc10   :  { %3083 = vmatmul.msk.bf16.vlgmr.msrb.gmra.mxu2 %vm254_vm7, %v2010_v50 }
 0xc15   :  { %v2036_v55 = vpop.permute.xlu2 %2035 }
 0xc16   :  { %v2041_v59 = vsel %vm254_vm7, %v2036_v55, 0  ;;  %3080 = vmatmul.msk.bf16.vlgmr.msrb.gmra.mxu3 %vm254_vm7, %v4239_v42 }
 0xc17   :  { %2050 = vmatpush.bf16.xpose.msra.mxu3 %v2041_v59 }
 0xc1d   :  { %v2160_v58 = vpop.permute.xlu2 %2159 }
 0xc20   :  { %3087 = vmatmul.msk.bf16.vlgmr.msra.gmra.mxu2 %vm254_vm7, %v2160_v58 }
 0xc25   :  { %v2184_v5 = vpop.permute.xlu2 %2183  ;;  %v2034_v63 = vpop.permute.xlu1 %2033 }
 0xc26   :  { %v2186_v6 = vpop.permute.xlu0 %2185  ;;  %3084 = vmatmul.msk.bf16.vlgmr.msra.gmra.mxu3 %vm254_vm7, %v2034_v63 }
 0xc27   :  { %v2191_v61 = vsel %vm254_vm7, %v2186_v6, 0 }
 0xc28   :  { %2200 = vmatpush.bf16.xpose.msrb.mxu3 %v2191_v61 }
 0xc2d   :  { %v2334_v8 = vpop.permute.xlu2 %2333  ;;  %v2312_v51 = vpop.permute.xlu1 %2311 }
 0xc2e   :  { %v2317_v39 = vsel %vm254_vm7, %v2312_v51, 0  ;;  %v2310_v48 = vpop.permute.xlu0 %2309 }
 0xc2f   :  { %2326 = vmatpush.bf16.xpose.msrb.mxu2 %v2317_v39 }
 0xc35   :  { %v1990_v9 = vpop.permute.xlu2 %1989  ;;  %v2336_v34 = vpop.permute.xlu1 %2335 }
 0xc36   :  { %v2341_v31 = vsel %vm254_vm7, %v2336_v34, 0  ;;  %v1965_v49 = vpop.permute.xlu0 %1964  ;;  %2002 = vmatpush.bf16.msrb.mxu1 %v1990_v9  ;;  %3088 = vmatmul.msk.bf16.vlgmr.msrb.gmra.mxu3 %vm254_vm7, %v2184_v5 }
 0xc37   :  { %1977 = vmatpush.bf16.msrb.mxu0 %v1965_v49  ;;  %3091 = vmatmul.msk.bf16.vlgmr.msrb.gmra.mxu2 %vm254_vm7, %v2310_v48 }
 0xc38   :  { %2350 = vmatpush.bf16.xpose.msra.mxu3 %v2341_v31 }
 0xc3d   :  { %v2140_v12 = vpop.permute.xlu2 %2139 }
 0xc3e   :  { %v2115_v17 = vpop.permute.xlu0 %2114  ;;  %2152 = vmatpush.bf16.msra.mxu1 %v2140_v12 }
 0xc3f   :  { %2127 = vmatpush.bf16.msra.mxu0 %v2115_v17 }
 0xc46   :  { %3092 = vmatmul.msk.bf16.vlgmr.msra.gmra.mxu3 %vm254_vm7, %v2334_v8 }
 0xc83   :  { %v1875_v7 = vpop.f32.mrf.mxu2 }
 0xc84   :  { %v4287_v15 = vmul.f32 0.35355338, %v1875_v7 }
 0xc86   :  { %v1911_v18 = vsel %vm821_vm11, %v4287_v15, -inf }
 0xc87   :  { %1912 = vmax.xlane.f32.xlu0 %v1911_v18 }
 0xc8b   :  { %v1877_v56 = vpop.f32.mrf.mxu2 }
 0xc8c   :  { %v4291_v19 = vmul.f32 0.35355338, %v1877_v56 }
 0xc8e   :  { %v1914_v22 = vsel %vm821_vm11, %v4291_v19, -inf }
 0xc8f   :  { %1915 = vmax.xlane.f32.xlu1 %v1914_v22 }
 0xc93   :  { %v2028_v43 = vpop.f32.mrf.mxu2 }
 0xc94   :  { %v4303_v25 = vmul.f32 0.35355338, %v2028_v43 }
 0xc96   :  { %v2061_v53 = vsel %vm821_vm11, %v4303_v25, -inf }
 0xc99   :  { %v1902_v57 = vpop.f32.mrf.mxu3 }
 0xc9a   :  { %v4295_v23 = vmul.f32 0.35355338, %v1902_v57 }
 0xc9b   :  { %v2030_v26 = vpop.f32.mrf.mxu2 }
 0xc9c   :  { %v4297_v41 = vmul.f32 0.35355338, %v2030_v26  ;;  %v1917_v52 = vsel %vm821_vm11, %v4295_v23, -inf }
 0xc9d   :  { %1918 = vmax.xlane.f32.xlu2 %v1917_v52 }
 0xc9e   :  { %v2064_v44 = vsel %vm821_vm11, %v4297_v41, -inf }
 0xc9f   :  { %2065 = vmax.xlane.f32.xlu1 %v2064_v44 }
 0xca1   :  { %v1904_v24 = vpop.f32.mrf.mxu3 }
 0xca2   :  { %v4305_v33 = vmul.f32 0.35355338, %v1904_v24 }
 0xca3   :  { %v2178_v36 = vpop.f32.mrf.mxu2 }
 0xca4   :  { %v4307_v27 = vmul.f32 0.35355338, %v2178_v36  ;;  %v1920_v1 = vsel %vm821_vm11, %v4305_v33, -inf }
 0xca5   :  { %1921 = vmax.xlane.f32.xlu0 %v1920_v1  ;;  %2062 = vmax.xlane.f32.xlu2 %v2061_v53 }
 0xca6   :  { %v2211_v28 = vsel %vm821_vm11, %v4307_v27, -inf }
 0xca7   :  { %2212 = vmax.xlane.f32.xlu1 %v2211_v28 }
 0xca9   :  { %v2052_v37 = vpop.f32.mrf.mxu3 }
 0xcaa   :  { %v4315_v20 = vmul.f32 0.35355338, %v2052_v37 }
 0xcab   :  { %v2180_v38 = vpop.f32.mrf.mxu2 }
 0xcac   :  { %v2067_v11 = vsel %vm821_vm11, %v4315_v20, -inf  ;;  %v4319_v0 = vmul.f32 0.35355338, %v2180_v38 }
 0xcad   :  { %2068 = vmax.xlane.f32.xlu0 %v2067_v11 }
 0xcae   :  { %v2214_v35 = vsel %vm821_vm11, %v4319_v0, -inf }
 0xcb1   :  { %v2054_v54 = vpop.f32.mrf.mxu3 }
 0xcb2   :  { %v4321_v16 = vmul.f32 0.35355338, %v2054_v54 }
 0xcb4   :  { %v2070_v40 = vsel %vm821_vm11, %v4321_v16, -inf }
 0xcb5   :  { %2071 = vmax.xlane.f32.xlu2 %v2070_v40  ;;  %2215 = vmax.xlane.f32.xlu0 %v2214_v35 }
 0xcb9   :  { %v2202_v45 = vpop.f32.mrf.mxu3 }
 0xcba   :  { %v4327_v32 = vmul.f32 0.35355338, %v2202_v45  ;;  %v2328_v29 = vpop.f32.mrf.mxu2 }
 0xcbb   :  { %v4329_v50 = vmul.f32 0.35355338, %v2328_v29 }
 0xcbc   :  { %v2217_v46 = vsel %vm821_vm11, %v4327_v32, -inf }
 0xcbd   :  { %2218 = vmax.xlane.f32.xlu2 %v2217_v46  ;;  %v2361_v47 = vsel %vm821_vm11, %v4329_v50, -inf }
 0xcbe   :  { %2362 = vmax.xlane.f32.xlu0 %v2361_v47 }
 0xcc1   :  { %v2204_v13 = vpop.f32.mrf.mxu3 }
 0xcc2   :  { %v4335_v4 = vmul.f32 0.35355338, %v2204_v13  ;;  %v2330_v55 = vpop.f32.mrf.mxu2 }
 0xcc3   :  { %v4337_v59 = vmul.f32 0.35355338, %v2330_v55 }
 0xcc4   :  { %v2220_v58 = vsel %vm821_vm11, %v4335_v4, -inf }
 0xcc5   :  { %2221 = vmax.xlane.f32.xlu1 %v2220_v58  ;;  %v2364_v5 = vsel %vm821_vm11, %v4337_v59, -inf }
 0xcc6   :  { %2365 = vmax.xlane.f32.xlu2 %v2364_v5 }
 0xcc9   :  { %v2352_v63 = vpop.f32.mrf.mxu3 }
 0xcca   :  { %v4343_v6 = vmul.f32 0.35355338, %v2352_v63 }
 0xccc   :  { %v2367_v61 = vsel %vm821_vm11, %v4343_v6, -inf }
 0xcce   :  { %2368 = vmax.xlane.f32.xlu2 %v2367_v61 }
 0xcd1   :  { %v2354_v8 = vpop.f32.mrf.mxu3 }
 0xcd2   :  { %v4347_v51 = vmul.f32 0.35355338, %v2354_v8 }
 0xcd4   :  { %v2370_v39 = vsel %vm821_vm11, %v4347_v51, -inf }
 0xcd5   :  { %2371 = vmax.xlane.f32.xlu1 %v2370_v39 }
 0xcfa   :  { %v1913_v48 = vpop.xlane.xlu0 %1912 }
 0xcfb   :  { %v1923_v9 = vsub.f32 %v4287_v15, %v1913_v48 }
 0xcfd   :  { %v1927_v34 = vmul.f32 1.442695, %v1923_v9 }
 0xcff   :  { %3348 = vpow2.f32 %v1927_v34 }
 0xd02   :  { %v1916_v31 = vpop.xlane.xlu1 %1915 }
 0xd03   :  { %v1924_v49 = vsub.f32 %v4291_v19, %v1916_v31 }
 0xd05   :  { %v4353_v12 = vpop.eup %3348  ;;  %v1929_v17 = vmul.f32 1.442695, %v1924_v49 }
 0xd06   :  { %v1935_v7 = vsel %vm821_vm11, %v4353_v12, 0.0 }
 0xd07   :  { %3350 = vpow2.f32 %v1929_v17  ;;  %1936 = vadd.xlane.f32.xlu1 %v1935_v7 }
 0xd0d   :  { %v4357_v18 = vpop.eup %3350 }
 0xd0e   :  { %v1938_v56 = vsel %vm821_vm11, %v4357_v18, 0.0 }
 0xd0f   :  { %1939 = vadd.xlane.f32.xlu0 %v1938_v56 }
 0xd10   :  { %v1919_v15 = vpop.xlane.xlu2 %1918 }
 0xd11   :  { %v1925_v22 = vsub.f32 %v4295_v23, %v1919_v15 }
 0xd12   :  { %v2066_v26 = vpop.xlane.xlu1 %2065 }
 0xd13   :  { %v1931_v43 = vmul.f32 1.442695, %v1925_v22  ;;  %v2074_v53 = vsub.f32 %v4297_v41, %v2066_v26 }
 0xd15   :  { %3352 = vpow2.f32 %v1931_v43  ;;  %v2079_v23 = vmul.f32 1.442695, %v2074_v53 }
 0xd18   :  { %v2063_v19 = vpop.xlane.xlu2 %2062  ;;  %v1922_v57 = vpop.xlane.xlu0 %1921 }
 0xd19   :  { %v2073_v52 = vsub.f32 %v4303_v25, %v2063_v19  ;;  %v1926_v44 = vsub.f32 %v4305_v33, %v1922_v57 }
 0xd1a   :  { %v2213_v45 = vpop.xlane.xlu1 %2212 }
 0xd1b   :  { %v4364_v24 = vpop.eup %3352  ;;  %v2077_v36 = vmul.f32 1.442695, %v2073_v52  ;;  %v1933_v1 = vmul.f32 1.442695, %v1926_v44  ;;  %v2223_v13 = vsub.f32 %v4307_v27, %v2213_v45 }
 0xd1c   :  { %v1941_v28 = vsel %vm821_vm11, %v4364_v24, 0.0 }
 0xd1d   :  { %3354 = vpow2.f32 %v2077_v36  ;;  %1942 = vadd.xlane.f32.xlu2 %v1941_v28  ;;  %v2227_v55 = vmul.f32 1.442695, %v2223_v13 }
 0xd1e   :  { %3356 = vpow2.f32 %v1933_v1 }
 0xd1f   :  { %3358 = vpow2.f32 %v2079_v23 }
 0xd20   :  { %v2069_v37 = vpop.xlane.xlu0 %2068 }
 0xd21   :  { %v2075_v25 = vsub.f32 %v4315_v20, %v2069_v37 }
 0xd23   :  { %v4369_v11 = vpop.eup %3354  ;;  %v2081_v54 = vmul.f32 1.442695, %v2075_v25 }
 0xd24   :  { %v4371_v38 = vpop.eup %3356  ;;  %v2085_v33 = vsel %vm821_vm11, %v4369_v11, 0.0 }
 0xd25   :  { %2086 = vadd.xlane.f32.xlu2 %v2085_v33  ;;  %v1944_v41 = vsel %vm821_vm11, %v4371_v38, 0.0  ;;  %v4379_v46 = vpop.eup %3358  ;;  %3360 = vpow2.f32 %v2081_v54 }
 0xd26   :  { %1945 = vadd.xlane.f32.xlu1 %v1944_v41  ;;  %v2088_v20 = vsel %vm821_vm11, %v4379_v46, 0.0 }
 0xd28   :  { %v2072_v40 = vpop.xlane.xlu2 %2071  ;;  %v2216_v35 = vpop.xlane.xlu0 %2215 }
 0xd29   :  { %v2076_v29 = vsub.f32 %v4321_v16, %v2072_v40  ;;  %v2224_v27 = vsub.f32 %v4319_v0, %v2216_v35 }
 0xd2b   :  { %v2083_v47 = vmul.f32 1.442695, %v2076_v29  ;;  %v4385_v61 = vpop.eup %3360  ;;  %v2229_v34 = vmul.f32 1.442695, %v2224_v27 }
 0xd2d   :  { %3362 = vpow2.f32 %v2083_v47 }
 0xd2e   :  { %2089 = vadd.xlane.f32.xlu1 %v2088_v20  ;;  %3364 = vpow2.f32 %v2227_v55 }
 0xd30   :  { %v2219_v58 = vpop.xlane.xlu2 %2218 }
 0xd31   :  { %v2225_v5 = vsub.f32 %v4327_v32, %v2219_v58  ;;  %v2363_v63 = vpop.xlane.xlu0 %2362  ;;  %v2091_v32 = vsel %vm821_vm11, %v4385_v61, 0.0 }
 0xd32   :  { %v2373_v16 = vsub.f32 %v4329_v50, %v2363_v63 }
 0xd33   :  { %v4388_v8 = vpop.eup %3362  ;;  %v2231_v39 = vmul.f32 1.442695, %v2225_v5 }
 0xd34   :  { %v2377_v48 = vmul.f32 1.442695, %v2373_v16  ;;  %v2094_v9 = vsel %vm821_vm11, %v4388_v8, 0.0  ;;  %v4395_v50 = vpop.eup %3364 }
 0xd35   :  { %3366 = vpow2.f32 %v2231_v39  ;;  %2095 = vadd.xlane.f32.xlu0 %v2094_v9  ;;  %v2235_v15 = vsel %vm821_vm11, %v4395_v50, 0.0 }
 0xd36   :  { %3368 = vpow2.f32 %v2377_v48  ;;  %2092 = vadd.xlane.f32.xlu1 %v2091_v32 }
 0xd37   :  { %3370 = vpow2.f32 %v2229_v34 }
 0xd38   :  { %v2222_v26 = vpop.xlane.xlu1 %2221 }
 0xd39   :  { %v2366_v31 = vpop.xlane.xlu2 %2365  ;;  %v2226_v53 = vsub.f32 %v4335_v4, %v2222_v26 }
 0xd3a   :  { %v2374_v49 = vsub.f32 %v4337_v59, %v2366_v31 }
 0xd3b   :  { %v4398_v17 = vpop.eup %3366  ;;  %v2233_v23 = vmul.f32 1.442695, %v2226_v53 }
 0xd3c   :  { %v4400_v0 = vpop.eup %3368  ;;  %v2379_v7 = vmul.f32 1.442695, %v2374_v49  ;;  %v2241_v56 = vsel %vm821_vm11, %v4398_v17, 0.0 }
 0xd3d   :  { %2242 = vadd.xlane.f32.xlu2 %v2241_v56  ;;  %v2385_v22 = vsel %vm821_vm11, %v4400_v0, 0.0  ;;  %v4408_v59 = vpop.eup %3370 }
 0xd3e   :  { %3372 = vpow2.f32 %v2379_v7  ;;  %2236 = vadd.xlane.f32.xlu1 %v2235_v15  ;;  %2386 = vadd.xlane.f32.xlu0 %v2385_v22  ;;  %v2238_v19 = vsel %vm821_vm11, %v4408_v59, 0.0 }
 0xd41   :  { %v2369_v52 = vpop.xlane.xlu2 %2368 }
 0xd42   :  { %v2375_v44 = vsub.f32 %v4343_v6, %v2369_v52 }
 0xd44   :  { %v4410_v43 = vpop.eup %3372  ;;  %v2381_v1 = vmul.f32 1.442695, %v2375_v44 }
 0xd45   :  { %v2388_v57 = vsel %vm821_vm11, %v4410_v43, 0.0 }
 0xd46   :  { %2239 = vadd.xlane.f32.xlu1 %v2238_v19  ;;  %2389 = vadd.xlane.f32.xlu0 %v2388_v57  ;;  %3374 = vpow2.f32 %v2381_v1 }
 0xd48   :  { %v2372_v36 = vpop.xlane.xlu1 %2371 }
 0xd49   :  { %v2376_v37 = vsub.f32 %v4347_v51, %v2372_v36 }
 0xd4c   :  { %v4427_v25 = vpop.eup %3374 }
 0xd4d   :  { %v2391_v6 = vsel %vm821_vm11, %v4427_v25, 0.0 }
 0xd55   :  { %2414 = vrot.lane.b32.xlu2 %v4229_v10, %s3464_s30 }
 0xd5a   :  { %2289 = vrot.lane.b32.xlu0 %v4239_v42, %s3463_s8 }
 0xd5d   :  { %2439 = vrot.lane.b32.xlu2 %v4239_v42, %s3464_s30 }
 0xd5f   :  { %2264 = vrot.lane.b32.xlu1 %v4229_v10, %s3463_s8  ;;  %v2383_v10 = vmul.f32 1.442695, %v2376_v37 }
 0xd7a   :  { %v1937_v28 = vpop.xlane.xlu1 %1936 }
 0xd7b   :  { %3376 = vrcp.f32 %v1937_v28 }
 0xd7c   :  { %3378 = vpow2.f32 %v2233_v23 }
 0xd81   :  { %v3377_v33 = vpop.eup %3376 }
 0xd82   :  { %v1940_v42 = vpop.xlane.xlu0 %1939  ;;  %v4431_v41 = vpop.eup %3378  ;;  %v1951_v4 = vmul.f32 %v3377_v33, %v4353_v12 }
 0xd83   :  { %3380 = vrcp.f32 %v1940_v42  ;;  %v2244_v54 = vsel %vm821_vm11, %v4431_v41, 0.0 }
 0xd84   :  { %2392 = vadd.xlane.f32.xlu0 %v2391_v6  ;;  %3382 = vpow2.f32 %v2383_v10  ;;  %v1955_v51 = vpack.c.bf16 %v1951_v4, %v1951_v4 }
 0xd86   :  { %v1961_v47 = vunpack.c.l.b16 %v1955_v51 }
 0xd89   :  { %v3381_v40 = vpop.eup %3380  ;;  %2245 = vadd.xlane.f32.xlu1 %v2244_v54 }
 0xd8a   :  { %v1952_v35 = vmul.f32 %v3381_v40, %v4357_v18  ;;  %v4437_v29 = vpop.eup %3382 }
 0xd8b   :  { %v2394_v58 = vsel %vm821_vm11, %v4437_v29, 0.0 }
 0xd8c   :  { %v1956_v45 = vpack.c.bf16 %v1952_v35, %v1952_v35 }
 0xd8e   :  { %v1962_v13 = vunpack.c.l.b16 %v1956_v45 }
 0xd90   :  { %v1963_v20 = vpack.c.b16 %v1962_v13, %v1961_v47  ;;  %v1943_v55 = vpop.xlane.xlu2 %1942 }
 0xd91   :  { %2395 = vadd.xlane.f32.xlu1 %v2394_v58  ;;  %3384 = vrcp.f32 %v1943_v55 }
 0xd92   :  { %3081 = vmatmul.msk.bf16.vlgmr.msrb.gmra.mxu0 %vm821_vm11, %v1963_v20 }
 0xd97   :  { %v3385_v63 = vpop.eup %3384 }
 0xd98   :  { %v2087_v12 = vpop.xlane.xlu2 %2086  ;;  %v1953_v18 = vmul.f32 %v3385_v63, %v4364_v24 }
 0xd99   :  { %v1946_v5 = vpop.xlane.xlu1 %1945 }
 0xd9a   :  { %3386 = vrcp.f32 %v1946_v5  ;;  %v1957_v39 = vpack.c.bf16 %v1953_v18, %v1953_v18 }
 0xd9b   :  { %3388 = vrcp.f32 %v2087_v12 }
 0xd9c   :  { %v1986_v34 = vunpack.c.l.b16 %v1957_v39 }
 0xda0   :  { %v3387_v16 = vpop.eup %3386 }
 0xda1   :  { %v1954_v27 = vmul.f32 %v3387_v16, %v4371_v38  ;;  %v2090_v48 = vpop.xlane.xlu1 %2089  ;;  %v3389_v9 = vpop.eup %3388 }
 0xda2   :  { %3390 = vrcp.f32 %v2090_v48  ;;  %v2101_v31 = vmul.f32 %v3389_v9, %v4369_v11 }
 0xda3   :  { %v1958_v32 = vpack.c.bf16 %v1954_v27, %v1954_v27 }
 0xda4   :  { %v2105_v22 = vpack.c.bf16 %v2101_v31, %v2101_v31 }
 0xda5   :  { %v1987_v49 = vunpack.c.l.b16 %v1958_v32 }
 0xda6   :  { %v2111_v57 = vunpack.c.l.b16 %v2105_v22 }
 0xda7   :  { %v1988_v7 = vpack.c.b16 %v1987_v49, %v1986_v34 }
 0xda8   :  { %v3391_v56 = vpop.eup %3390  ;;  %v2096_v15 = vpop.xlane.xlu0 %2095 }
 0xda9   :  { %v2102_v19 = vmul.f32 %v3391_v56, %v4379_v46  ;;  %3082 = vmatmul.msk.bf16.vlgmr.msrb.gmra.mxu1 %vm821_vm11, %v1988_v7  ;;  %v2093_v24 = vpop.xlane.xlu1 %2092  ;;  %3392 = vrcp.f32 %v2096_v15 }
 0xdaa   :  { %3394 = vrcp.f32 %v2093_v24 }
 0xdab   :  { %v2106_v38 = vpack.c.bf16 %v2102_v19, %v2102_v19 }
 0xdad   :  { %v2112_v26 = vunpack.c.l.b16 %v2106_v38 }
 0xdaf   :  { %v3393_v52 = vpop.eup %3392  ;;  %v2113_v44 = vpack.c.b16 %v2112_v26, %v2111_v57 }
 0xdb0   :  { %v3395_v36 = vpop.eup %3394  ;;  %v2104_v11 = vmul.f32 %v3393_v52, %v4388_v8  ;;  %v2243_v33 = vpop.xlane.xlu2 %2242 }
 0xdb1   :  { %v2103_v1 = vmul.f32 %v3395_v36, %v4385_v61  ;;  %v2237_v53 = vpop.xlane.xlu1 %2236  ;;  %3085 = vmatmul.msk.bf16.vlgmr.msra.gmra.mxu0 %vm821_vm11, %v2113_v44  ;;  %v2387_v10 = vpop.xlane.xlu0 %2386 }
 0xdb2   :  { %v2108_v28 = vpack.c.bf16 %v2104_v11, %v2104_v11 }
 0xdb3   :  { %v2107_v46 = vpack.c.bf16 %v2103_v1, %v2103_v1 }
 0xdb4   :  { %v2137_v23 = vunpack.c.l.b16 %v2108_v28 }
 0xdb5   :  { %v2136_v37 = vunpack.c.l.b16 %v2107_v46 }
 0xdb7   :  { %v2138_v42 = vpack.c.b16 %v2137_v23, %v2136_v37 }
 0xdb8   :  { %v2415_v4 = vpop.permute.xlu2 %2414 }
 0xdb9   :  { %3086 = vmatmul.msk.bf16.vlgmr.msra.gmra.mxu1 %vm821_vm11, %v2138_v42  ;;  %v2240_v6 = vpop.xlane.xlu1 %2239  ;;  %v2390_v8 = vpop.xlane.xlu0 %2389 }
 0xdba   :  { %3396 = vrcp.f32 %v2240_v6 }
 0xdbb   :  { %3398 = vrcp.f32 %v2237_v53 }
 0xdbc   :  { %3400 = vrcp.f32 %v2390_v8 }
 0xdbd   :  { %3402 = vrcp.f32 %v2387_v10 }
 0xdbe   :  { %3404 = vrcp.f32 %v2243_v33 }
 0xdc0   :  { %v3397_v54 = vpop.eup %3396  ;;  %v2440_v13 = vpop.permute.xlu2 %2439 }
 0xdc1   :  { %v3399_v40 = vpop.eup %3398  ;;  %v2252_v61 = vmul.f32 %v3397_v54, %v4408_v59 }
 0xdc2   :  { %v2251_v51 = vmul.f32 %v3399_v40, %v4395_v50  ;;  %v3401_v5 = vpop.eup %3400 }
 0xdc3   :  { %v2256_v35 = vpack.c.bf16 %v2252_v61, %v2252_v61  ;;  %v3403_v59 = vpop.eup %3402  ;;  %v2402_v50 = vmul.f32 %v3401_v5, %v4410_v43 }
 0xdc4   :  { %v2255_v47 = vpack.c.bf16 %v2251_v51, %v2251_v51  ;;  %v2401_v63 = vmul.f32 %v3403_v59, %v4400_v0  ;;  %v3405_v32 = vpop.eup %3404 }
 0xdc5   :  { %v2262_v20 = vunpack.c.l.b16 %v2256_v35  ;;  %v2406_v18 = vpack.c.bf16 %v2402_v50, %v2402_v50  ;;  %v2253_v34 = vmul.f32 %v3405_v32, %v4398_v17 }
 0xdc6   :  { %v2261_v55 = vunpack.c.l.b16 %v2255_v47  ;;  %v2405_v16 = vpack.c.bf16 %v2401_v63, %v2401_v63 }
 0xdc7   :  { %v2412_v39 = vunpack.c.l.b16 %v2406_v18  ;;  %v2257_v49 = vpack.c.bf16 %v2253_v34, %v2253_v34 }
 0xdc8   :  { %v2263_v12 = vpack.c.b16 %v2262_v20, %v2261_v55  ;;  %v2411_v27 = vunpack.c.l.b16 %v2405_v16  ;;  %v3173_v20 = vld [vmem:[%s4623_s13 + $0x10] sm:$0xff] }
 0xdc9   :  { %v2286_v15 = vunpack.c.l.b16 %v2257_v49 }
 0xdca   :  { %v2413_v48 = vpack.c.b16 %v2412_v39, %v2411_v27 }
 0xdcc   :  { %v2290_v45 = vpop.permute.xlu0 %2289 }
 0xdcd   :  { %2302 = vmatpush.bf16.msrb.mxu1 %v2290_v45  ;;  %v3174_v45 = vld [vmem:[%s4623_s13 + $0x18] sm:$0xff] }
 0xdce   :  { %2551 = vmatpush.bf16.msra.mxu2 %v3174_v45 }
 0xdd1   :  { %2452 = vmatpush.bf16.msra.mxu1 %v2440_v13  ;;  %v2265_v58 = vpop.permute.xlu1 %2264 }
 0xdd2   :  { %2277 = vmatpush.bf16.msrb.mxu0 %v2265_v58  ;;  %2552 = vmatpush.bf16.msra.mxu2 %v3173_v20 }
 0xdd5   :  { %3089 = vmatmul.msk.bf16.vlgmr.msrb.gmra.mxu0 %vm821_vm11, %v2263_v12 }
 0xdd6   :  { %2427 = vmatpush.bf16.msra.mxu0 %v2415_v4 }
 0xde5   :  { %3093 = vmatmul.msk.bf16.vlgmr.msra.gmra.mxu0 %vm821_vm11, %v2413_v48 }
 0xdf7   :  { %v2393_v7 = vpop.xlane.xlu0 %2392 }
 0xdfc   :  { %v2246_v9 = vpop.xlane.xlu1 %2245 }
 0xdfd   :  { %3406 = vrcp.f32 %v2246_v9 }
 0xe03   :  { %v3407_v31 = vpop.eup %3406 }
 0xe04   :  { %v2254_v43 = vmul.f32 %v3407_v31, %v4431_v41  ;;  %v2396_v56 = vpop.xlane.xlu1 %2395 }
 0xe05   :  { %3408 = vrcp.f32 %v2396_v56 }
 0xe06   :  { %v2258_v0 = vpack.c.bf16 %v2254_v43, %v2254_v43  ;;  %3410 = vrcp.f32 %v2393_v7 }
 0xe08   :  { %v2287_v22 = vunpack.c.l.b16 %v2258_v0 }
 0xe0a   :  { %v2288_v19 = vpack.c.b16 %v2287_v22, %v2286_v15 }
 0xe0b   :  { %v3409_v24 = vpop.eup %3408 }
 0xe0c   :  { %3090 = vmatmul.msk.bf16.vlgmr.msrb.gmra.mxu1 %vm821_vm11, %v2288_v19  ;;  %v3411_v38 = vpop.eup %3410  ;;  %v2404_v57 = vmul.f32 %v3409_v24, %v4437_v29 }
 0xe0d   :  { %v2403_v17 = vmul.f32 %v3411_v38, %v4427_v25 }
 0xe0e   :  { %v2408_v26 = vpack.c.bf16 %v2404_v57, %v2404_v57 }
 0xe0f   :  { %v2407_v52 = vpack.c.bf16 %v2403_v17, %v2403_v17  ;;  %v1979_v11 = vpop.f32.mrf.mxu0 }
 0xe10   :  { %v2437_v44 = vunpack.c.l.b16 %v2408_v26 }
 0xe11   :  { %v2436_v36 = vunpack.c.l.b16 %v2407_v52 }
 0xe13   :  { %v2438_v41 = vpack.c.b16 %v2437_v44, %v2436_v36 }
 0xe17   :  { %v1981_v1 = vpop.f32.mrf.mxu0 }
 0xe1c   :  { %3094 = vmatmul.msk.bf16.vlgmr.msra.gmra.mxu1 %vm821_vm11, %v2438_v41  ;;  %v4492_v41 = vld [vmem:[%s4627_s17 + $0x8] sm:$0x3f] }
 0xe26   :  { %v2004_v23 = vpop.f32.mrf.mxu1 }
 0xe2e   :  { %v2129_v53 = vpop.f32.mrf.mxu0  ;;  %v2006_v33 = vpop.f32.mrf.mxu1 }
 0xe36   :  { %v2131_v28 = vpop.f32.mrf.mxu0  ;;  %v2154_v10 = vpop.f32.mrf.mxu1 }
 0xe37   :  { %v3230_v46 = vpack.i.bf16 %v2131_v28, %v2129_v53 }
 0xe39   :  { %3231 = vrot.lane.b32.xlu1 %v3230_v46, %s3465_s0 }
 0xe3e   :  { %v2156_v54 = vpop.f32.mrf.mxu1 }
 0xe3f   :  { %v3245_v8 = vpack.i.bf16 %v2156_v54, %v2154_v10 }
 0xe52   :  { %v2279_v37 = vpop.f32.mrf.mxu0 }
 0xe5a   :  { %v2281_v42 = vpop.f32.mrf.mxu0 }
 0xe5b   :  { %v3235_v29 = vpack.i.bf16 %v2281_v42, %v2279_v37 }
 0xe5d   :  { %3236 = vrot.lane.b32.xlu2 %v3235_v29, %s4648_s12 }
 0xe62   :  { %v2429_v25 = vpop.f32.mrf.mxu0 }
 0xe6a   :  { %v2431_v6 = vpop.f32.mrf.mxu0 }
 0xe6b   :  { %v3240_v4 = vpack.i.bf16 %v2431_v6, %v2429_v25 }
 0xe6d   :  { %3241 = vrot.lane.b32.xlu2 %v3240_v4, %s4649_s25 }
 0xe75   :  { %3246 = vrot.lane.b32.xlu2 %v3245_v8, %s3465_s0 }
 0xe89   :  { %v2304_v40 = vpop.f32.mrf.mxu1 }
 0xe91   :  { %v2306_v61 = vpop.f32.mrf.mxu1 }
 0xe92   :  { %v3250_v51 = vpack.i.bf16 %v2306_v61, %v2304_v40 }
 0xe94   :  { %3251 = vrot.lane.b32.xlu1 %v3250_v51, %s4648_s12  ;;  %s3470_s12 = smov [#allocation2]  }
 0xe99   :  { %v2454_v35 = vpop.f32.mrf.mxu1 }
 0xea1   :  { %v2456_v47 = vpop.f32.mrf.mxu1 }
 0xea2   :  { %v3255_v13 = vpack.i.bf16 %v2456_v47, %v2454_v35 }
 0xea4   :  { %3256 = vrot.lane.b32.xlu0 %v3255_v13, %s4649_s25  ;;  %s2952_s25 = sshll.u32 %s3470_s12, 4  ;;  %s2953_s25 = int_to_ptr.vmem [resolvable:$true] %s2952_s25 }
 0xeab   :  { %v3232_v58 = vpop.permute.xlu1 %3231 }
 0xeac   :  { %v3234_v12 = vunpack.i.h.bf16 %v3232_v58  ;;  %v3233_v5 = vunpack.i.l.bf16 %v3232_v58 }
 0xeae   :  { %v2508_v18 = vsel %vm254_vm7, %v1981_v1, %v3234_v12  ;;  %v2507_v16 = vsel %vm254_vm7, %v1979_v11, %v3233_v5  ;;  %v2526_v11 = vperm.slane %v4492_v41, 0 }
 0xeb7   :  { %v3237_v55 = vpop.permute.xlu2 %3236 }
 0xeb8   :  { %v3239_v59 = vunpack.i.h.bf16 %v3237_v55  ;;  %v3238_v50 = vunpack.i.l.bf16 %v3237_v55 }
 0xeba   :  { %v2512_v48 = vsel %vm821_vm11, %v2508_v18, %v3239_v59  ;;  %v2511_v9 = vsel %vm821_vm11, %v2507_v16, %v3238_v50 }
 0xec7   :  { %v3242_v63 = vpop.permute.xlu2 %3241 }
 0xec8   :  { %v3244_v39 = vunpack.i.h.bf16 %v3242_v63  ;;  %v3243_v27 = vunpack.i.l.bf16 %v3242_v63 }
 0xeca   :  { %v2516_v32 = vsel %vm1426_vm12, %v2512_v48, %v3244_v39  ;;  %v2515_v34 = vsel %vm1426_vm12, %v2511_v9, %v3243_v27  ;;  %v3176_v39 = vld [vmem:[%s4624_s14 + $0x18] sm:$0xff] }
 0xecb   :  { %v2519_v31 = vpack.c.bf16 %v2516_v32, %v2515_v34  ;;  %2702 = vmatpush.bf16.msrb.mxu3 %v3176_v39  ;;  %v3175_v32 = vld [vmem:[%s4624_s14 + $0x10] sm:$0xff]  ;;  %v3180_v39 = vld [vmem:[%s4626_s16 + $0x38] sm:$0xff] }
 0xecc   :  { %2765 = vmatpush.bf16.msrb.mxu0 %v3180_v39 }
 0xecd   :  { %3107 = vmatmul.msk.bf16.vlgmr.msra.gmra.mxu2 %vm733_vm10, %v2519_v31 }
 0xecf   :  { %v3247_v49 = vpop.permute.xlu2 %3246  ;;  %2703 = vmatpush.bf16.msrb.mxu3 %v3175_v32 }
 0xed0   :  { %v3249_v43 = vunpack.i.h.bf16 %v3247_v49  ;;  %v3248_v56 = vunpack.i.l.bf16 %v3247_v49 }
 0xed2   :  { %v2510_v19 = vsel %vm254_vm7, %v2006_v33, %v3249_v43  ;;  %v2509_v24 = vsel %vm254_vm7, %v2004_v23, %v3248_v56 }
 0xf06   :  { %v3252_v7 = vpop.permute.xlu1 %3251 }
 0xf07   :  { %v3254_v0 = vunpack.i.h.bf16 %v3252_v7  ;;  %v3253_v15 = vunpack.i.l.bf16 %v3252_v7 }
 0xf09   :  { %v2514_v17 = vsel %vm821_vm11, %v2510_v19, %v3254_v0  ;;  %v2513_v26 = vsel %vm821_vm11, %v2509_v24, %v3253_v15 }
 0xf16   :  { %v3257_v22 = vpop.permute.xlu0 %3256 }
 0xf17   :  { %v3259_v38 = vunpack.i.h.bf16 %v3257_v22  ;;  %v3258_v57 = vunpack.i.l.bf16 %v3257_v22 }
 0xf19   :  { %v2518_v52 = vsel %vm1426_vm12, %v2514_v17, %v3259_v38  ;;  %v2517_v44 = vsel %vm1426_vm12, %v2513_v26, %v3258_v57 }
 0xf1a   :  { %v2520_v36 = vpack.c.bf16 %v2518_v52, %v2517_v44  ;;  %v2656_v52 = vperm.slane %v4492_v41, 2 }
 0xf1c   :  { %3108 = vmatmul.msk.bf16.gmra.mxu2 %vm733_vm10, %v2520_v36 }
 0xf50   :  { %v2554_v1 = vpop.f32.mrf.mxu2 }
 0xf51   :  { %v2555_v53 = vadd.f32 %v2554_v1, %v2526_v11  ;;  %v2661_v1 = vperm.slane %v4492_v41, 3 }
 0xf53   :  { %v2564_v28 = vadd.f32 %v2555_v53, %v4208_v62 }
 0xf55   :  { %v2568_v46 = vsel %vm733_vm10, %v2564_v28, 0.0 }
 0xf56   :  { %2569 = vadd.xlane.f32.xlu2 %v2568_v46 }
 0xf58   :  { %v2556_v23 = vpop.f32.mrf.mxu2 }
 0xf59   :  { %v2557_v37 = vadd.f32 %v2556_v23, %v2526_v11 }
 0xf5b   :  { %v2565_v42 = vadd.f32 %v2557_v37, %v4210_v60 }
 0xf5d   :  { %v2571_v29 = vsel %vm733_vm10, %v2565_v42, 0.0 }
 0xf5e   :  { %2572 = vadd.xlane.f32.xlu1 %v2571_v29 }
 0xf9f   :  { %v2559_v33 = vpop.f32.mrf.mxu2 }
 0xfa0   :  { %v2560_v25 = vadd.f32 %v2559_v33, %v2526_v11 }
 0xfa2   :  { %v2566_v10 = vadd.f32 %v2560_v25, %v4219_v21 }
 0xfa4   :  { %v2574_v6 = vsel %vm733_vm10, %v2566_v10, 0.0 }
 0xfa5   :  { %2575 = vadd.xlane.f32.xlu0 %v2574_v6 }
 0xfa7   :  { %v2561_v4 = vpop.f32.mrf.mxu2 }
 0xfa8   :  { %v2562_v54 = vadd.f32 %v2561_v4, %v2526_v11 }
 0xfaa   :  { %v2567_v62 = vadd.f32 %v2562_v54, %v4221_v30 }
 0xfac   :  { %v2577_v8 = vsel %vm733_vm10, %v2567_v62, 0.0 }
 0xfad   :  { %2578 = vadd.xlane.f32.xlu2 %v2577_v8 }
 0xfc9   :  { %v2570_v40 = vpop.xlane.xlu2 %2569 }
 0xfca   :  { %v2580_v60 = vmul.f32 %v2570_v40, %v4118_v2 }
 0xfcc   :  { %v2584_v61 = vsub.f32 %v2564_v28, %v2580_v60 }
 0xfce   :  { %v2588_v51 = vmul.f32 %v2584_v61, %v2584_v61 }
 0xfd0   :  { %v2592_v35 = vsel %vm733_vm10, %v2588_v51, 0.0 }
 0xfd1   :  { %2593 = vadd.xlane.f32.xlu1 %v2592_v35  ;;  %v2573_v45 = vpop.xlane.xlu1 %2572 }
 0xfd2   :  { %v2581_v21 = vmul.f32 %v2573_v45, %v4118_v2 }
 0xfd4   :  { %v2585_v47 = vsub.f32 %v2565_v42, %v2581_v21 }
 0xfd6   :  { %v2589_v13 = vmul.f32 %v2585_v47, %v2585_v47 }
 0xfd8   :  { %v2595_v20 = vsel %vm733_vm10, %v2589_v13, 0.0 }
 0xfd9   :  { %2596 = vadd.xlane.f32.xlu2 %v2595_v20 }
0x1018   :  { %v2576_v30 = vpop.xlane.xlu0 %2575 }
0x1019   :  { %v2582_v55 = vmul.f32 %v2576_v30, %v4118_v2 }
0x101b   :  { %v4508_v58 = vsub.f32 %v2566_v10, %v2582_v55 }
0x101d   :  { %v2590_v12 = vmul.f32 %v4508_v58, %v4508_v58 }
0x101f   :  { %v2598_v5 = vsel %vm733_vm10, %v2590_v12, 0.0 }
0x1020   :  { %v2579_v59 = vpop.xlane.xlu2 %2578  ;;  %2599 = vadd.xlane.f32.xlu1 %v2598_v5 }
0x1021   :  { %v2583_v50 = vmul.f32 %v2579_v59, %v4118_v2 }
0x1023   :  { %v4514_v63 = vsub.f32 %v2567_v62, %v2583_v50 }
0x1025   :  { %v2591_v18 = vmul.f32 %v4514_v63, %v4514_v63 }
0x1027   :  { %v2601_v16 = vsel %vm733_vm10, %v2591_v18, 0.0 }
0x1028   :  { %2602 = vadd.xlane.f32.xlu2 %v2601_v16 }
0x1044   :  { %v2594_v27 = vpop.xlane.xlu1 %2593 }
0x1045   :  { %v2604_v48 = vmul.f32 %v2594_v27, %v4118_v2  ;;  %v3177_v27 = vld [vmem:[%s4626_s16 + $0x20] sm:$0xff] }
0x1047   :  { %v2608_v9 = vadd.f32 1e-05, %v2604_v48 }
0x1049   :  { %3412 = vrsqrt.f32 %v2608_v9  ;;  %vm2618_vm11 = vweird.f32 %v2608_v9 }
0x104c   :  { %v2597_v34 = vpop.xlane.xlu2 %2596 }
0x104d   :  { %v2605_v31 = vmul.f32 %v2597_v34, %v4118_v2 }
0x104f   :  { %v3413_v49 = vpop.eup %3412  ;;  %v2609_v7 = vadd.f32 1e-05, %v2605_v31 }
0x1050   :  { %v2613_v43 = vmul.f32 %v3413_v49, %v2608_v9  ;;  %vm2619_vm7 = vweird.f32 %v3413_v49  ;;  %v3264_v9 = vld [vmem:[%s4625_s15 + $0x1] ss:$0 sm:$0xff] }
0x1051   :  { %3414 = vrsqrt.f32 %v2609_v7  ;;  %vm2620_vm12 = vmor %vm2618_vm11, %vm2619_vm7  ;;  %vm2628_vm1 = vweird.f32 %v2609_v7 }
0x1052   :  { %v2614_v56 = vmul.f32 %v3413_v49, %v2613_v43 }
0x1054   :  { %v2615_v0 = vmul.f32 0.5, %v2614_v56 }
0x1056   :  { %v2616_v15 = vsub.f32 1.5, %v2615_v0 }
0x1057   :  { %v3415_v22 = vpop.eup %3414 }
0x1058   :  { %v2617_v19 = vmul.f32 %v3413_v49, %v2616_v15  ;;  %v2623_v24 = vmul.f32 %v3415_v22, %v2609_v7  ;;  %vm2629_vm0 = vweird.f32 %v3415_v22 }
0x1059   :  { %vm2630_vm2 = vmor %vm2628_vm1, %vm2629_vm0 }
0x105a   :  { %v2624_v38 = vmul.f32 %v3415_v22, %v2623_v24  ;;  %v2621_v57 = vsel %vm2620_vm12, %v3413_v49, %v2617_v19 }
0x105b   :  { %v2652_v44 = vmul.f32 %v2621_v57, %v2584_v61  ;;  %v2730_v57 = vperm.slane %v4492_v41, 1 }
0x105c   :  { %v2625_v17 = vmul.f32 0.5, %v2624_v38 }
0x105d   :  { %v2657_v53 = vmul.f32 %v2656_v52, %v2652_v44 }
0x105e   :  { %v2626_v26 = vsub.f32 1.5, %v2625_v17 }
0x105f   :  { %v4529_v23 = vadd.f32 %v2661_v1, %v2657_v53 }
0x1060   :  { %v2627_v36 = vmul.f32 %v3415_v22, %v2626_v26 }
0x1062   :  { %v2631_v11 = vsel %vm2630_vm2, %v3415_v22, %v2627_v36 }
0x1063   :  { %v2653_v28 = vmul.f32 %v2631_v11, %v2585_v47 }
0x1065   :  { %v2658_v46 = vmul.f32 %v2656_v52, %v2653_v28 }
0x1067   :  { %v4531_v37 = vadd.f32 %v2661_v1, %v2658_v46 }
0x1069   :  { %v2666_v42 = vpack.c.bf16 %v4531_v37, %v4529_v23 }
0x106b   :  { %3122 = vmatmul.msk.bf16.vlgmr.msrb.gmra.mxu3 %vm733_vm10, %v2666_v42 }
0x1093   :  { %v2600_v29 = vpop.xlane.xlu1 %2599 }
0x1094   :  { %v2606_v33 = vmul.f32 %v2600_v29, %v4118_v2 }
0x1096   :  { %v2610_v25 = vadd.f32 1e-05, %v2606_v33 }
0x1098   :  { %3416 = vrsqrt.f32 %v2610_v25  ;;  %vm2638_vm4 = vweird.f32 %v2610_v25 }
0x109b   :  { %v2603_v10 = vpop.xlane.xlu2 %2602 }
0x109c   :  { %v2607_v6 = vmul.f32 %v2603_v10, %v4118_v2 }
0x109e   :  { %v3417_v4 = vpop.eup %3416  ;;  %v2611_v54 = vadd.f32 1e-05, %v2607_v6 }
0x109f   :  { %v2633_v62 = vmul.f32 %v3417_v4, %v2610_v25  ;;  %vm2639_vm3 = vweird.f32 %v3417_v4 }
0x10a0   :  { %3418 = vrsqrt.f32 %v2611_v54  ;;  %vm2640_vm5 = vmor %vm2638_vm4, %vm2639_vm3  ;;  %vm2648_vm8 = vweird.f32 %v2611_v54 }
0x10a1   :  { %v2634_v8 = vmul.f32 %v3417_v4, %v2633_v62 }
0x10a3   :  { %v2635_v40 = vmul.f32 0.5, %v2634_v8 }
0x10a5   :  { %v2636_v60 = vsub.f32 1.5, %v2635_v40 }
0x10a6   :  { %v3419_v61 = vpop.eup %3418 }
0x10a7   :  { %v2637_v51 = vmul.f32 %v3417_v4, %v2636_v60  ;;  %v2643_v35 = vmul.f32 %v3419_v61, %v2611_v54  ;;  %vm2649_vm6 = vweird.f32 %v3419_v61 }
0x10a8   :  { %vm2650_vm9 = vmor %vm2648_vm8, %vm2649_vm6  ;;  %vm2945_vm8 = vcmask 33792  }
0x10a9   :  { %v2644_v45 = vmul.f32 %v3419_v61, %v2643_v35  ;;  %v2641_v21 = vsel %vm2640_vm5, %v3417_v4, %v2637_v51 }
0x10aa   :  { %v2654_v20 = vmul.f32 %v2641_v21, %v4508_v58  ;;  %v3179_v58 = vld [vmem:[%s4626_s16 + $0x30] sm:$0xff] }
0x10ab   :  { %v2645_v47 = vmul.f32 0.5, %v2644_v45  ;;  %2766 = vmatpush.bf16.msrb.mxu0 %v3179_v58 }
0x10ac   :  { %v2659_v5 = vmul.f32 %v2656_v52, %v2654_v20 }
0x10ad   :  { %v2646_v13 = vsub.f32 1.5, %v2645_v47 }
0x10ae   :  { %v2664_v50 = vadd.f32 %v2661_v1, %v2659_v5 }
0x10af   :  { %v2647_v30 = vmul.f32 %v3419_v61, %v2646_v13 }
0x10b1   :  { %v2651_v55 = vsel %vm2650_vm9, %v3419_v61, %v2647_v30 }
0x10b2   :  { %v2655_v12 = vmul.f32 %v2651_v55, %v4514_v63  ;;  %v3178_v63 = vld [vmem:[%s4626_s16 + $0x28] sm:$0xff] }
0x10b3   :  { %2767 = vmatpush.bf16.msrb.mxu0 %v3178_v63 }
0x10b4   :  { %v2660_v59 = vmul.f32 %v2656_v52, %v2655_v12 }
0x10b6   :  { %v2665_v18 = vadd.f32 %v2661_v1, %v2660_v59 }
0x10b7   :  { %2768 = vmatpush.bf16.msrb.mxu0 %v3177_v27 }
0x10b8   :  { %v2667_v16 = vpack.c.bf16 %v2665_v18, %v2664_v50 }
0x10ba   :  { %3123 = vmatmul.msk.bf16.gmra.mxu3 %vm733_vm10, %v2667_v16 }
0x10ee   :  { %v2705_v48 = vpop.f32.mrf.mxu3 }
0x10ef   :  { %v2706_v32 = vadd.f32 %v3264_v9, %v2705_v48 }
0x10f1   :  { %v2715_v49 = vmax.f32 %v2706_v32, 0.0 }
0x10f6   :  { %v2707_v34 = vpop.f32.mrf.mxu3 }
0x10f7   :  { %v2708_v31 = vadd.f32 %v3264_v9, %v2707_v34 }
0x10f9   :  { %v2716_v7 = vmax.f32 %v2708_v31, 0.0 }
0x10fb   :  { %v2719_v43 = vpack.c.bf16 %v2716_v7, %v2715_v49 }
0x10fd   :  { %3148 = vmatmul.msk.bf16.vlgmr.msrb.gmra.mxu0 %vm1670_vm14, %v2719_v43 }
0x113d   :  { %v2710_v56 = vpop.f32.mrf.mxu3 }
0x113e   :  { %v2711_v0 = vadd.f32 %v3264_v9, %v2710_v56 }
0x1140   :  { %v2717_v19 = vmax.f32 %v2711_v0, 0.0 }
0x1145   :  { %v2712_v15 = vpop.f32.mrf.mxu3 }
0x1146   :  { %v2713_v22 = vadd.f32 %v3264_v9, %v2712_v15 }
0x1148   :  { %v2718_v24 = vmax.f32 %v2713_v22, 0.0 }
0x114a   :  { %v2720_v38 = vpack.c.bf16 %v2718_v24, %v2717_v19 }
0x114c   :  { %3149 = vmatmul.msk.bf16.gmra.mxu0 %vm1670_vm14, %v2720_v38 }
0x117a   :  { %v2770_v17 = vpop.f32.mrf.mxu0 }
0x117b   :  { %v2771_v26 = vadd.f32 %v2770_v17, %v2730_v57 }
0x117d   :  { %v2780_v52 = vadd.f32 %v2771_v26, %v4529_v23 }
0x117f   :  { %v2784_v44 = vsel %vm733_vm10, %v2780_v52, 0.0 }
0x1180   :  { %2785 = vadd.xlane.f32.xlu2 %v2784_v44 }
0x1182   :  { %v2772_v36 = vpop.f32.mrf.mxu0 }
0x1183   :  { %v2773_v28 = vadd.f32 %v2772_v36, %v2730_v57 }
0x1185   :  { %v2781_v33 = vadd.f32 %v2773_v28, %v4531_v37 }
0x1187   :  { %v2787_v23 = vsel %vm733_vm10, %v2781_v33, 0.0 }
0x11c9   :  { %v2775_v11 = vpop.f32.mrf.mxu0 }
0x11ca   :  { %v2776_v1 = vadd.f32 %v2775_v11, %v2730_v57 }
0x11cc   :  { %v2782_v53 = vadd.f32 %v2776_v1, %v2664_v50 }
0x11ce   :  { %v2790_v46 = vsel %vm733_vm10, %v2782_v53, 0.0 }
0x11cf   :  { %2791 = vadd.xlane.f32.xlu0 %v2790_v46 }
0x11d1   :  { %v2777_v42 = vpop.f32.mrf.mxu0 }
0x11d2   :  { %v2778_v29 = vadd.f32 %v2777_v42, %v2730_v57 }
0x11d4   :  { %v2783_v25 = vadd.f32 %v2778_v29, %v2665_v18 }
0x11d6   :  { %v2793_v10 = vsel %vm733_vm10, %v2783_v25, 0.0 }
0x11d7   :  { %2794 = vadd.xlane.f32.xlu1 %v2793_v10  ;;  %2788 = vadd.xlane.f32.xlu0 %v2787_v23  ;;  %v2872_v23 = vperm.slane %v4492_v41, 4 }
0x11f3   :  { %v2786_v6 = vpop.xlane.xlu2 %2785 }
0x11f4   :  { %v2796_v4 = vmul.f32 %v2786_v6, %v4118_v2 }
0x11f6   :  { %v4566_v54 = vsub.f32 %v2780_v52, %v2796_v4 }
0x11f8   :  { %v2804_v62 = vmul.f32 %v4566_v54, %v4566_v54 }
0x11fa   :  { %v2808_v8 = vsel %vm733_vm10, %v2804_v62, 0.0 }
0x11fb   :  { %2809 = vadd.xlane.f32.xlu0 %v2808_v8 }
0x1242   :  { %v2792_v40 = vpop.xlane.xlu0 %2791 }
0x1243   :  { %v2798_v37 = vmul.f32 %v2792_v40, %v4118_v2 }
0x1245   :  { %v2802_v60 = vsub.f32 %v2782_v53, %v2798_v37 }
0x1247   :  { %v2806_v61 = vmul.f32 %v2802_v60, %v2802_v60 }
0x1249   :  { %v2814_v51 = vsel %vm733_vm10, %v2806_v61, 0.0 }
0x124a   :  { %v2795_v35 = vpop.xlane.xlu1 %2794  ;;  %2815 = vadd.xlane.f32.xlu1 %v2814_v51  ;;  %v2789_v45 = vpop.xlane.xlu0 %2788 }
0x124b   :  { %v2799_v21 = vmul.f32 %v2795_v35, %v4118_v2  ;;  %v2797_v47 = vmul.f32 %v2789_v45, %v4118_v2 }
0x124d   :  { %v4575_v13 = vsub.f32 %v2783_v25, %v2799_v21  ;;  %v4577_v20 = vsub.f32 %v2781_v33, %v2797_v47  ;;  %v2884_v25 = vmul.u32 16, %v3597_v14  ;;  %v2877_v14 = vperm.slane %v4492_v41, 5  ;;  %v3181_v41 = vld [vmem:[%s4628_s18] sm:$0xff] }
0x124f   :  { %v2807_v30 = vmul.f32 %v4575_v13, %v4575_v13  ;;  %v2805_v55 = vmul.f32 %v4577_v20, %v4577_v20  ;;  %v2885_v61 = vadd.s32 15, %v2884_v25 }
0x1251   :  { %v2817_v12 = vsel %vm733_vm10, %v2807_v30, 0.0  ;;  %v2811_v5 = vsel %vm733_vm10, %v2805_v55, 0.0 }
0x1252   :  { %2818 = vadd.xlane.f32.xlu2 %v2817_v12  ;;  %2812 = vadd.xlane.f32.xlu1 %v2811_v5 }
0x126e   :  { %v2810_v59 = vpop.xlane.xlu0 %2809 }
0x126f   :  { %v2820_v50 = vmul.f32 %v2810_v59, %v4118_v2 }
0x1271   :  { %v2824_v18 = vadd.f32 1e-05, %v2820_v50 }
0x1273   :  { %3420 = vrsqrt.f32 %v2824_v18  ;;  %vm2834_vm11 = vweird.f32 %v2824_v18 }
0x1279   :  { %v3421_v63 = vpop.eup %3420 }
0x127a   :  { %v2829_v27 = vmul.f32 %v3421_v63, %v2824_v18  ;;  %vm2835_vm7 = vweird.f32 %v3421_v63 }
0x127b   :  { %vm2836_vm0 = vmor %vm2834_vm11, %vm2835_vm7 }
0x127c   :  { %v2830_v43 = vmul.f32 %v3421_v63, %v2829_v27 }
0x127e   :  { %v2831_v15 = vmul.f32 0.5, %v2830_v43 }
0x1280   :  { %v2832_v57 = vsub.f32 1.5, %v2831_v15 }
0x1282   :  { %v2833_v36 = vmul.f32 %v3421_v63, %v2832_v57 }
0x1284   :  { %v2837_v29 = vsel %vm2836_vm0, %v3421_v63, %v2833_v36 }
0x1285   :  { %v2868_v4 = vmul.f32 %v2837_v29, %v4566_v54 }
0x1287   :  { %v2873_v47 = vmul.f32 %v2872_v23, %v2868_v4 }
0x1289   :  { %v2878_v54 = vadd.f32 %v2877_v14, %v2873_v47 }
0x12bd   :  { %v2816_v16 = vpop.xlane.xlu1 %2815 }
0x12be   :  { %v2822_v39 = vmul.f32 %v2816_v16, %v4118_v2  ;;  %v3265_v16 = vld [vmem:[%s4629_s19] ss:$0 sm:$0xff] }
0x12c0   :  { %v2826_v58 = vadd.f32 1e-05, %v2822_v39 }
0x12c2   :  { %3422 = vrsqrt.f32 %v2826_v58  ;;  %vm2854_vm13 = vweird.f32 %v2826_v58 }
0x12c5   :  { %v2819_v48 = vpop.xlane.xlu2 %2818  ;;  %v2813_v9 = vpop.xlane.xlu1 %2812 }
0x12c6   :  { %v2823_v32 = vmul.f32 %v2819_v48, %v4118_v2  ;;  %v2821_v34 = vmul.f32 %v2813_v9, %v4118_v2 }
0x12c8   :  { %v3423_v31 = vpop.eup %3422  ;;  %v2827_v49 = vadd.f32 1e-05, %v2823_v32  ;;  %v2825_v7 = vadd.f32 1e-05, %v2821_v34 }
0x12c9   :  { %v2849_v56 = vmul.f32 %v3423_v31, %v2826_v58  ;;  %vm2855_vm14 = vweird.f32 %v3423_v31 }
0x12ca   :  { %3424 = vrsqrt.f32 %v2827_v49  ;;  %vm2856_vm15 = vmor %vm2854_vm13, %vm2855_vm14  ;;  %vm2864_vm2 = vweird.f32 %v2827_v49  ;;  %vm2844_vm4 = vweird.f32 %v2825_v7 }
0x12cb   :  { %v2850_v0 = vmul.f32 %v3423_v31, %v2849_v56  ;;  %3426 = vrsqrt.f32 %v2825_v7 }
0x12cd   :  { %v2851_v22 = vmul.f32 0.5, %v2850_v0 }
0x12cf   :  { %v2852_v19 = vsub.f32 1.5, %v2851_v22 }
0x12d0   :  { %v3425_v24 = vpop.eup %3424 }
0x12d1   :  { %v3427_v38 = vpop.eup %3426  ;;  %v2853_v17 = vmul.f32 %v3423_v31, %v2852_v19  ;;  %v2859_v26 = vmul.f32 %v3425_v24, %v2827_v49  ;;  %vm2865_vm12 = vweird.f32 %v3425_v24 }
0x12d2   :  { %v2839_v52 = vmul.f32 %v3427_v38, %v2825_v7  ;;  %vm2845_vm1 = vweird.f32 %v3427_v38  ;;  %vm2866_vm3 = vmor %vm2864_vm2, %vm2865_vm12 }
0x12d3   :  { %v2860_v2 = vmul.f32 %v3425_v24, %v2859_v26  ;;  %v2857_v11 = vsel %vm2856_vm15, %v3423_v31, %v2853_v17  ;;  %vm2846_vm5 = vmor %vm2844_vm4, %vm2845_vm1 }
0x12d4   :  { %v2840_v44 = vmul.f32 %v3427_v38, %v2839_v52  ;;  %v2870_v46 = vmul.f32 %v2857_v11, %v2802_v60  ;;  %v2883_v60 = vand.u32 127, %v71_v3 }
0x12d5   :  { %v2861_v1 = vmul.f32 0.5, %v2860_v2 }
0x12d6   :  { %v2841_v53 = vmul.f32 0.5, %v2840_v44  ;;  %v2875_v40 = vmul.f32 %v2872_v23, %v2870_v46  ;;  %vm2886_vm6 = vcmp.eq.s32.totalorder %v2883_v60, %v2885_v61 }
0x12d7   :  { %v2862_v28 = vsub.f32 1.5, %v2861_v1 }
0x12d8   :  { %v2842_v42 = vsub.f32 1.5, %v2841_v53  ;;  %v2880_v45 = vadd.f32 %v2877_v14, %v2875_v40 }
0x12d9   :  { %v2863_v33 = vmul.f32 %v3425_v24, %v2862_v28 }
0x12da   :  { %v2843_v10 = vmul.f32 %v3427_v38, %v2842_v42 }
0x12db   :  { %v2867_v6 = vsel %vm2866_vm3, %v3425_v24, %v2863_v33 }
0x12dc   :  { %v2871_v62 = vmul.f32 %v2867_v6, %v4575_v13  ;;  %v2847_v8 = vsel %vm2846_vm5, %v3427_v38, %v2843_v10  ;;  %v3469_v13 = vmov 0.0  }
0x12dd   :  { %v2869_v37 = vmul.f32 %v2847_v8, %v4577_v20  ;;  %v3150_v12 = vsel %vm2886_vm6, 1.0, %v3469_v13  ;;  %v3182_v20 = vld [vmem:[%s4628_s18 + $0x8] sm:$0xff] }
0x12de   :  { %v2876_v51 = vmul.f32 %v2872_v23, %v2871_v62  ;;  %v2889_v5 = vpack.c.bf16 %v3150_v12, %v3150_v12 }
0x12df   :  { %v2874_v35 = vmul.f32 %v2872_v23, %v2869_v37 }
0x12e0   :  { %v2881_v21 = vadd.f32 %v2877_v14, %v2876_v51 }
0x12e1   :  { %v2879_v55 = vadd.f32 %v2877_v14, %v2874_v35 }
0x12e2   :  { %v2891_v30 = vpack.c.bf16 %v2881_v21, %v2880_v45 }
0x12e3   :  { %v2890_v3 = vpack.c.bf16 %v2879_v55, %v2878_v54 }
0x12e4   :  { %2901 = vmatpush.bf16.msrb.mxu1 %v2891_v30 }
0x12e8   :  { %2902 = vmatpush.bf16.msrb.mxu1 %v2890_v3 }
0x12eb   :  { %3151 = vmatmul.msk.bf16.vlgmr.msrb.gmra.mxu1 %vm733_vm10, %v2889_v5 }
0x12ec   :  { %2938 = vmatpush.bf16.msra.mxu1 %v3182_v20 }
0x12f0   :  { %2939 = vmatpush.bf16.msra.mxu1 %v3181_v41 }
0x1368   :  { %v2904_v59 = vpop.f32.mrf.mxu1 }
0x1369   :  { %v2908_v50 = vpack.c.bf16 %v2904_v59, %v2904_v59 }
0x136b   :  { %3160 = vmatmul.msk.bf16.vlgmr.msra.gmra.mxu1 %vm733_vm10, %v2908_v50 }
0x1370   :  { %v2906_v18 = vpop.f32.mrf.mxu1 }
0x13e8   :  { %v2941_v39 = vpop.f32.mrf.mxu1 }
0x13e9   :  { %v2942_v58 = vadd.f32 %v3265_v16, %v2941_v39 }
0x13eb   :  { %2946 = vst.msk [vmem:[#allocation2] sm:$0x3] %vm2945_vm8, %v2942_v58 }
0x13ec   :  { %2957 = dma.vmem_to_hbm [thread:$0]  %s2953_s25, 32, %s2955_s27, [#allocation3]  }
0x13f0   :  { %v2943_v63 = vpop.f32.mrf.mxu1 }
0x13f1   :  { %3452 = dma.done.wait [#allocation3], 32  }
0x13f2   :  { %3453 = vsyncadd [#allocation3], 4294967264 }
0x13f3   :  { %2962 = vsyncpa [#allocation3], 1 }

</bundles_post_ra>
